<compile_context>
chip_gen: v5e
topology: v5e:2x2
jax: 0.10.0
libtpu: 0.0.40
codegen_flags: <defaults>
</compile_context>

<pallas_src>
import numpy as np

import jax
import jax.numpy as jnp
from jax import lax
from jax.experimental import pallas as pl
from jax.experimental.pallas import tpu as pltpu


# ----------------------------------------------------------------------------
# Helpers
# ----------------------------------------------------------------------------
def _sigmoid(x):
    # Exact sigmoid (review: avoid approx reciprocal error compounding over T).
    return 1.0 / (1.0 + jnp.exp(-x))


def _choose_bt(B, H, *, target_rows=256, max_rows=2048):
    """Largest divisor of B such that Bt*H <= max_rows, preferring Bt*H >=
    target_rows so the conv matmul M dimension fills the MXU."""
    best = 1
    for bt in range(1, B + 1):
        if B % bt:
            continue
        if bt * H > max_rows:
            break
        best = bt
        if bt * H >= target_rows:
            break
    return best


# ----------------------------------------------------------------------------
# Conv2d 3x3, padding=1 (no activation, matching the PyTorch module)
#
# Activations are stored width-flattened and height-padded: (B, H+2, W*C) with
# zero rows at 0 and H+1.  The kw taps (including width zero-padding) are folded
# into three banded weight matrices, so the kernel is just 3 accumulated MXU
# matmuls over (Bt*H, W*Cin) @ (W*Cin, W*Cout) -- bf16 operands, f32 accumulate.
# ----------------------------------------------------------------------------
def _conv3x3_kernel(x_ref, w_ref, b_ref, o_ref):
    # x_ref: (Bt, H+2, W*Cin) bf16   w_ref: (3, W*Cin, W*Cout) bf16
    # b_ref: (1, W*Cout) f32         o_ref: (Bt, H+2 or H, W*Cout) bf16
    Bt, Hp2, L = x_ref.shape
    H = Hp2 - 2
    N = o_ref.shape[2]

    acc = jnp.zeros((Bt * H, N), jnp.float32)
    for kh in range(3):                      # static unroll: 3 banded matmuls
        xs = x_ref[:, kh:kh + H, :].reshape(Bt * H, L)
        acc = acc + jnp.dot(xs, w_ref[kh], preferred_element_type=jnp.float32)
    y = (acc + b_ref[...]).reshape(Bt, H, N).astype(o_ref.dtype)

    if o_ref.shape[1] == Hp2:
        # Emit the output already height-padded for the next conv layer.
        o_ref[...] = jnp.zeros_like(o_ref)
        o_ref[:, 1:H + 1, :] = y
    else:
        o_ref[...] = y


def conv3x3(x, band, bias, *, padded_out):
    """x: (B, H+2, W*Cin) bf16 height-padded; band: (3, W*Cin, W*Cout) bf16;
    bias: (1, W*Cout) f32.  Returns (B, H+2, W*Cout) if padded_out else
    (B, H, W*Cout), bf16."""
    B, Hp2, L = x.shape
    H = Hp2 - 2
    assert band.shape[1] == L
    N = band.shape[2]
    Bt = _choose_bt(B, H)
    out_rows = Hp2 if padded_out else H
    return pl.pallas_call(
        _conv3x3_kernel,
        out_shape=jax.ShapeDtypeStruct((B, out_rows, N), jnp.bfloat16),
        grid_spec=pltpu.PrefetchScalarGridSpec(
            num_scalar_prefetch=0,
            grid=(B // Bt,),
            in_specs=[
                pl.BlockSpec((Bt, Hp2, L), lambda i: (i, 0, 0)),
                pl.BlockSpec((3, L, N), lambda i: (0, 0, 0)),
                pl.BlockSpec((1, N), lambda i: (0, 0)),
            ],
            out_specs=pl.BlockSpec((Bt, out_rows, N), lambda i: (i, 0, 0)),
        ),
        compiler_params=pltpu.CompilerParams(dimension_semantics=("parallel",)),
        cost_estimate=pl.CostEstimate(
            flops=2 * 3 * B * H * L * N,
            transcendentals=0,
            bytes_accessed=2 * (B * Hp2 * L + 3 * L * N + B * out_rows * N) + 4 * N),
    )(x, band, bias)


# ----------------------------------------------------------------------------
# Fused BiLSTM: input projection + recurrence + last-timestep FC in ONE kernel.
#
# seq_tm : (T*B, In) bf16, time-major rows (row t*B + b == x[b, t, :]).
# w_ih   : (In, 8H) bf16, gate-type-major columns [i_f|i_b|f_f|f_b|g_f|g_b|o_f|o_b].
# w_hh   : (2H, 8H) f32 block-diagonal (rows 0:H -> forward cols, H:2H -> backward).
# Forward reads time t, backward reads time T-1-t (no flips); the backward
# hidden at original position T-1 is the FIRST reverse step, captured in the
# peeled t==0 iteration (== PyTorch lstm_out[:, -1, H:]).
# ----------------------------------------------------------------------------
def _bilstm_fc_kernel(x_ref, wih_ref, bih_ref, whh_ref, fcw_ref, fcb_ref,
                      o_ref, g_scr):
    TB, In = x_ref.shape
    B, C = o_ref.shape
    T = TB // B
    Hd2, G8 = whh_ref.shape            # (2H, 8H)
    Hd = Hd2 // 2

    # (1) Fused input-gate projection for BOTH directions: one large MXU matmul
    #     (bf16 operands, f32 accumulate) staged into a VMEM scratch -- no HBM
    #     gate tensor round-trip.
    g_scr[...] = (jnp.dot(x_ref[...], wih_ref[...],
                          preferred_element_type=jnp.float32) + bih_ref[...])

    # Per-column direction mask: within each 2H gate block, first H cols = fwd.
    col = lax.broadcasted_iota(jnp.int32, (B, G8), 1)
    fwd_col = (col % Hd2) < Hd

    def gates_at(t):
        gt = g_scr[pl.ds(t * B, B), :]             # forward direction, time t
        gr = g_scr[pl.ds((T - 1 - t) * B, B), :]   # backward direction, time T-1-t
        return jnp.where(fwd_col, gt, gr)

    def cell(g, c_cat):
        # PyTorch gate order i, f, g, o; both directions processed jointly.
        i = _sigmoid(g[:, 0 * Hd2:1 * Hd2])
        f = _sigmoid(g[:, 1 * Hd2:2 * Hd2])
        gg = jnp.tanh(g[:, 2 * Hd2:3 * Hd2])
        o = _sigmoid(g[:, 3 * Hd2:4 * Hd2])
        c_new = f * c_cat + i * gg
        return o * jnp.tanh(c_new), c_new

    # (2) Peeled t == 0 step: zero initial state -> no recurrent matmul and no
    #     forget term; captures hb_last exactly once (no per-step select).
    g0 = gates_at(0)
    i0 = _sigmoid(g0[:, 0 * Hd2:1 * Hd2])
    gg0 = jnp.tanh(g0[:, 2 * Hd2:3 * Hd2])
    o0 = _sigmoid(g0[:, 3 * Hd2:4 * Hd2])
    c_cat = i0 * gg0
    h_cat = o0 * jnp.tanh(c_cat)
    hb_last = h_cat[:, Hd:]            # backward hidden at original time T-1

    # (3) Remaining steps: ONE block-diagonal recurrent matmul feeds both
    #     directions; time loop unrolled for LLO scheduling visibility.
    def body(t, carry):
        h, c = carry
        rec = jnp.dot(h, whh_ref[...], preferred_element_type=jnp.float32)
        return cell(gates_at(t) + rec, c)

    unroll = True if T <= 64 else 4
    h_cat, c_cat = lax.fori_loop(1, T, body, (h_cat, c_cat), unroll=unroll)

    # (4) Final FC on [h_fwd(last) | h_bwd at t=T-1], fused in-kernel.
    feat = jnp.concatenate([h_cat[:, :Hd], hb_last], axis=1)      # (B, 2H)
    o_ref[...] = (jnp.dot(feat, fcw_ref[...], preferred_element_type=jnp.float32)
                  + fcb_ref[...]).astype(o_ref.dtype)


def bilstm_last_fc(seq_tm, w_ih, b_ih, w_hh, fc_w, fc_b, *, batch):
    TB, In = seq_tm.shape
    G8 = w_ih.shape[1]
    Hd2 = w_hh.shape[0]
    C = fc_w.shape[1]
    T = TB // batch
    vmem = lambda: pl.BlockSpec(memory_space=pltpu.MemorySpace.VMEM)
    return pl.pallas_call(
        _bilstm_fc_kernel,
        out_shape=jax.ShapeDtypeStruct((batch, C), jnp.float32),
        in_specs=[vmem() for _ in range(6)],
        out_specs=vmem(),
        scratch_shapes=[pltpu.VMEM((TB, G8), jnp.float32)],
        cost_estimate=pl.CostEstimate(
            flops=(2 * TB * In * G8 + 2 * max(T - 1, 0) * batch * Hd2 * G8
                   + 2 * batch * Hd2 * C),
            transcendentals=10 * T * batch * Hd2,
            bytes_accessed=(2 * (TB * In + In * G8)
                            + 4 * (G8 + Hd2 * G8 + Hd2 * C + C + batch * C))),
    )(seq_tm.astype(jnp.bfloat16),
      w_ih.astype(jnp.bfloat16),
      b_ih.reshape(1, G8).astype(jnp.float32),
      w_hh.astype(jnp.float32),                 # recurrence stays f32 for parity
      fc_w.astype(jnp.float32),
      fc_b.reshape(1, C).astype(jnp.float32))


# ----------------------------------------------------------------------------
# One-time weight packing (outside jit): banded conv weights, fused LSTM weights
# ----------------------------------------------------------------------------
def _band_weights_np(w_oihw, width, *, cout_major=False):
    """torch (Cout, Cin, 3, 3) -> (3, W*Cin, W*Cout) band matrices; width
    zero-padding is folded in by simply dropping out-of-range taps.  Output
    column order is w*Cout+cout (default) or cout*W+w (cout_major, LSTM layout)."""
    Cout, Cin = w_oihw.shape[0], w_oihw.shape[1]
    band = np.zeros((3, width * Cin, width * Cout), np.float32)
    for kh in range(3):
        for w_out in range(width):
            for kw in range(3):
                w_in = w_out + kw - 1
                if w_in < 0 or w_in >= width:
                    continue
                blk = w_oihw[:, :, kh, kw].T                       # (Cin, Cout)
                rows = slice(w_in * Cin, (w_in + 1) * Cin)
                if cout_major:
                    band[kh, rows, w_out::width] = blk
                else:
                    band[kh, rows, w_out * Cout:(w_out + 1) * Cout] = blk
    return band


def _pack_lstm_weights(w_ih_f, w_ih_b, w_hh_f, w_hh_b,
                       b_ih_f, b_hh_f, b_ih_b, b_hh_b):
    """PyTorch-layout LSTM params -> fused, gate-type-major column layout
    [i_f|i_b|f_f|f_b|g_f|g_b|o_f|o_b] plus a block-diagonal (2H, 8H) W_hh."""
    H4, In = w_ih_f.shape
    Hd = H4 // 4
    w_ih = np.zeros((In, 8 * Hd), np.float32)
    w_hh = np.zeros((2 * Hd, 8 * Hd), np.float32)
    bias = np.zeros((8 * Hd,), np.float32)
    bf = b_ih_f + b_hh_f
    bb = b_ih_b + b_hh_b
    for g in range(4):
        rows = slice(g * Hd, (g + 1) * Hd)
        cf = slice((2 * g) * Hd, (2 * g + 1) * Hd)        # forward cols, gate g
        cb = slice((2 * g + 1) * Hd, (2 * g + 2) * Hd)    # backward cols, gate g
        w_ih[:, cf] = w_ih_f[rows, :].T
        w_ih[:, cb] = w_ih_b[rows, :].T
        w_hh[:Hd, cf] = w_hh_f[rows, :].T
        w_hh[Hd:, cb] = w_hh_b[rows, :].T
        bias[cf] = bf[rows]
        bias[cb] = bb[rows]
    return w_ih, w_hh, bias


def prepare_params(params, width):
    """One-time repack (NOT inside jit) of PyTorch-layout params into kernel
    layouts: no per-forward dynamic-update-slice chains."""
    p = {k: np.asarray(v, np.float32) for k, v in params.items()}
    prep = {}
    for idx in (1, 2, 3, 4):
        w, b = p[f"conv{idx}_w"], p[f"conv{idx}_b"]
        cout_major = (idx == 4)            # conv4 emits the LSTM feature layout
        band = _band_weights_np(w, width, cout_major=cout_major)
        bias = np.repeat(b, width) if cout_major else np.tile(b, width)
        prep[f"band{idx}"] = jnp.asarray(band, jnp.bfloat16)
        prep[f"bias{idx}"] = jnp.asarray(bias.reshape(1, -1), jnp.float32)
    w_ih, w_hh, b_ih = _pack_lstm_weights(
        p["lstm_w_ih_f"], p["lstm_w_ih_b"], p["lstm_w_hh_f"], p["lstm_w_hh_b"],
        p["lstm_b_ih_f"], p["lstm_b_hh_f"], p["lstm_b_ih_b"], p["lstm_b_hh_b"])
    prep["w_ih"] = jnp.asarray(w_ih, jnp.bfloat16)
    prep["w_hh"] = jnp.asarray(w_hh, jnp.float32)
    prep["b_ih"] = jnp.asarray(b_ih, jnp.float32)
    prep["fc_w"] = jnp.asarray(p["fc_w"].T, jnp.float32)
    prep["fc_b"] = jnp.asarray(p["fc_b"], jnp.float32)
    return prep


# ----------------------------------------------------------------------------
# Full CRNN forward
# ----------------------------------------------------------------------------
@jax.jit
def crnn_forward(x_nchw, prep):
    B, Cin, H, Wd = x_nchw.shape
    # NCHW -> (B, H, W*Cin) with (w-major, cin-minor) columns; height-pad ONCE.
    # Every conv re-emits its output already height-padded, so no further pads.
    x = jnp.transpose(x_nchw, (0, 2, 3, 1)).reshape(B, H, Wd * Cin)
    x = jnp.pad(x, ((0, 0), (1, 1), (0, 0))).astype(jnp.bfloat16)

    x = conv3x3(x, prep["band1"], prep["bias1"], padded_out=True)
    x = conv3x3(x, prep["band2"], prep["bias2"], padded_out=True)
    x = conv3x3(x, prep["band3"], prep["bias3"], padded_out=True)
    # conv4's band columns are (C-major, W) so this IS PyTorch's
    # permute(0,2,1,3).view(B, H, C*W) -- no transpose copy afterwards.
    seq = conv3x3(x, prep["band4"], prep["bias4"], padded_out=False)   # (B, T, In)

    B_, T, In = seq.shape
    seq_tm = jnp.transpose(seq, (1, 0, 2)).reshape(T * B, In)          # time-major
    return bilstm_last_fc(seq_tm, prep["w_ih"], prep["b_ih"], prep["w_hh"],
                          prep["fc_w"], prep["fc_b"], batch=B)


# ----------------------------------------------------------------------------
# Deterministic parameter init (PyTorch layouts, scaled-down shapes)
# ----------------------------------------------------------------------------
def init_params(key, cin, c1, c2, c3, c4, width, hidden, num_classes):
    ks = jax.random.split(key, 18)
    s = 0.1
    lstm_in = c4 * width

    def n(k, shape):
        return jax.random.normal(k, shape, jnp.float32) * s

    return {
        "conv1_w": n(ks[0], (c1, cin, 3, 3)), "conv1_b": n(ks[1], (c1,)),
        "conv2_w": n(ks[2], (c2, c1, 3, 3)),  "conv2_b": n(ks[3], (c2,)),
        "conv3_w": n(ks[4], (c3, c2, 3, 3)),  "conv3_b": n(ks[5], (c3,)),
        "conv4_w": n(ks[6], (c4, c3, 3, 3)),  "conv4_b": n(ks[7], (c4,)),
        # LSTM (PyTorch layout): weight_ih (4H, In), weight_hh (4H, H), biases (4H,)
        "lstm_w_ih_f": n(ks[8], (4 * hidden, lstm_in)),
        "lstm_w_hh_f": n(ks[9], (4 * hidden, hidden)),
        "lstm_b_ih_f": n(ks[10], (4 * hidden,)),
        "lstm_b_hh_f": n(ks[11], (4 * hidden,)),
        "lstm_w_ih_b": n(ks[12], (4 * hidden, lstm_in)),
        "lstm_w_hh_b": n(ks[13], (4 * hidden, hidden)),
        "lstm_b_ih_b": n(ks[14], (4 * hidden,)),
        "lstm_b_hh_b": n(ks[15], (4 * hidden,)),
        # FC (PyTorch layout): (num_classes, 2H)
        "fc_w": n(ks[16], (num_classes, 2 * hidden)),
        "fc_b": n(ks[17], (num_classes,)),
    }


if __name__ == "__main__":
    # Small shapes consistent with the module geometry:
    # input (B, C_in, H, W) = (2, 4, 16, 4); conv channels 8->16->32->32;
    # LSTM input = 32 * 4 = 128, hidden = 32, num_classes = 2.
    B, Cin, H, W = 2, 4, 16, 4
    c1, c2, c3, c4 = 8, 16, 32, 32
    hidden, num_classes = 32, 2

    key = jax.random.PRNGKey(0)
    k_x, k_p = jax.random.split(key)
    x = jax.random.normal(k_x, (B, Cin, H, W), jnp.float32)
    params = init_params(k_p, Cin, c1, c2, c3, c4, W, hidden, num_classes)
    prep = prepare_params(params, W)          # one-time weight packing (no jit)

    out = crnn_forward(x, prep)
    jax.block_until_ready(out)
    assert out.shape == (B, num_classes) and out.dtype == jnp.float32
    assert bool(jnp.all(jnp.isfinite(out)))
    print("KERNEL_OK")
</pallas_src>

<mosaic_0001>
module attributes {stable_mosaic.version = 11 : i64} {
  func.func @_conv3x3_kernel(%arg0: i32, %arg1: memref<2x18x32xbf16, #tpu.memory_space<vmem>>, %arg2: memref<3x32x64xbf16, #tpu.memory_space<vmem>>, %arg3: memref<1x64xf32, #tpu.memory_space<vmem>>, %arg4: memref<2x18x64xbf16, #tpu.memory_space<vmem>>) attributes {dimension_semantics = [#tpu.dimension_semantics<parallel>], iteration_bounds = array<i64: 1>, scalar_prefetch = 0 : i64, scratch_operands = 0 : i64, tpu.core_type = #tpu.core_type<tc>, window_params = [{transform_indices = @transform_0, window_bounds = array<i64: 2, 18, 32>}, {pipeline_mode = #tpu.pipeline_mode<synchronous>, transform_indices = @transform_1, window_bounds = array<i64: 3, 32, 64>}, {pipeline_mode = #tpu.pipeline_mode<synchronous>, transform_indices = @transform_2, window_bounds = array<i64: 1, 64>}, {transform_indices = @transform_3, window_bounds = array<i64: 2, 18, 64>}]} {
    %cst = arith.constant 0.000000e+00 : f32
    %0 = vector.broadcast %cst : f32 to vector<32x64xf32>
    %c0 = arith.constant 0 : index
    %c0_0 = arith.constant 0 : index
    %c0_1 = arith.constant 0 : index
    %1 = vector.load %arg1[%c0, %c0_0, %c0_1] : memref<2x18x32xbf16, #tpu.memory_space<vmem>>, vector<2x16x32xbf16>
    %2 = vector.shape_cast %1 : vector<2x16x32xbf16> to vector<32x32xbf16>
    %c0_2 = arith.constant 0 : index
    %c0_3 = arith.constant 0 : index
    %c0_4 = arith.constant 0 : index
    %3 = vector.load %arg2[%c0_2, %c0_3, %c0_4] : memref<3x32x64xbf16, #tpu.memory_space<vmem>>, vector<1x32x64xbf16>
    %4 = vector.shape_cast %3 : vector<1x32x64xbf16> to vector<32x64xbf16>
    %cst_5 = arith.constant dense<0.000000e+00> : vector<32x64xf32>
    %5 = tpu.matmul %2, %4, %cst_5 {dimension_numbers = #tpu.dot_dimension_numbers<[1], [0], [0], [1], [0, 0, 1, 1], [], []>} : vector<32x32xbf16>, vector<32x64xbf16>, vector<32x64xf32> -> vector<32x64xf32>
    %6 = arith.addf %0, %5 : vector<32x64xf32>
    %c0_6 = arith.constant 0 : index
    %c1 = arith.constant 1 : index
    %c0_7 = arith.constant 0 : index
    %7 = vector.load %arg1[%c0_6, %c1, %c0_7] : memref<2x18x32xbf16, #tpu.memory_space<vmem>>, vector<2x16x32xbf16>
    %8 = vector.shape_cast %7 : vector<2x16x32xbf16> to vector<32x32xbf16>
    %c1_8 = arith.constant 1 : index
    %c0_9 = arith.constant 0 : index
    %c0_10 = arith.constant 0 : index
    %9 = vector.load %arg2[%c1_8, %c0_9, %c0_10] : memref<3x32x64xbf16, #tpu.memory_space<vmem>>, vector<1x32x64xbf16>
    %10 = vector.shape_cast %9 : vector<1x32x64xbf16> to vector<32x64xbf16>
    %cst_11 = arith.constant dense<0.000000e+00> : vector<32x64xf32>
    %11 = tpu.matmul %8, %10, %cst_11 {dimension_numbers = #tpu.dot_dimension_numbers<[1], [0], [0], [1], [0, 0, 1, 1], [], []>} : vector<32x32xbf16>, vector<32x64xbf16>, vector<32x64xf32> -> vector<32x64xf32>
    %12 = arith.addf %6, %11 : vector<32x64xf32>
    %c0_12 = arith.constant 0 : index
    %c2 = arith.constant 2 : index
    %c0_13 = arith.constant 0 : index
    %13 = vector.load %arg1[%c0_12, %c2, %c0_13] : memref<2x18x32xbf16, #tpu.memory_space<vmem>>, vector<2x16x32xbf16>
    %14 = vector.shape_cast %13 : vector<2x16x32xbf16> to vector<32x32xbf16>
    %c2_14 = arith.constant 2 : index
    %c0_15 = arith.constant 0 : index
    %c0_16 = arith.constant 0 : index
    %15 = vector.load %arg2[%c2_14, %c0_15, %c0_16] : memref<3x32x64xbf16, #tpu.memory_space<vmem>>, vector<1x32x64xbf16>
    %16 = vector.shape_cast %15 : vector<1x32x64xbf16> to vector<32x64xbf16>
    %cst_17 = arith.constant dense<0.000000e+00> : vector<32x64xf32>
    %17 = tpu.matmul %14, %16, %cst_17 {dimension_numbers = #tpu.dot_dimension_numbers<[1], [0], [0], [1], [0, 0, 1, 1], [], []>} : vector<32x32xbf16>, vector<32x64xbf16>, vector<32x64xf32> -> vector<32x64xf32>
    %18 = arith.addf %12, %17 : vector<32x64xf32>
    %c0_18 = arith.constant 0 : index
    %c0_19 = arith.constant 0 : index
    %19 = vector.load %arg3[%c0_18, %c0_19] : memref<1x64xf32, #tpu.memory_space<vmem>>, vector<1x64xf32>
    %20 = vector.broadcast %19 : vector<1x64xf32> to vector<32x64xf32>
    %21 = arith.addf %18, %20 : vector<32x64xf32>
    %22 = vector.shape_cast %21 : vector<32x64xf32> to vector<2x16x64xf32>
    %23 = arith.truncf %22 : vector<2x16x64xf32> to vector<2x16x64xbf16>
    %cst_20 = arith.constant 0.000000e+00 : bf16
    %24 = vector.broadcast %cst_20 : bf16 to vector<2x18x64xbf16>
    %c0_21 = arith.constant 0 : index
    %c0_22 = arith.constant 0 : index
    %c0_23 = arith.constant 0 : index
    %25 = vector.load %arg4[%c0_21, %c0_22, %c0_23] : memref<2x18x64xbf16, #tpu.memory_space<vmem>>, vector<2x18x64xbf16>
    tpu.vector_store %arg4[%c0_21, %c0_22, %c0_23], %24 {strides = array<i32>} : memref<2x18x64xbf16, #tpu.memory_space<vmem>>, vector<2x18x64xbf16>,
    %c0_24 = arith.constant 0 : index
    %c1_25 = arith.constant 1 : index
    %c0_26 = arith.constant 0 : index
    %26 = vector.load %arg4[%c0_24, %c1_25, %c0_26] : memref<2x18x64xbf16, #tpu.memory_space<vmem>>, vector<2x16x64xbf16>
    tpu.vector_store %arg4[%c0_24, %c1_25, %c0_26], %23 {strides = array<i32>} : memref<2x18x64xbf16, #tpu.memory_space<vmem>>, vector<2x16x64xbf16>,
    return
  }
  func.func @transform_0(%arg0: i32) -> (i32, i32, i32) {
    %c0_i32 = arith.constant 0 : i32
    %c0_i32_0 = arith.constant 0 : i32
    %c0_i32_1 = arith.constant 0 : i32
    return %arg0, %c0_i32, %c0_i32_0 : i32, i32, i32
  }
  func.func @transform_1(%arg0: i32) -> (i32, i32, i32) {
    %c0_i32 = arith.constant 0 : i32
    %c0_i32_0 = arith.constant 0 : i32
    %c0_i32_1 = arith.constant 0 : i32
    %c0_i32_2 = arith.constant 0 : i32
    return %c0_i32, %c0_i32_0, %c0_i32_1 : i32, i32, i32
  }
  func.func @transform_2(%arg0: i32) -> (i32, i32) {
    %c0_i32 = arith.constant 0 : i32
    %c0_i32_0 = arith.constant 0 : i32
    %c0_i32_1 = arith.constant 0 : i32
    return %c0_i32, %c0_i32_0 : i32, i32
  }
  func.func @transform_3(%arg0: i32) -> (i32, i32, i32) {
    %c0_i32 = arith.constant 0 : i32
    %c0_i32_0 = arith.constant 0 : i32
    %c0_i32_1 = arith.constant 0 : i32
    return %arg0, %c0_i32, %c0_i32_0 : i32, i32, i32
  }
}

module attributes {stable_mosaic.version = 11 : i64} {
  func.func @_conv3x3_kernel(%arg0: i32, %arg1: memref<2x18x16xbf16, #tpu.memory_space<vmem>>, %arg2: memref<3x16x32xbf16, #tpu.memory_space<vmem>>, %arg3: memref<1x32xf32, #tpu.memory_space<vmem>>, %arg4: memref<2x18x32xbf16, #tpu.memory_space<vmem>>) attributes {dimension_semantics = [#tpu.dimension_semantics<parallel>], iteration_bounds = array<i64: 1>, scalar_prefetch = 0 : i64, scratch_operands = 0 : i64, tpu.core_type = #tpu.core_type<tc>, window_params = [{transform_indices = @transform_0, window_bounds = array<i64: 2, 18, 16>}, {pipeline_mode = #tpu.pipeline_mode<synchronous>, transform_indices = @transform_1, window_bounds = array<i64: 3, 16, 32>}, {pipeline_mode = #tpu.pipeline_mode<synchronous>, transform_indices = @transform_2, window_bounds = array<i64: 1, 32>}, {transform_indices = @transform_3, window_bounds = array<i64: 2, 18, 32>}]} {
    %cst = arith.constant 0.000000e+00 : f32
    %0 = vector.broadcast %cst : f32 to vector<32x32xf32>
    %c0 = arith.constant 0 : index
    %c0_0 = arith.constant 0 : index
    %c0_1 = arith.constant 0 : index
    %1 = vector.load %arg1[%c0, %c0_0, %c0_1] : memref<2x18x16xbf16, #tpu.memory_space<vmem>>, vector<2x16x16xbf16>
    %2 = vector.shape_cast %1 : vector<2x16x16xbf16> to vector<32x16xbf16>
    %c0_2 = arith.constant 0 : index
    %c0_3 = arith.constant 0 : index
    %c0_4 = arith.constant 0 : index
    %3 = vector.load %arg2[%c0_2, %c0_3, %c0_4] : memref<3x16x32xbf16, #tpu.memory_space<vmem>>, vector<1x16x32xbf16>
    %4 = vector.shape_cast %3 : vector<1x16x32xbf16> to vector<16x32xbf16>
    %cst_5 = arith.constant dense<0.000000e+00> : vector<32x32xf32>
    %5 = tpu.matmul %2, %4, %cst_5 {dimension_numbers = #tpu.dot_dimension_numbers<[1], [0], [0], [1], [0, 0, 1, 1], [], []>} : vector<32x16xbf16>, vector<16x32xbf16>, vector<32x32xf32> -> vector<32x32xf32>
    %6 = arith.addf %0, %5 : vector<32x32xf32>
    %c0_6 = arith.constant 0 : index
    %c1 = arith.constant 1 : index
    %c0_7 = arith.constant 0 : index
    %7 = vector.load %arg1[%c0_6, %c1, %c0_7] : memref<2x18x16xbf16, #tpu.memory_space<vmem>>, vector<2x16x16xbf16>
    %8 = vector.shape_cast %7 : vector<2x16x16xbf16> to vector<32x16xbf16>
    %c1_8 = arith.constant 1 : index
    %c0_9 = arith.constant 0 : index
    %c0_10 = arith.constant 0 : index
    %9 = vector.load %arg2[%c1_8, %c0_9, %c0_10] : memref<3x16x32xbf16, #tpu.memory_space<vmem>>, vector<1x16x32xbf16>
    %10 = vector.shape_cast %9 : vector<1x16x32xbf16> to vector<16x32xbf16>
    %cst_11 = arith.constant dense<0.000000e+00> : vector<32x32xf32>
    %11 = tpu.matmul %8, %10, %cst_11 {dimension_numbers = #tpu.dot_dimension_numbers<[1], [0], [0], [1], [0, 0, 1, 1], [], []>} : vector<32x16xbf16>, vector<16x32xbf16>, vector<32x32xf32> -> vector<32x32xf32>
    %12 = arith.addf %6, %11 : vector<32x32xf32>
    %c0_12 = arith.constant 0 : index
    %c2 = arith.constant 2 : index
    %c0_13 = arith.constant 0 : index
    %13 = vector.load %arg1[%c0_12, %c2, %c0_13] : memref<2x18x16xbf16, #tpu.memory_space<vmem>>, vector<2x16x16xbf16>
    %14 = vector.shape_cast %13 : vector<2x16x16xbf16> to vector<32x16xbf16>
    %c2_14 = arith.constant 2 : index
    %c0_15 = arith.constant 0 : index
    %c0_16 = arith.constant 0 : index
    %15 = vector.load %arg2[%c2_14, %c0_15, %c0_16] : memref<3x16x32xbf16, #tpu.memory_space<vmem>>, vector<1x16x32xbf16>
    %16 = vector.shape_cast %15 : vector<1x16x32xbf16> to vector<16x32xbf16>
    %cst_17 = arith.constant dense<0.000000e+00> : vector<32x32xf32>
    %17 = tpu.matmul %14, %16, %cst_17 {dimension_numbers = #tpu.dot_dimension_numbers<[1], [0], [0], [1], [0, 0, 1, 1], [], []>} : vector<32x16xbf16>, vector<16x32xbf16>, vector<32x32xf32> -> vector<32x32xf32>
    %18 = arith.addf %12, %17 : vector<32x32xf32>
    %c0_18 = arith.constant 0 : index
    %c0_19 = arith.constant 0 : index
    %19 = vector.load %arg3[%c0_18, %c0_19] : memref<1x32xf32, #tpu.memory_space<vmem>>, vector<1x32xf32>
    %20 = vector.broadcast %19 : vector<1x32xf32> to vector<32x32xf32>
    %21 = arith.addf %18, %20 : vector<32x32xf32>
    %22 = vector.shape_cast %21 : vector<32x32xf32> to vector<2x16x32xf32>
    %23 = arith.truncf %22 : vector<2x16x32xf32> to vector<2x16x32xbf16>
    %cst_20 = arith.constant 0.000000e+00 : bf16
    %24 = vector.broadcast %cst_20 : bf16 to vector<2x18x32xbf16>
    %c0_21 = arith.constant 0 : index
    %c0_22 = arith.constant 0 : index
    %c0_23 = arith.constant 0 : index
    %25 = vector.load %arg4[%c0_21, %c0_22, %c0_23] : memref<2x18x32xbf16, #tpu.memory_space<vmem>>, vector<2x18x32xbf16>
    tpu.vector_store %arg4[%c0_21, %c0_22, %c0_23], %24 {strides = array<i32>} : memref<2x18x32xbf16, #tpu.memory_space<vmem>>, vector<2x18x32xbf16>,
    %c0_24 = arith.constant 0 : index
    %c1_25 = arith.constant 1 : index
    %c0_26 = arith.constant 0 : index
    %26 = vector.load %arg4[%c0_24, %c1_25, %c0_26] : memref<2x18x32xbf16, #tpu.memory_space<vmem>>, vector<2x16x32xbf16>
    tpu.vector_store %arg4[%c0_24, %c1_25, %c0_26], %23 {strides = array<i32>} : memref<2x18x32xbf16, #tpu.memory_space<vmem>>, vector<2x16x32xbf16>,
    return
  }
  func.func @transform_0(%arg0: i32) -> (i32, i32, i32) {
    %c0_i32 = arith.constant 0 : i32
    %c0_i32_0 = arith.constant 0 : i32
    %c0_i32_1 = arith.constant 0 : i32
    return %arg0, %c0_i32, %c0_i32_0 : i32, i32, i32
  }
  func.func @transform_1(%arg0: i32) -> (i32, i32, i32) {
    %c0_i32 = arith.constant 0 : i32
    %c0_i32_0 = arith.constant 0 : i32
    %c0_i32_1 = arith.constant 0 : i32
    %c0_i32_2 = arith.constant 0 : i32
    return %c0_i32, %c0_i32_0, %c0_i32_1 : i32, i32, i32
  }
  func.func @transform_2(%arg0: i32) -> (i32, i32) {
    %c0_i32 = arith.constant 0 : i32
    %c0_i32_0 = arith.constant 0 : i32
    %c0_i32_1 = arith.constant 0 : i32
    return %c0_i32, %c0_i32_0 : i32, i32
  }
  func.func @transform_3(%arg0: i32) -> (i32, i32, i32) {
    %c0_i32 = arith.constant 0 : i32
    %c0_i32_0 = arith.constant 0 : i32
    %c0_i32_1 = arith.constant 0 : i32
    return %arg0, %c0_i32, %c0_i32_0 : i32, i32, i32
  }
}

module attributes {stable_mosaic.version = 11 : i64} {
  func.func @_conv3x3_kernel(%arg0: i32, %arg1: memref<2x18x128xbf16, #tpu.memory_space<vmem>>, %arg2: memref<3x128x128xbf16, #tpu.memory_space<vmem>>, %arg3: memref<1x128xf32, #tpu.memory_space<vmem>>, %arg4: memref<2x16x128xbf16, #tpu.memory_space<vmem>>) attributes {dimension_semantics = [#tpu.dimension_semantics<parallel>], iteration_bounds = array<i64: 1>, scalar_prefetch = 0 : i64, scratch_operands = 0 : i64, tpu.core_type = #tpu.core_type<tc>, window_params = [{transform_indices = @transform_0, window_bounds = array<i64: 2, 18, 128>}, {pipeline_mode = #tpu.pipeline_mode<synchronous>, transform_indices = @transform_1, window_bounds = array<i64: 3, 128, 128>}, {pipeline_mode = #tpu.pipeline_mode<synchronous>, transform_indices = @transform_2, window_bounds = array<i64: 1, 128>}, {transform_indices = @transform_3, window_bounds = array<i64: 2, 16, 128>}]} {
    %cst = arith.constant 0.000000e+00 : f32
    %0 = vector.broadcast %cst : f32 to vector<32x128xf32>
    %c0 = arith.constant 0 : index
    %c0_0 = arith.constant 0 : index
    %c0_1 = arith.constant 0 : index
    %1 = vector.load %arg1[%c0, %c0_0, %c0_1] : memref<2x18x128xbf16, #tpu.memory_space<vmem>>, vector<2x16x128xbf16>
    %2 = vector.shape_cast %1 : vector<2x16x128xbf16> to vector<32x128xbf16>
    %c0_2 = arith.constant 0 : index
    %c0_3 = arith.constant 0 : index
    %c0_4 = arith.constant 0 : index
    %3 = vector.load %arg2[%c0_2, %c0_3, %c0_4] : memref<3x128x128xbf16, #tpu.memory_space<vmem>>, vector<1x128x128xbf16>
    %4 = vector.shape_cast %3 : vector<1x128x128xbf16> to vector<128x128xbf16>
    %cst_5 = arith.constant dense<0.000000e+00> : vector<32x128xf32>
    %5 = tpu.matmul %2, %4, %cst_5 {dimension_numbers = #tpu.dot_dimension_numbers<[1], [0], [0], [1], [0, 0, 1, 1], [], []>} : vector<32x128xbf16>, vector<128x128xbf16>, vector<32x128xf32> -> vector<32x128xf32>
    %6 = arith.addf %0, %5 : vector<32x128xf32>
    %c0_6 = arith.constant 0 : index
    %c1 = arith.constant 1 : index
    %c0_7 = arith.constant 0 : index
    %7 = vector.load %arg1[%c0_6, %c1, %c0_7] : memref<2x18x128xbf16, #tpu.memory_space<vmem>>, vector<2x16x128xbf16>
    %8 = vector.shape_cast %7 : vector<2x16x128xbf16> to vector<32x128xbf16>
    %c1_8 = arith.constant 1 : index
    %c0_9 = arith.constant 0 : index
    %c0_10 = arith.constant 0 : index
    %9 = vector.load %arg2[%c1_8, %c0_9, %c0_10] : memref<3x128x128xbf16, #tpu.memory_space<vmem>>, vector<1x128x128xbf16>
    %10 = vector.shape_cast %9 : vector<1x128x128xbf16> to vector<128x128xbf16>
    %cst_11 = arith.constant dense<0.000000e+00> : vector<32x128xf32>
    %11 = tpu.matmul %8, %10, %cst_11 {dimension_numbers = #tpu.dot_dimension_numbers<[1], [0], [0], [1], [0, 0, 1, 1], [], []>} : vector<32x128xbf16>, vector<128x128xbf16>, vector<32x128xf32> -> vector<32x128xf32>
    %12 = arith.addf %6, %11 : vector<32x128xf32>
    %c0_12 = arith.constant 0 : index
    %c2 = arith.constant 2 : index
    %c0_13 = arith.constant 0 : index
    %13 = vector.load %arg1[%c0_12, %c2, %c0_13] : memref<2x18x128xbf16, #tpu.memory_space<vmem>>, vector<2x16x128xbf16>
    %14 = vector.shape_cast %13 : vector<2x16x128xbf16> to vector<32x128xbf16>
    %c2_14 = arith.constant 2 : index
    %c0_15 = arith.constant 0 : index
    %c0_16 = arith.constant 0 : index
    %15 = vector.load %arg2[%c2_14, %c0_15, %c0_16] : memref<3x128x128xbf16, #tpu.memory_space<vmem>>, vector<1x128x128xbf16>
    %16 = vector.shape_cast %15 : vector<1x128x128xbf16> to vector<128x128xbf16>
    %cst_17 = arith.constant dense<0.000000e+00> : vector<32x128xf32>
    %17 = tpu.matmul %14, %16, %cst_17 {dimension_numbers = #tpu.dot_dimension_numbers<[1], [0], [0], [1], [0, 0, 1, 1], [], []>} : vector<32x128xbf16>, vector<128x128xbf16>, vector<32x128xf32> -> vector<32x128xf32>
    %18 = arith.addf %12, %17 : vector<32x128xf32>
    %c0_18 = arith.constant 0 : index
    %c0_19 = arith.constant 0 : index
    %19 = vector.load %arg3[%c0_18, %c0_19] : memref<1x128xf32, #tpu.memory_space<vmem>>, vector<1x128xf32>
    %20 = vector.broadcast %19 : vector<1x128xf32> to vector<32x128xf32>
    %21 = arith.addf %18, %20 : vector<32x128xf32>
    %22 = vector.shape_cast %21 : vector<32x128xf32> to vector<2x16x128xf32>
    %23 = arith.truncf %22 : vector<2x16x128xf32> to vector<2x16x128xbf16>
    %c0_20 = arith.constant 0 : index
    %c0_21 = arith.constant 0 : index
    %c0_22 = arith.constant 0 : index
    %24 = vector.load %arg4[%c0_20, %c0_21, %c0_22] : memref<2x16x128xbf16, #tpu.memory_space<vmem>>, vector<2x16x128xbf16>
    tpu.vector_store %arg4[%c0_20, %c0_21, %c0_22], %23 {strides = array<i32>} : memref<2x16x128xbf16, #tpu.memory_space<vmem>>, vector<2x16x128xbf16>,
    return
  }
  func.func @transform_0(%arg0: i32) -> (i32, i32, i32) {
    %c0_i32 = arith.constant 0 : i32
    %c0_i32_0 = arith.constant 0 : i32
    %c0_i32_1 = arith.constant 0 : i32
    return %arg0, %c0_i32, %c0_i32_0 : i32, i32, i32
  }
  func.func @transform_1(%arg0: i32) -> (i32, i32, i32) {
    %c0_i32 = arith.constant 0 : i32
    %c0_i32_0 = arith.constant 0 : i32
    %c0_i32_1 = arith.constant 0 : i32
    %c0_i32_2 = arith.constant 0 : i32
    return %c0_i32, %c0_i32_0, %c0_i32_1 : i32, i32, i32
  }
  func.func @transform_2(%arg0: i32) -> (i32, i32) {
    %c0_i32 = arith.constant 0 : i32
    %c0_i32_0 = arith.constant 0 : i32
    %c0_i32_1 = arith.constant 0 : i32
    return %c0_i32, %c0_i32_0 : i32, i32
  }
  func.func @transform_3(%arg0: i32) -> (i32, i32, i32) {
    %c0_i32 = arith.constant 0 : i32
    %c0_i32_0 = arith.constant 0 : i32
    %c0_i32_1 = arith.constant 0 : i32
    return %arg0, %c0_i32, %c0_i32_0 : i32, i32, i32
  }
}

module attributes {stable_mosaic.version = 11 : i64} {
  func.func @_conv3x3_kernel(%arg0: i32, %arg1: memref<2x18x64xbf16, #tpu.memory_space<vmem>>, %arg2: memref<3x64x128xbf16, #tpu.memory_space<vmem>>, %arg3: memref<1x128xf32, #tpu.memory_space<vmem>>, %arg4: memref<2x18x128xbf16, #tpu.memory_space<vmem>>) attributes {dimension_semantics = [#tpu.dimension_semantics<parallel>], iteration_bounds = array<i64: 1>, scalar_prefetch = 0 : i64, scratch_operands = 0 : i64, tpu.core_type = #tpu.core_type<tc>, window_params = [{transform_indices = @transform_0, window_bounds = array<i64: 2, 18, 64>}, {pipeline_mode = #tpu.pipeline_mode<synchronous>, transform_indices = @transform_1, window_bounds = array<i64: 3, 64, 128>}, {pipeline_mode = #tpu.pipeline_mode<synchronous>, transform_indices = @transform_2, window_bounds = array<i64: 1, 128>}, {transform_indices = @transform_3, window_bounds = array<i64: 2, 18, 128>}]} {
    %cst = arith.constant 0.000000e+00 : f32
    %0 = vector.broadcast %cst : f32 to vector<32x128xf32>
    %c0 = arith.constant 0 : index
    %c0_0 = arith.constant 0 : index
    %c0_1 = arith.constant 0 : index
    %1 = vector.load %arg1[%c0, %c0_0, %c0_1] : memref<2x18x64xbf16, #tpu.memory_space<vmem>>, vector<2x16x64xbf16>
    %2 = vector.shape_cast %1 : vector<2x16x64xbf16> to vector<32x64xbf16>
    %c0_2 = arith.constant 0 : index
    %c0_3 = arith.constant 0 : index
    %c0_4 = arith.constant 0 : index
    %3 = vector.load %arg2[%c0_2, %c0_3, %c0_4] : memref<3x64x128xbf16, #tpu.memory_space<vmem>>, vector<1x64x128xbf16>
    %4 = vector.shape_cast %3 : vector<1x64x128xbf16> to vector<64x128xbf16>
    %cst_5 = arith.constant dense<0.000000e+00> : vector<32x128xf32>
    %5 = tpu.matmul %2, %4, %cst_5 {dimension_numbers = #tpu.dot_dimension_numbers<[1], [0], [0], [1], [0, 0, 1, 1], [], []>} : vector<32x64xbf16>, vector<64x128xbf16>, vector<32x128xf32> -> vector<32x128xf32>
    %6 = arith.addf %0, %5 : vector<32x128xf32>
    %c0_6 = arith.constant 0 : index
    %c1 = arith.constant 1 : index
    %c0_7 = arith.constant 0 : index
    %7 = vector.load %arg1[%c0_6, %c1, %c0_7] : memref<2x18x64xbf16, #tpu.memory_space<vmem>>, vector<2x16x64xbf16>
    %8 = vector.shape_cast %7 : vector<2x16x64xbf16> to vector<32x64xbf16>
    %c1_8 = arith.constant 1 : index
    %c0_9 = arith.constant 0 : index
    %c0_10 = arith.constant 0 : index
    %9 = vector.load %arg2[%c1_8, %c0_9, %c0_10] : memref<3x64x128xbf16, #tpu.memory_space<vmem>>, vector<1x64x128xbf16>
    %10 = vector.shape_cast %9 : vector<1x64x128xbf16> to vector<64x128xbf16>
    %cst_11 = arith.constant dense<0.000000e+00> : vector<32x128xf32>
    %11 = tpu.matmul %8, %10, %cst_11 {dimension_numbers = #tpu.dot_dimension_numbers<[1], [0], [0], [1], [0, 0, 1, 1], [], []>} : vector<32x64xbf16>, vector<64x128xbf16>, vector<32x128xf32> -> vector<32x128xf32>
    %12 = arith.addf %6, %11 : vector<32x128xf32>
    %c0_12 = arith.constant 0 : index
    %c2 = arith.constant 2 : index
    %c0_13 = arith.constant 0 : index
    %13 = vector.load %arg1[%c0_12, %c2, %c0_13] : memref<2x18x64xbf16, #tpu.memory_space<vmem>>, vector<2x16x64xbf16>
    %14 = vector.shape_cast %13 : vector<2x16x64xbf16> to vector<32x64xbf16>
    %c2_14 = arith.constant 2 : index
    %c0_15 = arith.constant 0 : index
    %c0_16 = arith.constant 0 : index
    %15 = vector.load %arg2[%c2_14, %c0_15, %c0_16] : memref<3x64x128xbf16, #tpu.memory_space<vmem>>, vector<1x64x128xbf16>
    %16 = vector.shape_cast %15 : vector<1x64x128xbf16> to vector<64x128xbf16>
    %cst_17 = arith.constant dense<0.000000e+00> : vector<32x128xf32>
    %17 = tpu.matmul %14, %16, %cst_17 {dimension_numbers = #tpu.dot_dimension_numbers<[1], [0], [0], [1], [0, 0, 1, 1], [], []>} : vector<32x64xbf16>, vector<64x128xbf16>, vector<32x128xf32> -> vector<32x128xf32>
    %18 = arith.addf %12, %17 : vector<32x128xf32>
    %c0_18 = arith.constant 0 : index
    %c0_19 = arith.constant 0 : index
    %19 = vector.load %arg3[%c0_18, %c0_19] : memref<1x128xf32, #tpu.memory_space<vmem>>, vector<1x128xf32>
    %20 = vector.broadcast %19 : vector<1x128xf32> to vector<32x128xf32>
    %21 = arith.addf %18, %20 : vector<32x128xf32>
    %22 = vector.shape_cast %21 : vector<32x128xf32> to vector<2x16x128xf32>
    %23 = arith.truncf %22 : vector<2x16x128xf32> to vector<2x16x128xbf16>
    %cst_20 = arith.constant 0.000000e+00 : bf16
    %24 = vector.broadcast %cst_20 : bf16 to vector<2x18x128xbf16>
    %c0_21 = arith.constant 0 : index
    %c0_22 = arith.constant 0 : index
    %c0_23 = arith.constant 0 : index
    %25 = vector.load %arg4[%c0_21, %c0_22, %c0_23] : memref<2x18x128xbf16, #tpu.memory_space<vmem>>, vector<2x18x128xbf16>
    tpu.vector_store %arg4[%c0_21, %c0_22, %c0_23], %24 {strides = array<i32>} : memref<2x18x128xbf16, #tpu.memory_space<vmem>>, vector<2x18x128xbf16>,
    %c0_24 = arith.constant 0 : index
    %c1_25 = arith.constant 1 : index
    %c0_26 = arith.constant 0 : index
    %26 = vector.load %arg4[%c0_24, %c1_25, %c0_26] : memref<2x18x128xbf16, #tpu.memory_space<vmem>>, vector<2x16x128xbf16>
    tpu.vector_store %arg4[%c0_24, %c1_25, %c0_26], %23 {strides = array<i32>} : memref<2x18x128xbf16, #tpu.memory_space<vmem>>, vector<2x16x128xbf16>,
    return
  }
  func.func @transform_0(%arg0: i32) -> (i32, i32, i32) {
    %c0_i32 = arith.constant 0 : i32
    %c0_i32_0 = arith.constant 0 : i32
    %c0_i32_1 = arith.constant 0 : i32
    return %arg0, %c0_i32, %c0_i32_0 : i32, i32, i32
  }
  func.func @transform_1(%arg0: i32) -> (i32, i32, i32) {
    %c0_i32 = arith.constant 0 : i32
    %c0_i32_0 = arith.constant 0 : i32
    %c0_i32_1 = arith.constant 0 : i32
    %c0_i32_2 = arith.constant 0 : i32
    return %c0_i32, %c0_i32_0, %c0_i32_1 : i32, i32, i32
  }
  func.func @transform_2(%arg0: i32) -> (i32, i32) {
    %c0_i32 = arith.constant 0 : i32
    %c0_i32_0 = arith.constant 0 : i32
    %c0_i32_1 = arith.constant 0 : i32
    return %c0_i32, %c0_i32_0 : i32, i32
  }
  func.func @transform_3(%arg0: i32) -> (i32, i32, i32) {
    %c0_i32 = arith.constant 0 : i32
    %c0_i32_0 = arith.constant 0 : i32
    %c0_i32_1 = arith.constant 0 : i32
    return %arg0, %c0_i32, %c0_i32_0 : i32, i32, i32
  }
}

module attributes {stable_mosaic.version = 11 : i64} {
  func.func @_bilstm_fc_kernel(%arg0: memref<32x128xbf16, #tpu.memory_space<vmem>>, %arg1: memref<128x256xbf16, #tpu.memory_space<vmem>>, %arg2: memref<1x256xf32, #tpu.memory_space<vmem>>, %arg3: memref<64x256xf32, #tpu.memory_space<vmem>>, %arg4: memref<64x2xf32, #tpu.memory_space<vmem>>, %arg5: memref<1x2xf32, #tpu.memory_space<vmem>>, %arg6: memref<2x2xf32, #tpu.memory_space<vmem>>, %arg7: memref<32x256xf32, #tpu.memory_space<vmem>>) attributes {dimension_semantics = [], scalar_prefetch = 0 : i64, scratch_operands = 1 : i64, tpu.core_type = #tpu.core_type<tc>} {
    %c0 = arith.constant 0 : index
    %c0_0 = arith.constant 0 : index
    %0 = vector.load %arg0[%c0, %c0_0] : memref<32x128xbf16, #tpu.memory_space<vmem>>, vector<32x128xbf16>
    %c0_1 = arith.constant 0 : index
    %c0_2 = arith.constant 0 : index
    %1 = vector.load %arg1[%c0_1, %c0_2] : memref<128x256xbf16, #tpu.memory_space<vmem>>, vector<128x256xbf16>
    %cst = arith.constant dense<0.000000e+00> : vector<32x256xf32>
    %2 = tpu.matmul %0, %1, %cst {dimension_numbers = #tpu.dot_dimension_numbers<[1], [0], [0], [1], [0, 0, 1, 1], [], []>} : vector<32x128xbf16>, vector<128x256xbf16>, vector<32x256xf32> -> vector<32x256xf32>
    %c0_3 = arith.constant 0 : index
    %c0_4 = arith.constant 0 : index
    %3 = vector.load %arg2[%c0_3, %c0_4] : memref<1x256xf32, #tpu.memory_space<vmem>>, vector<1x256xf32>
    %4 = vector.broadcast %3 : vector<1x256xf32> to vector<32x256xf32>
    %5 = arith.addf %2, %4 : vector<32x256xf32>
    %c0_5 = arith.constant 0 : index
    %c0_6 = arith.constant 0 : index
    %6 = vector.load %arg7[%c0_5, %c0_6] : memref<32x256xf32, #tpu.memory_space<vmem>>, vector<32x256xf32>
    tpu.vector_store %arg7[%c0_5, %c0_6], %5 {strides = array<i32>} : memref<32x256xf32, #tpu.memory_space<vmem>>, vector<32x256xf32>,
    %7 = tpu.iota {dimensions = array<i32: 1>} : vector<2x256xi32>
    %c64_i32 = arith.constant 64 : i32
    %c0_i32 = arith.constant 0 : i32
    %8 = arith.cmpi eq, %c64_i32, %c0_i32 : i32
    %c1_i32 = arith.constant 1 : i32
    %9 = arith.select %8, %c1_i32, %c64_i32 : i32
    %10 = vector.broadcast %9 : i32 to vector<2x256xi32>
    %11 = arith.remsi %7, %10 : vector<2x256xi32>
    %c0_i32_7 = arith.constant 0 : i32
    %12 = vector.broadcast %c0_i32_7 : i32 to vector<2x256xi32>
    %13 = arith.cmpi ne, %11, %12 : vector<2x256xi32>
    %c0_i32_8 = arith.constant 0 : i32
    %14 = vector.broadcast %c0_i32_8 : i32 to vector<2x256xi32>
    %15 = arith.cmpi slt, %11, %14 : vector<2x256xi32>
    %c0_i32_9 = arith.constant 0 : i32
    %16 = arith.cmpi slt, %9, %c0_i32_9 : i32
    %17 = vector.broadcast %16 : i1 to vector<2x256xi1>
    %18 = vector.broadcast %17 : vector<2x256xi1> to vector<2x256xi1>
    %19 = arith.xori %15, %18 : vector<2x256xi1>
    %20 = arith.andi %19, %13 : vector<2x256xi1>
    %21 = vector.broadcast %9 : i32 to vector<2x256xi32>
    %22 = arith.addi %11, %21 : vector<2x256xi32>
    %23 = arith.select %20, %22, %11 : vector<2x256xi1>, vector<2x256xi32>
    %c32_i32 = arith.constant 32 : i32
    %24 = vector.broadcast %c32_i32 : i32 to vector<2x256xi32>
    %25 = arith.cmpi slt, %23, %24 : vector<2x256xi32>
    %c0_10 = arith.constant 0 : index
    %c0_11 = arith.constant 0 : index
    %26 = vector.load %arg7[%c0_10, %c0_11] : memref<32x256xf32, #tpu.memory_space<vmem>>, vector<2x256xf32>
    %c30 = arith.constant 30 : index
    %c0_12 = arith.constant 0 : index
    %27 = vector.load %arg7[%c30, %c0_12] : memref<32x256xf32, #tpu.memory_space<vmem>>, vector<2x256xf32>
    %28 = arith.select %25, %26, %27 : vector<2x256xi1>, vector<2x256xf32>
    %29 = vector.extract_strided_slice %28 {offsets = [0, 0], sizes = [2, 64], strides = [1, 1]} : vector<2x256xf32> to vector<2x64xf32>
    %cst_13 = arith.constant 0.000000e+00 : f32
    %30 = vector.broadcast %cst_13 : f32 to vector<2x64xf32>
    %31 = arith.subf %30, %29 : vector<2x64xf32>
    %32 = math.exp %31 : vector<2x64xf32>
    %cst_14 = arith.constant 1.000000e+00 : f32
    %33 = vector.broadcast %cst_14 : f32 to vector<2x64xf32>
    %34 = arith.addf %33, %32 : vector<2x64xf32>
    %cst_15 = arith.constant 1.000000e+00 : f32
    %35 = vector.broadcast %cst_15 : f32 to vector<2x64xf32>
    %36 = arith.divf %35, %34 : vector<2x64xf32>
    %37 = vector.extract_strided_slice %28 {offsets = [0, 128], sizes = [2, 64], strides = [1, 1]} : vector<2x256xf32> to vector<2x64xf32>
    %38 = math.tanh %37 : vector<2x64xf32>
    %39 = vector.extract_strided_slice %28 {offsets = [0, 192], sizes = [2, 64], strides = [1, 1]} : vector<2x256xf32> to vector<2x64xf32>
    %cst_16 = arith.constant 0.000000e+00 : f32
    %40 = vector.broadcast %cst_16 : f32 to vector<2x64xf32>
    %41 = arith.subf %40, %39 : vector<2x64xf32>
    %42 = math.exp %41 : vector<2x64xf32>
    %cst_17 = arith.constant 1.000000e+00 : f32
    %43 = vector.broadcast %cst_17 : f32 to vector<2x64xf32>
    %44 = arith.addf %43, %42 : vector<2x64xf32>
    %cst_18 = arith.constant 1.000000e+00 : f32
    %45 = vector.broadcast %cst_18 : f32 to vector<2x64xf32>
    %46 = arith.divf %45, %44 : vector<2x64xf32>
    %47 = arith.mulf %36, %38 : vector<2x64xf32>
    %48 = math.tanh %47 : vector<2x64xf32>
    %49 = arith.mulf %46, %48 : vector<2x64xf32>
    %50 = vector.extract_strided_slice %49 {offsets = [0, 32], sizes = [2, 32], strides = [1, 1]} : vector<2x64xf32> to vector<2x32xf32>
    %c1_i32_19 = arith.constant 1 : i32
    %c0_20 = arith.constant 0 : index
    %c0_21 = arith.constant 0 : index
    %51 = vector.load %arg3[%c0_20, %c0_21] : memref<64x256xf32, #tpu.memory_space<vmem>>, vector<64x256xf32>
    %cst_22 = arith.constant dense<0.000000e+00> : vector<2x256xf32>
    %52 = tpu.matmul %49, %51, %cst_22 {dimension_numbers = #tpu.dot_dimension_numbers<[1], [0], [0], [1], [0, 0, 1, 1], [], []>} : vector<2x64xf32>, vector<64x256xf32>, vector<2x256xf32> -> vector<2x256xf32>
    %c2_i32 = arith.constant 2 : i32
    %53 = arith.muli %c1_i32_19, %c2_i32 : i32
    %54 = arith.index_cast %53 : i32 to index
    %c0_23 = arith.constant 0 : index
    %55 = vector.load %arg7[%54, %c0_23] : memref<32x256xf32, #tpu.memory_space<vmem>>, vector<2x256xf32>
    %c15_i32 = arith.constant 15 : i32
    %56 = arith.subi %c15_i32, %c1_i32_19 : i32
    %c2_i32_24 = arith.constant 2 : i32
    %57 = arith.muli %56, %c2_i32_24 : i32
    %58 = arith.index_cast %57 : i32 to index
    %c0_25 = arith.constant 0 : index
    %59 = vector.load %arg7[%58, %c0_25] : memref<32x256xf32, #tpu.memory_space<vmem>>, vector<2x256xf32>
    %60 = arith.select %25, %55, %59 : vector<2x256xi1>, vector<2x256xf32>
    %61 = arith.addf %60, %52 : vector<2x256xf32>
    %62 = vector.extract_strided_slice %61 {offsets = [0, 0], sizes = [2, 64], strides = [1, 1]} : vector<2x256xf32> to vector<2x64xf32>
    %cst_26 = arith.constant 0.000000e+00 : f32
    %63 = vector.broadcast %cst_26 : f32 to vector<2x64xf32>
    %64 = arith.subf %63, %62 : vector<2x64xf32>
    %65 = math.exp %64 : vector<2x64xf32>
    %cst_27 = arith.constant 1.000000e+00 : f32
    %66 = vector.broadcast %cst_27 : f32 to vector<2x64xf32>
    %67 = arith.addf %66, %65 : vector<2x64xf32>
    %cst_28 = arith.constant 1.000000e+00 : f32
    %68 = vector.broadcast %cst_28 : f32 to vector<2x64xf32>
    %69 = arith.divf %68, %67 : vector<2x64xf32>
    %70 = vector.extract_strided_slice %61 {offsets = [0, 64], sizes = [2, 64], strides = [1, 1]} : vector<2x256xf32> to vector<2x64xf32>
    %cst_29 = arith.constant 0.000000e+00 : f32
    %71 = vector.broadcast %cst_29 : f32 to vector<2x64xf32>
    %72 = arith.subf %71, %70 : vector<2x64xf32>
    %73 = math.exp %72 : vector<2x64xf32>
    %cst_30 = arith.constant 1.000000e+00 : f32
    %74 = vector.broadcast %cst_30 : f32 to vector<2x64xf32>
    %75 = arith.addf %74, %73 : vector<2x64xf32>
    %cst_31 = arith.constant 1.000000e+00 : f32
    %76 = vector.broadcast %cst_31 : f32 to vector<2x64xf32>
    %77 = arith.divf %76, %75 : vector<2x64xf32>
    %78 = vector.extract_strided_slice %61 {offsets = [0, 128], sizes = [2, 64], strides = [1, 1]} : vector<2x256xf32> to vector<2x64xf32>
    %79 = math.tanh %78 : vector<2x64xf32>
    %80 = vector.extract_strided_slice %61 {offsets = [0, 192], sizes = [2, 64], strides = [1, 1]} : vector<2x256xf32> to vector<2x64xf32>
    %cst_32 = arith.constant 0.000000e+00 : f32
    %81 = vector.broadcast %cst_32 : f32 to vector<2x64xf32>
    %82 = arith.subf %81, %80 : vector<2x64xf32>
    %83 = math.exp %82 : vector<2x64xf32>
    %cst_33 = arith.constant 1.000000e+00 : f32
    %84 = vector.broadcast %cst_33 : f32 to vector<2x64xf32>
    %85 = arith.addf %84, %83 : vector<2x64xf32>
    %cst_34 = arith.constant 1.000000e+00 : f32
    %86 = vector.broadcast %cst_34 : f32 to vector<2x64xf32>
    %87 = arith.divf %86, %85 : vector<2x64xf32>
    %88 = arith.mulf %77, %47 : vector<2x64xf32>
    %89 = arith.mulf %69, %79 : vector<2x64xf32>
    %90 = arith.addf %88, %89 : vector<2x64xf32>
    %91 = math.tanh %90 : vector<2x64xf32>
    %92 = arith.mulf %87, %91 : vector<2x64xf32>
    %c2_i32_35 = arith.constant 2 : i32
    %c0_36 = arith.constant 0 : index
    %c0_37 = arith.constant 0 : index
    %93 = vector.load %arg3[%c0_36, %c0_37] : memref<64x256xf32, #tpu.memory_space<vmem>>, vector<64x256xf32>
    %cst_38 = arith.constant dense<0.000000e+00> : vector<2x256xf32>
    %94 = tpu.matmul %92, %93, %cst_38 {dimension_numbers = #tpu.dot_dimension_numbers<[1], [0], [0], [1], [0, 0, 1, 1], [], []>} : vector<2x64xf32>, vector<64x256xf32>, vector<2x256xf32> -> vector<2x256xf32>
    %c2_i32_39 = arith.constant 2 : i32
    %95 = arith.muli %c2_i32_35, %c2_i32_39 : i32
    %96 = arith.index_cast %95 : i32 to index
    %c0_40 = arith.constant 0 : index
    %97 = vector.load %arg7[%96, %c0_40] : memref<32x256xf32, #tpu.memory_space<vmem>>, vector<2x256xf32>
    %c15_i32_41 = arith.constant 15 : i32
    %98 = arith.subi %c15_i32_41, %c2_i32_35 : i32
    %c2_i32_42 = arith.constant 2 : i32
    %99 = arith.muli %98, %c2_i32_42 : i32
    %100 = arith.index_cast %99 : i32 to index
    %c0_43 = arith.constant 0 : index
    %101 = vector.load %arg7[%100, %c0_43] : memref<32x256xf32, #tpu.memory_space<vmem>>, vector<2x256xf32>
    %102 = arith.select %25, %97, %101 : vector<2x256xi1>, vector<2x256xf32>
    %103 = arith.addf %102, %94 : vector<2x256xf32>
    %104 = vector.extract_strided_slice %103 {offsets = [0, 0], sizes = [2, 64], strides = [1, 1]} : vector<2x256xf32> to vector<2x64xf32>
    %cst_44 = arith.constant 0.000000e+00 : f32
    %105 = vector.broadcast %cst_44 : f32 to vector<2x64xf32>
    %106 = arith.subf %105, %104 : vector<2x64xf32>
    %107 = math.exp %106 : vector<2x64xf32>
    %cst_45 = arith.constant 1.000000e+00 : f32
    %108 = vector.broadcast %cst_45 : f32 to vector<2x64xf32>
    %109 = arith.addf %108, %107 : vector<2x64xf32>
    %cst_46 = arith.constant 1.000000e+00 : f32
    %110 = vector.broadcast %cst_46 : f32 to vector<2x64xf32>
    %111 = arith.divf %110, %109 : vector<2x64xf32>
    %112 = vector.extract_strided_slice %103 {offsets = [0, 64], sizes = [2, 64], strides = [1, 1]} : vector<2x256xf32> to vector<2x64xf32>
    %cst_47 = arith.constant 0.000000e+00 : f32
    %113 = vector.broadcast %cst_47 : f32 to vector<2x64xf32>
    %114 = arith.subf %113, %112 : vector<2x64xf32>
    %115 = math.exp %114 : vector<2x64xf32>
    %cst_48 = arith.constant 1.000000e+00 : f32
    %116 = vector.broadcast %cst_48 : f32 to vector<2x64xf32>
    %117 = arith.addf %116, %115 : vector<2x64xf32>
    %cst_49 = arith.constant 1.000000e+00 : f32
    %118 = vector.broadcast %cst_49 : f32 to vector<2x64xf32>
    %119 = arith.divf %118, %117 : vector<2x64xf32>
    %120 = vector.extract_strided_slice %103 {offsets = [0, 128], sizes = [2, 64], strides = [1, 1]} : vector<2x256xf32> to vector<2x64xf32>
    %121 = math.tanh %120 : vector<2x64xf32>
    %122 = vector.extract_strided_slice %103 {offsets = [0, 192], sizes = [2, 64], strides = [1, 1]} : vector<2x256xf32> to vector<2x64xf32>
    %cst_50 = arith.constant 0.000000e+00 : f32
    %123 = vector.broadcast %cst_50 : f32 to vector<2x64xf32>
    %124 = arith.subf %123, %122 : vector<2x64xf32>
    %125 = math.exp %124 : vector<2x64xf32>
    %cst_51 = arith.constant 1.000000e+00 : f32
    %126 = vector.broadcast %cst_51 : f32 to vector<2x64xf32>
    %127 = arith.addf %126, %125 : vector<2x64xf32>
    %cst_52 = arith.constant 1.000000e+00 : f32
    %128 = vector.broadcast %cst_52 : f32 to vector<2x64xf32>
    %129 = arith.divf %128, %127 : vector<2x64xf32>
    %130 = arith.mulf %119, %90 : vector<2x64xf32>
    %131 = arith.mulf %111, %121 : vector<2x64xf32>
    %132 = arith.addf %130, %131 : vector<2x64xf32>
    %133 = math.tanh %132 : vector<2x64xf32>
    %134 = arith.mulf %129, %133 : vector<2x64xf32>
    %c3_i32 = arith.constant 3 : i32
    %c0_53 = arith.constant 0 : index
    %c0_54 = arith.constant 0 : index
    %135 = vector.load %arg3[%c0_53, %c0_54] : memref<64x256xf32, #tpu.memory_space<vmem>>, vector<64x256xf32>
    %cst_55 = arith.constant dense<0.000000e+00> : vector<2x256xf32>
    %136 = tpu.matmul %134, %135, %cst_55 {dimension_numbers = #tpu.dot_dimension_numbers<[1], [0], [0], [1], [0, 0, 1, 1], [], []>} : vector<2x64xf32>, vector<64x256xf32>, vector<2x256xf32> -> vector<2x256xf32>
    %c2_i32_56 = arith.constant 2 : i32
    %137 = arith.muli %c3_i32, %c2_i32_56 : i32
    %138 = arith.index_cast %137 : i32 to index
    %c0_57 = arith.constant 0 : index
    %139 = vector.load %arg7[%138, %c0_57] : memref<32x256xf32, #tpu.memory_space<vmem>>, vector<2x256xf32>
    %c15_i32_58 = arith.constant 15 : i32
    %140 = arith.subi %c15_i32_58, %c3_i32 : i32
    %c2_i32_59 = arith.constant 2 : i32
    %141 = arith.muli %140, %c2_i32_59 : i32
    %142 = arith.index_cast %141 : i32 to index
    %c0_60 = arith.constant 0 : index
    %143 = vector.load %arg7[%142, %c0_60] : memref<32x256xf32, #tpu.memory_space<vmem>>, vector<2x256xf32>
    %144 = arith.select %25, %139, %143 : vector<2x256xi1>, vector<2x256xf32>
    %145 = arith.addf %144, %136 : vector<2x256xf32>
    %146 = vector.extract_strided_slice %145 {offsets = [0, 0], sizes = [2, 64], strides = [1, 1]} : vector<2x256xf32> to vector<2x64xf32>
    %cst_61 = arith.constant 0.000000e+00 : f32
    %147 = vector.broadcast %cst_61 : f32 to vector<2x64xf32>
    %148 = arith.subf %147, %146 : vector<2x64xf32>
    %149 = math.exp %148 : vector<2x64xf32>
    %cst_62 = arith.constant 1.000000e+00 : f32
    %150 = vector.broadcast %cst_62 : f32 to vector<2x64xf32>
    %151 = arith.addf %150, %149 : vector<2x64xf32>
    %cst_63 = arith.constant 1.000000e+00 : f32
    %152 = vector.broadcast %cst_63 : f32 to vector<2x64xf32>
    %153 = arith.divf %152, %151 : vector<2x64xf32>
    %154 = vector.extract_strided_slice %145 {offsets = [0, 64], sizes = [2, 64], strides = [1, 1]} : vector<2x256xf32> to vector<2x64xf32>
    %cst_64 = arith.constant 0.000000e+00 : f32
    %155 = vector.broadcast %cst_64 : f32 to vector<2x64xf32>
    %156 = arith.subf %155, %154 : vector<2x64xf32>
    %157 = math.exp %156 : vector<2x64xf32>
    %cst_65 = arith.constant 1.000000e+00 : f32
    %158 = vector.broadcast %cst_65 : f32 to vector<2x64xf32>
    %159 = arith.addf %158, %157 : vector<2x64xf32>
    %cst_66 = arith.constant 1.000000e+00 : f32
    %160 = vector.broadcast %cst_66 : f32 to vector<2x64xf32>
    %161 = arith.divf %160, %159 : vector<2x64xf32>
    %162 = vector.extract_strided_slice %145 {offsets = [0, 128], sizes = [2, 64], strides = [1, 1]} : vector<2x256xf32> to vector<2x64xf32>
    %163 = math.tanh %162 : vector<2x64xf32>
    %164 = vector.extract_strided_slice %145 {offsets = [0, 192], sizes = [2, 64], strides = [1, 1]} : vector<2x256xf32> to vector<2x64xf32>
    %cst_67 = arith.constant 0.000000e+00 : f32
    %165 = vector.broadcast %cst_67 : f32 to vector<2x64xf32>
    %166 = arith.subf %165, %164 : vector<2x64xf32>
    %167 = math.exp %166 : vector<2x64xf32>
    %cst_68 = arith.constant 1.000000e+00 : f32
    %168 = vector.broadcast %cst_68 : f32 to vector<2x64xf32>
    %169 = arith.addf %168, %167 : vector<2x64xf32>
    %cst_69 = arith.constant 1.000000e+00 : f32
    %170 = vector.broadcast %cst_69 : f32 to vector<2x64xf32>
    %171 = arith.divf %170, %169 : vector<2x64xf32>
    %172 = arith.mulf %161, %132 : vector<2x64xf32>
    %173 = arith.mulf %153, %163 : vector<2x64xf32>
    %174 = arith.addf %172, %173 : vector<2x64xf32>
    %175 = math.tanh %174 : vector<2x64xf32>
    %176 = arith.mulf %171, %175 : vector<2x64xf32>
    %c4_i32 = arith.constant 4 : i32
    %c0_70 = arith.constant 0 : index
    %c0_71 = arith.constant 0 : index
    %177 = vector.load %arg3[%c0_70, %c0_71] : memref<64x256xf32, #tpu.memory_space<vmem>>, vector<64x256xf32>
    %cst_72 = arith.constant dense<0.000000e+00> : vector<2x256xf32>
    %178 = tpu.matmul %176, %177, %cst_72 {dimension_numbers = #tpu.dot_dimension_numbers<[1], [0], [0], [1], [0, 0, 1, 1], [], []>} : vector<2x64xf32>, vector<64x256xf32>, vector<2x256xf32> -> vector<2x256xf32>
    %c2_i32_73 = arith.constant 2 : i32
    %179 = arith.muli %c4_i32, %c2_i32_73 : i32
    %180 = arith.index_cast %179 : i32 to index
    %c0_74 = arith.constant 0 : index
    %181 = vector.load %arg7[%180, %c0_74] : memref<32x256xf32, #tpu.memory_space<vmem>>, vector<2x256xf32>
    %c15_i32_75 = arith.constant 15 : i32
    %182 = arith.subi %c15_i32_75, %c4_i32 : i32
    %c2_i32_76 = arith.constant 2 : i32
    %183 = arith.muli %182, %c2_i32_76 : i32
    %184 = arith.index_cast %183 : i32 to index
    %c0_77 = arith.constant 0 : index
    %185 = vector.load %arg7[%184, %c0_77] : memref<32x256xf32, #tpu.memory_space<vmem>>, vector<2x256xf32>
    %186 = arith.select %25, %181, %185 : vector<2x256xi1>, vector<2x256xf32>
    %187 = arith.addf %186, %178 : vector<2x256xf32>
    %188 = vector.extract_strided_slice %187 {offsets = [0, 0], sizes = [2, 64], strides = [1, 1]} : vector<2x256xf32> to vector<2x64xf32>
    %cst_78 = arith.constant 0.000000e+00 : f32
    %189 = vector.broadcast %cst_78 : f32 to vector<2x64xf32>
    %190 = arith.subf %189, %188 : vector<2x64xf32>
    %191 = math.exp %190 : vector<2x64xf32>
    %cst_79 = arith.constant 1.000000e+00 : f32
    %192 = vector.broadcast %cst_79 : f32 to vector<2x64xf32>
    %193 = arith.addf %192, %191 : vector<2x64xf32>
    %cst_80 = arith.constant 1.000000e+00 : f32
    %194 = vector.broadcast %cst_80 : f32 to vector<2x64xf32>
    %195 = arith.divf %194, %193 : vector<2x64xf32>
    %196 = vector.extract_strided_slice %187 {offsets = [0, 64], sizes = [2, 64], strides = [1, 1]} : vector<2x256xf32> to vector<2x64xf32>
    %cst_81 = arith.constant 0.000000e+00 : f32
    %197 = vector.broadcast %cst_81 : f32 to vector<2x64xf32>
    %198 = arith.subf %197, %196 : vector<2x64xf32>
    %199 = math.exp %198 : vector<2x64xf32>
    %cst_82 = arith.constant 1.000000e+00 : f32
    %200 = vector.broadcast %cst_82 : f32 to vector<2x64xf32>
    %201 = arith.addf %200, %199 : vector<2x64xf32>
    %cst_83 = arith.constant 1.000000e+00 : f32
    %202 = vector.broadcast %cst_83 : f32 to vector<2x64xf32>
    %203 = arith.divf %202, %201 : vector<2x64xf32>
    %204 = vector.extract_strided_slice %187 {offsets = [0, 128], sizes = [2, 64], strides = [1, 1]} : vector<2x256xf32> to vector<2x64xf32>
    %205 = math.tanh %204 : vector<2x64xf32>
    %206 = vector.extract_strided_slice %187 {offsets = [0, 192], sizes = [2, 64], strides = [1, 1]} : vector<2x256xf32> to vector<2x64xf32>
    %cst_84 = arith.constant 0.000000e+00 : f32
    %207 = vector.broadcast %cst_84 : f32 to vector<2x64xf32>
    %208 = arith.subf %207, %206 : vector<2x64xf32>
    %209 = math.exp %208 : vector<2x64xf32>
    %cst_85 = arith.constant 1.000000e+00 : f32
    %210 = vector.broadcast %cst_85 : f32 to vector<2x64xf32>
    %211 = arith.addf %210, %209 : vector<2x64xf32>
    %cst_86 = arith.constant 1.000000e+00 : f32
    %212 = vector.broadcast %cst_86 : f32 to vector<2x64xf32>
    %213 = arith.divf %212, %211 : vector<2x64xf32>
    %214 = arith.mulf %203, %174 : vector<2x64xf32>
    %215 = arith.mulf %195, %205 : vector<2x64xf32>
    %216 = arith.addf %214, %215 : vector<2x64xf32>
    %217 = math.tanh %216 : vector<2x64xf32>
    %218 = arith.mulf %213, %217 : vector<2x64xf32>
    %c5_i32 = arith.constant 5 : i32
    %c0_87 = arith.constant 0 : index
    %c0_88 = arith.constant 0 : index
    %219 = vector.load %arg3[%c0_87, %c0_88] : memref<64x256xf32, #tpu.memory_space<vmem>>, vector<64x256xf32>
    %cst_89 = arith.constant dense<0.000000e+00> : vector<2x256xf32>
    %220 = tpu.matmul %218, %219, %cst_89 {dimension_numbers = #tpu.dot_dimension_numbers<[1], [0], [0], [1], [0, 0, 1, 1], [], []>} : vector<2x64xf32>, vector<64x256xf32>, vector<2x256xf32> -> vector<2x256xf32>
    %c2_i32_90 = arith.constant 2 : i32
    %221 = arith.muli %c5_i32, %c2_i32_90 : i32
    %222 = arith.index_cast %221 : i32 to index
    %c0_91 = arith.constant 0 : index
    %223 = vector.load %arg7[%222, %c0_91] : memref<32x256xf32, #tpu.memory_space<vmem>>, vector<2x256xf32>
    %c15_i32_92 = arith.constant 15 : i32
    %224 = arith.subi %c15_i32_92, %c5_i32 : i32
    %c2_i32_93 = arith.constant 2 : i32
    %225 = arith.muli %224, %c2_i32_93 : i32
    %226 = arith.index_cast %225 : i32 to index
    %c0_94 = arith.constant 0 : index
    %227 = vector.load %arg7[%226, %c0_94] : memref<32x256xf32, #tpu.memory_space<vmem>>, vector<2x256xf32>
    %228 = arith.select %25, %223, %227 : vector<2x256xi1>, vector<2x256xf32>
    %229 = arith.addf %228, %220 : vector<2x256xf32>
    %230 = vector.extract_strided_slice %229 {offsets = [0, 0], sizes = [2, 64], strides = [1, 1]} : vector<2x256xf32> to vector<2x64xf32>
    %cst_95 = arith.constant 0.000000e+00 : f32
    %231 = vector.broadcast %cst_95 : f32 to vector<2x64xf32>
    %232 = arith.subf %231, %230 : vector<2x64xf32>
    %233 = math.exp %232 : vector<2x64xf32>
    %cst_96 = arith.constant 1.000000e+00 : f32
    %234 = vector.broadcast %cst_96 : f32 to vector<2x64xf32>
    %235 = arith.addf %234, %233 : vector<2x64xf32>
    %cst_97 = arith.constant 1.000000e+00 : f32
    %236 = vector.broadcast %cst_97 : f32 to vector<2x64xf32>
    %237 = arith.divf %236, %235 : vector<2x64xf32>
    %238 = vector.extract_strided_slice %229 {offsets = [0, 64], sizes = [2, 64], strides = [1, 1]} : vector<2x256xf32> to vector<2x64xf32>
    %cst_98 = arith.constant 0.000000e+00 : f32
    %239 = vector.broadcast %cst_98 : f32 to vector<2x64xf32>
    %240 = arith.subf %239, %238 : vector<2x64xf32>
    %241 = math.exp %240 : vector<2x64xf32>
    %cst_99 = arith.constant 1.000000e+00 : f32
    %242 = vector.broadcast %cst_99 : f32 to vector<2x64xf32>
    %243 = arith.addf %242, %241 : vector<2x64xf32>
    %cst_100 = arith.constant 1.000000e+00 : f32
    %244 = vector.broadcast %cst_100 : f32 to vector<2x64xf32>
    %245 = arith.divf %244, %243 : vector<2x64xf32>
    %246 = vector.extract_strided_slice %229 {offsets = [0, 128], sizes = [2, 64], strides = [1, 1]} : vector<2x256xf32> to vector<2x64xf32>
    %247 = math.tanh %246 : vector<2x64xf32>
    %248 = vector.extract_strided_slice %229 {offsets = [0, 192], sizes = [2, 64], strides = [1, 1]} : vector<2x256xf32> to vector<2x64xf32>
    %cst_101 = arith.constant 0.000000e+00 : f32
    %249 = vector.broadcast %cst_101 : f32 to vector<2x64xf32>
    %250 = arith.subf %249, %248 : vector<2x64xf32>
    %251 = math.exp %250 : vector<2x64xf32>
    %cst_102 = arith.constant 1.000000e+00 : f32
    %252 = vector.broadcast %cst_102 : f32 to vector<2x64xf32>
    %253 = arith.addf %252, %251 : vector<2x64xf32>
    %cst_103 = arith.constant 1.000000e+00 : f32
    %254 = vector.broadcast %cst_103 : f32 to vector<2x64xf32>
    %255 = arith.divf %254, %253 : vector<2x64xf32>
    %256 = arith.mulf %245, %216 : vector<2x64xf32>
    %257 = arith.mulf %237, %247 : vector<2x64xf32>
    %258 = arith.addf %256, %257 : vector<2x64xf32>
    %259 = math.tanh %258 : vector<2x64xf32>
    %260 = arith.mulf %255, %259 : vector<2x64xf32>
    %c6_i32 = arith.constant 6 : i32
    %c0_104 = arith.constant 0 : index
    %c0_105 = arith.constant 0 : index
    %261 = vector.load %arg3[%c0_104, %c0_105] : memref<64x256xf32, #tpu.memory_space<vmem>>, vector<64x256xf32>
    %cst_106 = arith.constant dense<0.000000e+00> : vector<2x256xf32>
    %262 = tpu.matmul %260, %261, %cst_106 {dimension_numbers = #tpu.dot_dimension_numbers<[1], [0], [0], [1], [0, 0, 1, 1], [], []>} : vector<2x64xf32>, vector<64x256xf32>, vector<2x256xf32> -> vector<2x256xf32>
    %c2_i32_107 = arith.constant 2 : i32
    %263 = arith.muli %c6_i32, %c2_i32_107 : i32
    %264 = arith.index_cast %263 : i32 to index
    %c0_108 = arith.constant 0 : index
    %265 = vector.load %arg7[%264, %c0_108] : memref<32x256xf32, #tpu.memory_space<vmem>>, vector<2x256xf32>
    %c15_i32_109 = arith.constant 15 : i32
    %266 = arith.subi %c15_i32_109, %c6_i32 : i32
    %c2_i32_110 = arith.constant 2 : i32
    %267 = arith.muli %266, %c2_i32_110 : i32
    %268 = arith.index_cast %267 : i32 to index
    %c0_111 = arith.constant 0 : index
    %269 = vector.load %arg7[%268, %c0_111] : memref<32x256xf32, #tpu.memory_space<vmem>>, vector<2x256xf32>
    %270 = arith.select %25, %265, %269 : vector<2x256xi1>, vector<2x256xf32>
    %271 = arith.addf %270, %262 : vector<2x256xf32>
    %272 = vector.extract_strided_slice %271 {offsets = [0, 0], sizes = [2, 64], strides = [1, 1]} : vector<2x256xf32> to vector<2x64xf32>
    %cst_112 = arith.constant 0.000000e+00 : f32
    %273 = vector.broadcast %cst_112 : f32 to vector<2x64xf32>
    %274 = arith.subf %273, %272 : vector<2x64xf32>
    %275 = math.exp %274 : vector<2x64xf32>
    %cst_113 = arith.constant 1.000000e+00 : f32
    %276 = vector.broadcast %cst_113 : f32 to vector<2x64xf32>
    %277 = arith.addf %276, %275 : vector<2x64xf32>
    %cst_114 = arith.constant 1.000000e+00 : f32
    %278 = vector.broadcast %cst_114 : f32 to vector<2x64xf32>
    %279 = arith.divf %278, %277 : vector<2x64xf32>
    %280 = vector.extract_strided_slice %271 {offsets = [0, 64], sizes = [2, 64], strides = [1, 1]} : vector<2x256xf32> to vector<2x64xf32>
    %cst_115 = arith.constant 0.000000e+00 : f32
    %281 = vector.broadcast %cst_115 : f32 to vector<2x64xf32>
    %282 = arith.subf %281, %280 : vector<2x64xf32>
    %283 = math.exp %282 : vector<2x64xf32>
    %cst_116 = arith.constant 1.000000e+00 : f32
    %284 = vector.broadcast %cst_116 : f32 to vector<2x64xf32>
    %285 = arith.addf %284, %283 : vector<2x64xf32>
    %cst_117 = arith.constant 1.000000e+00 : f32
    %286 = vector.broadcast %cst_117 : f32 to vector<2x64xf32>
    %287 = arith.divf %286, %285 : vector<2x64xf32>
    %288 = vector.extract_strided_slice %271 {offsets = [0, 128], sizes = [2, 64], strides = [1, 1]} : vector<2x256xf32> to vector<2x64xf32>
    %289 = math.tanh %288 : vector<2x64xf32>
    %290 = vector.extract_strided_slice %271 {offsets = [0, 192], sizes = [2, 64], strides = [1, 1]} : vector<2x256xf32> to vector<2x64xf32>
    %cst_118 = arith.constant 0.000000e+00 : f32
    %291 = vector.broadcast %cst_118 : f32 to vector<2x64xf32>
    %292 = arith.subf %291, %290 : vector<2x64xf32>
    %293 = math.exp %292 : vector<2x64xf32>
    %cst_119 = arith.constant 1.000000e+00 : f32
    %294 = vector.broadcast %cst_119 : f32 to vector<2x64xf32>
    %295 = arith.addf %294, %293 : vector<2x64xf32>
    %cst_120 = arith.constant 1.000000e+00 : f32
    %296 = vector.broadcast %cst_120 : f32 to vector<2x64xf32>
    %297 = arith.divf %296, %295 : vector<2x64xf32>
    %298 = arith.mulf %287, %258 : vector<2x64xf32>
    %299 = arith.mulf %279, %289 : vector<2x64xf32>
    %300 = arith.addf %298, %299 : vector<2x64xf32>
    %301 = math.tanh %300 : vector<2x64xf32>
    %302 = arith.mulf %297, %301 : vector<2x64xf32>
    %c7_i32 = arith.constant 7 : i32
    %c0_121 = arith.constant 0 : index
    %c0_122 = arith.constant 0 : index
    %303 = vector.load %arg3[%c0_121, %c0_122] : memref<64x256xf32, #tpu.memory_space<vmem>>, vector<64x256xf32>
    %cst_123 = arith.constant dense<0.000000e+00> : vector<2x256xf32>
    %304 = tpu.matmul %302, %303, %cst_123 {dimension_numbers = #tpu.dot_dimension_numbers<[1], [0], [0], [1], [0, 0, 1, 1], [], []>} : vector<2x64xf32>, vector<64x256xf32>, vector<2x256xf32> -> vector<2x256xf32>
    %c2_i32_124 = arith.constant 2 : i32
    %305 = arith.muli %c7_i32, %c2_i32_124 : i32
    %306 = arith.index_cast %305 : i32 to index
    %c0_125 = arith.constant 0 : index
    %307 = vector.load %arg7[%306, %c0_125] : memref<32x256xf32, #tpu.memory_space<vmem>>, vector<2x256xf32>
    %c15_i32_126 = arith.constant 15 : i32
    %308 = arith.subi %c15_i32_126, %c7_i32 : i32
    %c2_i32_127 = arith.constant 2 : i32
    %309 = arith.muli %308, %c2_i32_127 : i32
    %310 = arith.index_cast %309 : i32 to index
    %c0_128 = arith.constant 0 : index
    %311 = vector.load %arg7[%310, %c0_128] : memref<32x256xf32, #tpu.memory_space<vmem>>, vector<2x256xf32>
    %312 = arith.select %25, %307, %311 : vector<2x256xi1>, vector<2x256xf32>
    %313 = arith.addf %312, %304 : vector<2x256xf32>
    %314 = vector.extract_strided_slice %313 {offsets = [0, 0], sizes = [2, 64], strides = [1, 1]} : vector<2x256xf32> to vector<2x64xf32>
    %cst_129 = arith.constant 0.000000e+00 : f32
    %315 = vector.broadcast %cst_129 : f32 to vector<2x64xf32>
    %316 = arith.subf %315, %314 : vector<2x64xf32>
    %317 = math.exp %316 : vector<2x64xf32>
    %cst_130 = arith.constant 1.000000e+00 : f32
    %318 = vector.broadcast %cst_130 : f32 to vector<2x64xf32>
    %319 = arith.addf %318, %317 : vector<2x64xf32>
    %cst_131 = arith.constant 1.000000e+00 : f32
    %320 = vector.broadcast %cst_131 : f32 to vector<2x64xf32>
    %321 = arith.divf %320, %319 : vector<2x64xf32>
    %322 = vector.extract_strided_slice %313 {offsets = [0, 64], sizes = [2, 64], strides = [1, 1]} : vector<2x256xf32> to vector<2x64xf32>
    %cst_132 = arith.constant 0.000000e+00 : f32
    %323 = vector.broadcast %cst_132 : f32 to vector<2x64xf32>
    %324 = arith.subf %323, %322 : vector<2x64xf32>
    %325 = math.exp %324 : vector<2x64xf32>
    %cst_133 = arith.constant 1.000000e+00 : f32
    %326 = vector.broadcast %cst_133 : f32 to vector<2x64xf32>
    %327 = arith.addf %326, %325 : vector<2x64xf32>
    %cst_134 = arith.constant 1.000000e+00 : f32
    %328 = vector.broadcast %cst_134 : f32 to vector<2x64xf32>
    %329 = arith.divf %328, %327 : vector<2x64xf32>
    %330 = vector.extract_strided_slice %313 {offsets = [0, 128], sizes = [2, 64], strides = [1, 1]} : vector<2x256xf32> to vector<2x64xf32>
    %331 = math.tanh %330 : vector<2x64xf32>
    %332 = vector.extract_strided_slice %313 {offsets = [0, 192], sizes = [2, 64], strides = [1, 1]} : vector<2x256xf32> to vector<2x64xf32>
    %cst_135 = arith.constant 0.000000e+00 : f32
    %333 = vector.broadcast %cst_135 : f32 to vector<2x64xf32>
    %334 = arith.subf %333, %332 : vector<2x64xf32>
    %335 = math.exp %334 : vector<2x64xf32>
    %cst_136 = arith.constant 1.000000e+00 : f32
    %336 = vector.broadcast %cst_136 : f32 to vector<2x64xf32>
    %337 = arith.addf %336, %335 : vector<2x64xf32>
    %cst_137 = arith.constant 1.000000e+00 : f32
    %338 = vector.broadcast %cst_137 : f32 to vector<2x64xf32>
    %339 = arith.divf %338, %337 : vector<2x64xf32>
    %340 = arith.mulf %329, %300 : vector<2x64xf32>
    %341 = arith.mulf %321, %331 : vector<2x64xf32>
    %342 = arith.addf %340, %341 : vector<2x64xf32>
    %343 = math.tanh %342 : vector<2x64xf32>
    %344 = arith.mulf %339, %343 : vector<2x64xf32>
    %c8_i32 = arith.constant 8 : i32
    %c0_138 = arith.constant 0 : index
    %c0_139 = arith.constant 0 : index
    %345 = vector.load %arg3[%c0_138, %c0_139] : memref<64x256xf32, #tpu.memory_space<vmem>>, vector<64x256xf32>
    %cst_140 = arith.constant dense<0.000000e+00> : vector<2x256xf32>
    %346 = tpu.matmul %344, %345, %cst_140 {dimension_numbers = #tpu.dot_dimension_numbers<[1], [0], [0], [1], [0, 0, 1, 1], [], []>} : vector<2x64xf32>, vector<64x256xf32>, vector<2x256xf32> -> vector<2x256xf32>
    %c2_i32_141 = arith.constant 2 : i32
    %347 = arith.muli %c8_i32, %c2_i32_141 : i32
    %348 = arith.index_cast %347 : i32 to index
    %c0_142 = arith.constant 0 : index
    %349 = vector.load %arg7[%348, %c0_142] : memref<32x256xf32, #tpu.memory_space<vmem>>, vector<2x256xf32>
    %c15_i32_143 = arith.constant 15 : i32
    %350 = arith.subi %c15_i32_143, %c8_i32 : i32
    %c2_i32_144 = arith.constant 2 : i32
    %351 = arith.muli %350, %c2_i32_144 : i32
    %352 = arith.index_cast %351 : i32 to index
    %c0_145 = arith.constant 0 : index
    %353 = vector.load %arg7[%352, %c0_145] : memref<32x256xf32, #tpu.memory_space<vmem>>, vector<2x256xf32>
    %354 = arith.select %25, %349, %353 : vector<2x256xi1>, vector<2x256xf32>
    %355 = arith.addf %354, %346 : vector<2x256xf32>
    %356 = vector.extract_strided_slice %355 {offsets = [0, 0], sizes = [2, 64], strides = [1, 1]} : vector<2x256xf32> to vector<2x64xf32>
    %cst_146 = arith.constant 0.000000e+00 : f32
    %357 = vector.broadcast %cst_146 : f32 to vector<2x64xf32>
    %358 = arith.subf %357, %356 : vector<2x64xf32>
    %359 = math.exp %358 : vector<2x64xf32>
    %cst_147 = arith.constant 1.000000e+00 : f32
    %360 = vector.broadcast %cst_147 : f32 to vector<2x64xf32>
    %361 = arith.addf %360, %359 : vector<2x64xf32>
    %cst_148 = arith.constant 1.000000e+00 : f32
    %362 = vector.broadcast %cst_148 : f32 to vector<2x64xf32>
    %363 = arith.divf %362, %361 : vector<2x64xf32>
    %364 = vector.extract_strided_slice %355 {offsets = [0, 64], sizes = [2, 64], strides = [1, 1]} : vector<2x256xf32> to vector<2x64xf32>
    %cst_149 = arith.constant 0.000000e+00 : f32
    %365 = vector.broadcast %cst_149 : f32 to vector<2x64xf32>
    %366 = arith.subf %365, %364 : vector<2x64xf32>
    %367 = math.exp %366 : vector<2x64xf32>
    %cst_150 = arith.constant 1.000000e+00 : f32
    %368 = vector.broadcast %cst_150 : f32 to vector<2x64xf32>
    %369 = arith.addf %368, %367 : vector<2x64xf32>
    %cst_151 = arith.constant 1.000000e+00 : f32
    %370 = vector.broadcast %cst_151 : f32 to vector<2x64xf32>
    %371 = arith.divf %370, %369 : vector<2x64xf32>
    %372 = vector.extract_strided_slice %355 {offsets = [0, 128], sizes = [2, 64], strides = [1, 1]} : vector<2x256xf32> to vector<2x64xf32>
    %373 = math.tanh %372 : vector<2x64xf32>
    %374 = vector.extract_strided_slice %355 {offsets = [0, 192], sizes = [2, 64], strides = [1, 1]} : vector<2x256xf32> to vector<2x64xf32>
    %cst_152 = arith.constant 0.000000e+00 : f32
    %375 = vector.broadcast %cst_152 : f32 to vector<2x64xf32>
    %376 = arith.subf %375, %374 : vector<2x64xf32>
    %377 = math.exp %376 : vector<2x64xf32>
    %cst_153 = arith.constant 1.000000e+00 : f32
    %378 = vector.broadcast %cst_153 : f32 to vector<2x64xf32>
    %379 = arith.addf %378, %377 : vector<2x64xf32>
    %cst_154 = arith.constant 1.000000e+00 : f32
    %380 = vector.broadcast %cst_154 : f32 to vector<2x64xf32>
    %381 = arith.divf %380, %379 : vector<2x64xf32>
    %382 = arith.mulf %371, %342 : vector<2x64xf32>
    %383 = arith.mulf %363, %373 : vector<2x64xf32>
    %384 = arith.addf %382, %383 : vector<2x64xf32>
    %385 = math.tanh %384 : vector<2x64xf32>
    %386 = arith.mulf %381, %385 : vector<2x64xf32>
    %c9_i32 = arith.constant 9 : i32
    %c0_155 = arith.constant 0 : index
    %c0_156 = arith.constant 0 : index
    %387 = vector.load %arg3[%c0_155, %c0_156] : memref<64x256xf32, #tpu.memory_space<vmem>>, vector<64x256xf32>
    %cst_157 = arith.constant dense<0.000000e+00> : vector<2x256xf32>
    %388 = tpu.matmul %386, %387, %cst_157 {dimension_numbers = #tpu.dot_dimension_numbers<[1], [0], [0], [1], [0, 0, 1, 1], [], []>} : vector<2x64xf32>, vector<64x256xf32>, vector<2x256xf32> -> vector<2x256xf32>
    %c2_i32_158 = arith.constant 2 : i32
    %389 = arith.muli %c9_i32, %c2_i32_158 : i32
    %390 = arith.index_cast %389 : i32 to index
    %c0_159 = arith.constant 0 : index
    %391 = vector.load %arg7[%390, %c0_159] : memref<32x256xf32, #tpu.memory_space<vmem>>, vector<2x256xf32>
    %c15_i32_160 = arith.constant 15 : i32
    %392 = arith.subi %c15_i32_160, %c9_i32 : i32
    %c2_i32_161 = arith.constant 2 : i32
    %393 = arith.muli %392, %c2_i32_161 : i32
    %394 = arith.index_cast %393 : i32 to index
    %c0_162 = arith.constant 0 : index
    %395 = vector.load %arg7[%394, %c0_162] : memref<32x256xf32, #tpu.memory_space<vmem>>, vector<2x256xf32>
    %396 = arith.select %25, %391, %395 : vector<2x256xi1>, vector<2x256xf32>
    %397 = arith.addf %396, %388 : vector<2x256xf32>
    %398 = vector.extract_strided_slice %397 {offsets = [0, 0], sizes = [2, 64], strides = [1, 1]} : vector<2x256xf32> to vector<2x64xf32>
    %cst_163 = arith.constant 0.000000e+00 : f32
    %399 = vector.broadcast %cst_163 : f32 to vector<2x64xf32>
    %400 = arith.subf %399, %398 : vector<2x64xf32>
    %401 = math.exp %400 : vector<2x64xf32>
    %cst_164 = arith.constant 1.000000e+00 : f32
    %402 = vector.broadcast %cst_164 : f32 to vector<2x64xf32>
    %403 = arith.addf %402, %401 : vector<2x64xf32>
    %cst_165 = arith.constant 1.000000e+00 : f32
    %404 = vector.broadcast %cst_165 : f32 to vector<2x64xf32>
    %405 = arith.divf %404, %403 : vector<2x64xf32>
    %406 = vector.extract_strided_slice %397 {offsets = [0, 64], sizes = [2, 64], strides = [1, 1]} : vector<2x256xf32> to vector<2x64xf32>
    %cst_166 = arith.constant 0.000000e+00 : f32
    %407 = vector.broadcast %cst_166 : f32 to vector<2x64xf32>
    %408 = arith.subf %407, %406 : vector<2x64xf32>
    %409 = math.exp %408 : vector<2x64xf32>
    %cst_167 = arith.constant 1.000000e+00 : f32
    %410 = vector.broadcast %cst_167 : f32 to vector<2x64xf32>
    %411 = arith.addf %410, %409 : vector<2x64xf32>
    %cst_168 = arith.constant 1.000000e+00 : f32
    %412 = vector.broadcast %cst_168 : f32 to vector<2x64xf32>
    %413 = arith.divf %412, %411 : vector<2x64xf32>
    %414 = vector.extract_strided_slice %397 {offsets = [0, 128], sizes = [2, 64], strides = [1, 1]} : vector<2x256xf32> to vector<2x64xf32>
    %415 = math.tanh %414 : vector<2x64xf32>
    %416 = vector.extract_strided_slice %397 {offsets = [0, 192], sizes = [2, 64], strides = [1, 1]} : vector<2x256xf32> to vector<2x64xf32>
    %cst_169 = arith.constant 0.000000e+00 : f32
    %417 = vector.broadcast %cst_169 : f32 to vector<2x64xf32>
    %418 = arith.subf %417, %416 : vector<2x64xf32>
    %419 = math.exp %418 : vector<2x64xf32>
    %cst_170 = arith.constant 1.000000e+00 : f32
    %420 = vector.broadcast %cst_170 : f32 to vector<2x64xf32>
    %421 = arith.addf %420, %419 : vector<2x64xf32>
    %cst_171 = arith.constant 1.000000e+00 : f32
    %422 = vector.broadcast %cst_171 : f32 to vector<2x64xf32>
    %423 = arith.divf %422, %421 : vector<2x64xf32>
    %424 = arith.mulf %413, %384 : vector<2x64xf32>
    %425 = arith.mulf %405, %415 : vector<2x64xf32>
    %426 = arith.addf %424, %425 : vector<2x64xf32>
    %427 = math.tanh %426 : vector<2x64xf32>
    %428 = arith.mulf %423, %427 : vector<2x64xf32>
    %c10_i32 = arith.constant 10 : i32
    %c0_172 = arith.constant 0 : index
    %c0_173 = arith.constant 0 : index
    %429 = vector.load %arg3[%c0_172, %c0_173] : memref<64x256xf32, #tpu.memory_space<vmem>>, vector<64x256xf32>
    %cst_174 = arith.constant dense<0.000000e+00> : vector<2x256xf32>
    %430 = tpu.matmul %428, %429, %cst_174 {dimension_numbers = #tpu.dot_dimension_numbers<[1], [0], [0], [1], [0, 0, 1, 1], [], []>} : vector<2x64xf32>, vector<64x256xf32>, vector<2x256xf32> -> vector<2x256xf32>
    %c2_i32_175 = arith.constant 2 : i32
    %431 = arith.muli %c10_i32, %c2_i32_175 : i32
    %432 = arith.index_cast %431 : i32 to index
    %c0_176 = arith.constant 0 : index
    %433 = vector.load %arg7[%432, %c0_176] : memref<32x256xf32, #tpu.memory_space<vmem>>, vector<2x256xf32>
    %c15_i32_177 = arith.constant 15 : i32
    %434 = arith.subi %c15_i32_177, %c10_i32 : i32
    %c2_i32_178 = arith.constant 2 : i32
    %435 = arith.muli %434, %c2_i32_178 : i32
    %436 = arith.index_cast %435 : i32 to index
    %c0_179 = arith.constant 0 : index
    %437 = vector.load %arg7[%436, %c0_179] : memref<32x256xf32, #tpu.memory_space<vmem>>, vector<2x256xf32>
    %438 = arith.select %25, %433, %437 : vector<2x256xi1>, vector<2x256xf32>
    %439 = arith.addf %438, %430 : vector<2x256xf32>
    %440 = vector.extract_strided_slice %439 {offsets = [0, 0], sizes = [2, 64], strides = [1, 1]} : vector<2x256xf32> to vector<2x64xf32>
    %cst_180 = arith.constant 0.000000e+00 : f32
    %441 = vector.broadcast %cst_180 : f32 to vector<2x64xf32>
    %442 = arith.subf %441, %440 : vector<2x64xf32>
    %443 = math.exp %442 : vector<2x64xf32>
    %cst_181 = arith.constant 1.000000e+00 : f32
    %444 = vector.broadcast %cst_181 : f32 to vector<2x64xf32>
    %445 = arith.addf %444, %443 : vector<2x64xf32>
    %cst_182 = arith.constant 1.000000e+00 : f32
    %446 = vector.broadcast %cst_182 : f32 to vector<2x64xf32>
    %447 = arith.divf %446, %445 : vector<2x64xf32>
    %448 = vector.extract_strided_slice %439 {offsets = [0, 64], sizes = [2, 64], strides = [1, 1]} : vector<2x256xf32> to vector<2x64xf32>
    %cst_183 = arith.constant 0.000000e+00 : f32
    %449 = vector.broadcast %cst_183 : f32 to vector<2x64xf32>
    %450 = arith.subf %449, %448 : vector<2x64xf32>
    %451 = math.exp %450 : vector<2x64xf32>
    %cst_184 = arith.constant 1.000000e+00 : f32
    %452 = vector.broadcast %cst_184 : f32 to vector<2x64xf32>
    %453 = arith.addf %452, %451 : vector<2x64xf32>
    %cst_185 = arith.constant 1.000000e+00 : f32
    %454 = vector.broadcast %cst_185 : f32 to vector<2x64xf32>
    %455 = arith.divf %454, %453 : vector<2x64xf32>
    %456 = vector.extract_strided_slice %439 {offsets = [0, 128], sizes = [2, 64], strides = [1, 1]} : vector<2x256xf32> to vector<2x64xf32>
    %457 = math.tanh %456 : vector<2x64xf32>
    %458 = vector.extract_strided_slice %439 {offsets = [0, 192], sizes = [2, 64], strides = [1, 1]} : vector<2x256xf32> to vector<2x64xf32>
    %cst_186 = arith.constant 0.000000e+00 : f32
    %459 = vector.broadcast %cst_186 : f32 to vector<2x64xf32>
    %460 = arith.subf %459, %458 : vector<2x64xf32>
    %461 = math.exp %460 : vector<2x64xf32>
    %cst_187 = arith.constant 1.000000e+00 : f32
    %462 = vector.broadcast %cst_187 : f32 to vector<2x64xf32>
    %463 = arith.addf %462, %461 : vector<2x64xf32>
    %cst_188 = arith.constant 1.000000e+00 : f32
    %464 = vector.broadcast %cst_188 : f32 to vector<2x64xf32>
    %465 = arith.divf %464, %463 : vector<2x64xf32>
    %466 = arith.mulf %455, %426 : vector<2x64xf32>
    %467 = arith.mulf %447, %457 : vector<2x64xf32>
    %468 = arith.addf %466, %467 : vector<2x64xf32>
    %469 = math.tanh %468 : vector<2x64xf32>
    %470 = arith.mulf %465, %469 : vector<2x64xf32>
    %c11_i32 = arith.constant 11 : i32
    %c0_189 = arith.constant 0 : index
    %c0_190 = arith.constant 0 : index
    %471 = vector.load %arg3[%c0_189, %c0_190] : memref<64x256xf32, #tpu.memory_space<vmem>>, vector<64x256xf32>
    %cst_191 = arith.constant dense<0.000000e+00> : vector<2x256xf32>
    %472 = tpu.matmul %470, %471, %cst_191 {dimension_numbers = #tpu.dot_dimension_numbers<[1], [0], [0], [1], [0, 0, 1, 1], [], []>} : vector<2x64xf32>, vector<64x256xf32>, vector<2x256xf32> -> vector<2x256xf32>
    %c2_i32_192 = arith.constant 2 : i32
    %473 = arith.muli %c11_i32, %c2_i32_192 : i32
    %474 = arith.index_cast %473 : i32 to index
    %c0_193 = arith.constant 0 : index
    %475 = vector.load %arg7[%474, %c0_193] : memref<32x256xf32, #tpu.memory_space<vmem>>, vector<2x256xf32>
    %c15_i32_194 = arith.constant 15 : i32
    %476 = arith.subi %c15_i32_194, %c11_i32 : i32
    %c2_i32_195 = arith.constant 2 : i32
    %477 = arith.muli %476, %c2_i32_195 : i32
    %478 = arith.index_cast %477 : i32 to index
    %c0_196 = arith.constant 0 : index
    %479 = vector.load %arg7[%478, %c0_196] : memref<32x256xf32, #tpu.memory_space<vmem>>, vector<2x256xf32>
    %480 = arith.select %25, %475, %479 : vector<2x256xi1>, vector<2x256xf32>
    %481 = arith.addf %480, %472 : vector<2x256xf32>
    %482 = vector.extract_strided_slice %481 {offsets = [0, 0], sizes = [2, 64], strides = [1, 1]} : vector<2x256xf32> to vector<2x64xf32>
    %cst_197 = arith.constant 0.000000e+00 : f32
    %483 = vector.broadcast %cst_197 : f32 to vector<2x64xf32>
    %484 = arith.subf %483, %482 : vector<2x64xf32>
    %485 = math.exp %484 : vector<2x64xf32>
    %cst_198 = arith.constant 1.000000e+00 : f32
    %486 = vector.broadcast %cst_198 : f32 to vector<2x64xf32>
    %487 = arith.addf %486, %485 : vector<2x64xf32>
    %cst_199 = arith.constant 1.000000e+00 : f32
    %488 = vector.broadcast %cst_199 : f32 to vector<2x64xf32>
    %489 = arith.divf %488, %487 : vector<2x64xf32>
    %490 = vector.extract_strided_slice %481 {offsets = [0, 64], sizes = [2, 64], strides = [1, 1]} : vector<2x256xf32> to vector<2x64xf32>
    %cst_200 = arith.constant 0.000000e+00 : f32
    %491 = vector.broadcast %cst_200 : f32 to vector<2x64xf32>
    %492 = arith.subf %491, %490 : vector<2x64xf32>
    %493 = math.exp %492 : vector<2x64xf32>
    %cst_201 = arith.constant 1.000000e+00 : f32
    %494 = vector.broadcast %cst_201 : f32 to vector<2x64xf32>
    %495 = arith.addf %494, %493 : vector<2x64xf32>
    %cst_202 = arith.constant 1.000000e+00 : f32
    %496 = vector.broadcast %cst_202 : f32 to vector<2x64xf32>
    %497 = arith.divf %496, %495 : vector<2x64xf32>
    %498 = vector.extract_strided_slice %481 {offsets = [0, 128], sizes = [2, 64], strides = [1, 1]} : vector<2x256xf32> to vector<2x64xf32>
    %499 = math.tanh %498 : vector<2x64xf32>
    %500 = vector.extract_strided_slice %481 {offsets = [0, 192], sizes = [2, 64], strides = [1, 1]} : vector<2x256xf32> to vector<2x64xf32>
    %cst_203 = arith.constant 0.000000e+00 : f32
    %501 = vector.broadcast %cst_203 : f32 to vector<2x64xf32>
    %502 = arith.subf %501, %500 : vector<2x64xf32>
    %503 = math.exp %502 : vector<2x64xf32>
    %cst_204 = arith.constant 1.000000e+00 : f32
    %504 = vector.broadcast %cst_204 : f32 to vector<2x64xf32>
    %505 = arith.addf %504, %503 : vector<2x64xf32>
    %cst_205 = arith.constant 1.000000e+00 : f32
    %506 = vector.broadcast %cst_205 : f32 to vector<2x64xf32>
    %507 = arith.divf %506, %505 : vector<2x64xf32>
    %508 = arith.mulf %497, %468 : vector<2x64xf32>
    %509 = arith.mulf %489, %499 : vector<2x64xf32>
    %510 = arith.addf %508, %509 : vector<2x64xf32>
    %511 = math.tanh %510 : vector<2x64xf32>
    %512 = arith.mulf %507, %511 : vector<2x64xf32>
    %c12_i32 = arith.constant 12 : i32
    %c0_206 = arith.constant 0 : index
    %c0_207 = arith.constant 0 : index
    %513 = vector.load %arg3[%c0_206, %c0_207] : memref<64x256xf32, #tpu.memory_space<vmem>>, vector<64x256xf32>
    %cst_208 = arith.constant dense<0.000000e+00> : vector<2x256xf32>
    %514 = tpu.matmul %512, %513, %cst_208 {dimension_numbers = #tpu.dot_dimension_numbers<[1], [0], [0], [1], [0, 0, 1, 1], [], []>} : vector<2x64xf32>, vector<64x256xf32>, vector<2x256xf32> -> vector<2x256xf32>
    %c2_i32_209 = arith.constant 2 : i32
    %515 = arith.muli %c12_i32, %c2_i32_209 : i32
    %516 = arith.index_cast %515 : i32 to index
    %c0_210 = arith.constant 0 : index
    %517 = vector.load %arg7[%516, %c0_210] : memref<32x256xf32, #tpu.memory_space<vmem>>, vector<2x256xf32>
    %c15_i32_211 = arith.constant 15 : i32
    %518 = arith.subi %c15_i32_211, %c12_i32 : i32
    %c2_i32_212 = arith.constant 2 : i32
    %519 = arith.muli %518, %c2_i32_212 : i32
    %520 = arith.index_cast %519 : i32 to index
    %c0_213 = arith.constant 0 : index
    %521 = vector.load %arg7[%520, %c0_213] : memref<32x256xf32, #tpu.memory_space<vmem>>, vector<2x256xf32>
    %522 = arith.select %25, %517, %521 : vector<2x256xi1>, vector<2x256xf32>
    %523 = arith.addf %522, %514 : vector<2x256xf32>
    %524 = vector.extract_strided_slice %523 {offsets = [0, 0], sizes = [2, 64], strides = [1, 1]} : vector<2x256xf32> to vector<2x64xf32>
    %cst_214 = arith.constant 0.000000e+00 : f32
    %525 = vector.broadcast %cst_214 : f32 to vector<2x64xf32>
    %526 = arith.subf %525, %524 : vector<2x64xf32>
    %527 = math.exp %526 : vector<2x64xf32>
    %cst_215 = arith.constant 1.000000e+00 : f32
    %528 = vector.broadcast %cst_215 : f32 to vector<2x64xf32>
    %529 = arith.addf %528, %527 : vector<2x64xf32>
    %cst_216 = arith.constant 1.000000e+00 : f32
    %530 = vector.broadcast %cst_216 : f32 to vector<2x64xf32>
    %531 = arith.divf %530, %529 : vector<2x64xf32>
    %532 = vector.extract_strided_slice %523 {offsets = [0, 64], sizes = [2, 64], strides = [1, 1]} : vector<2x256xf32> to vector<2x64xf32>
    %cst_217 = arith.constant 0.000000e+00 : f32
    %533 = vector.broadcast %cst_217 : f32 to vector<2x64xf32>
    %534 = arith.subf %533, %532 : vector<2x64xf32>
    %535 = math.exp %534 : vector<2x64xf32>
    %cst_218 = arith.constant 1.000000e+00 : f32
    %536 = vector.broadcast %cst_218 : f32 to vector<2x64xf32>
    %537 = arith.addf %536, %535 : vector<2x64xf32>
    %cst_219 = arith.constant 1.000000e+00 : f32
    %538 = vector.broadcast %cst_219 : f32 to vector<2x64xf32>
    %539 = arith.divf %538, %537 : vector<2x64xf32>
    %540 = vector.extract_strided_slice %523 {offsets = [0, 128], sizes = [2, 64], strides = [1, 1]} : vector<2x256xf32> to vector<2x64xf32>
    %541 = math.tanh %540 : vector<2x64xf32>
    %542 = vector.extract_strided_slice %523 {offsets = [0, 192], sizes = [2, 64], strides = [1, 1]} : vector<2x256xf32> to vector<2x64xf32>
    %cst_220 = arith.constant 0.000000e+00 : f32
    %543 = vector.broadcast %cst_220 : f32 to vector<2x64xf32>
    %544 = arith.subf %543, %542 : vector<2x64xf32>
    %545 = math.exp %544 : vector<2x64xf32>
    %cst_221 = arith.constant 1.000000e+00 : f32
    %546 = vector.broadcast %cst_221 : f32 to vector<2x64xf32>
    %547 = arith.addf %546, %545 : vector<2x64xf32>
    %cst_222 = arith.constant 1.000000e+00 : f32
    %548 = vector.broadcast %cst_222 : f32 to vector<2x64xf32>
    %549 = arith.divf %548, %547 : vector<2x64xf32>
    %550 = arith.mulf %539, %510 : vector<2x64xf32>
    %551 = arith.mulf %531, %541 : vector<2x64xf32>
    %552 = arith.addf %550, %551 : vector<2x64xf32>
    %553 = math.tanh %552 : vector<2x64xf32>
    %554 = arith.mulf %549, %553 : vector<2x64xf32>
    %c13_i32 = arith.constant 13 : i32
    %c0_223 = arith.constant 0 : index
    %c0_224 = arith.constant 0 : index
    %555 = vector.load %arg3[%c0_223, %c0_224] : memref<64x256xf32, #tpu.memory_space<vmem>>, vector<64x256xf32>
    %cst_225 = arith.constant dense<0.000000e+00> : vector<2x256xf32>
    %556 = tpu.matmul %554, %555, %cst_225 {dimension_numbers = #tpu.dot_dimension_numbers<[1], [0], [0], [1], [0, 0, 1, 1], [], []>} : vector<2x64xf32>, vector<64x256xf32>, vector<2x256xf32> -> vector<2x256xf32>
    %c2_i32_226 = arith.constant 2 : i32
    %557 = arith.muli %c13_i32, %c2_i32_226 : i32
    %558 = arith.index_cast %557 : i32 to index
    %c0_227 = arith.constant 0 : index
    %559 = vector.load %arg7[%558, %c0_227] : memref<32x256xf32, #tpu.memory_space<vmem>>, vector<2x256xf32>
    %c15_i32_228 = arith.constant 15 : i32
    %560 = arith.subi %c15_i32_228, %c13_i32 : i32
    %c2_i32_229 = arith.constant 2 : i32
    %561 = arith.muli %560, %c2_i32_229 : i32
    %562 = arith.index_cast %561 : i32 to index
    %c0_230 = arith.constant 0 : index
    %563 = vector.load %arg7[%562, %c0_230] : memref<32x256xf32, #tpu.memory_space<vmem>>, vector<2x256xf32>
    %564 = arith.select %25, %559, %563 : vector<2x256xi1>, vector<2x256xf32>
    %565 = arith.addf %564, %556 : vector<2x256xf32>
    %566 = vector.extract_strided_slice %565 {offsets = [0, 0], sizes = [2, 64], strides = [1, 1]} : vector<2x256xf32> to vector<2x64xf32>
    %cst_231 = arith.constant 0.000000e+00 : f32
    %567 = vector.broadcast %cst_231 : f32 to vector<2x64xf32>
    %568 = arith.subf %567, %566 : vector<2x64xf32>
    %569 = math.exp %568 : vector<2x64xf32>
    %cst_232 = arith.constant 1.000000e+00 : f32
    %570 = vector.broadcast %cst_232 : f32 to vector<2x64xf32>
    %571 = arith.addf %570, %569 : vector<2x64xf32>
    %cst_233 = arith.constant 1.000000e+00 : f32
    %572 = vector.broadcast %cst_233 : f32 to vector<2x64xf32>
    %573 = arith.divf %572, %571 : vector<2x64xf32>
    %574 = vector.extract_strided_slice %565 {offsets = [0, 64], sizes = [2, 64], strides = [1, 1]} : vector<2x256xf32> to vector<2x64xf32>
    %cst_234 = arith.constant 0.000000e+00 : f32
    %575 = vector.broadcast %cst_234 : f32 to vector<2x64xf32>
    %576 = arith.subf %575, %574 : vector<2x64xf32>
    %577 = math.exp %576 : vector<2x64xf32>
    %cst_235 = arith.constant 1.000000e+00 : f32
    %578 = vector.broadcast %cst_235 : f32 to vector<2x64xf32>
    %579 = arith.addf %578, %577 : vector<2x64xf32>
    %cst_236 = arith.constant 1.000000e+00 : f32
    %580 = vector.broadcast %cst_236 : f32 to vector<2x64xf32>
    %581 = arith.divf %580, %579 : vector<2x64xf32>
    %582 = vector.extract_strided_slice %565 {offsets = [0, 128], sizes = [2, 64], strides = [1, 1]} : vector<2x256xf32> to vector<2x64xf32>
    %583 = math.tanh %582 : vector<2x64xf32>
    %584 = vector.extract_strided_slice %565 {offsets = [0, 192], sizes = [2, 64], strides = [1, 1]} : vector<2x256xf32> to vector<2x64xf32>
    %cst_237 = arith.constant 0.000000e+00 : f32
    %585 = vector.broadcast %cst_237 : f32 to vector<2x64xf32>
    %586 = arith.subf %585, %584 : vector<2x64xf32>
    %587 = math.exp %586 : vector<2x64xf32>
    %cst_238 = arith.constant 1.000000e+00 : f32
    %588 = vector.broadcast %cst_238 : f32 to vector<2x64xf32>
    %589 = arith.addf %588, %587 : vector<2x64xf32>
    %cst_239 = arith.constant 1.000000e+00 : f32
    %590 = vector.broadcast %cst_239 : f32 to vector<2x64xf32>
    %591 = arith.divf %590, %589 : vector<2x64xf32>
    %592 = arith.mulf %581, %552 : vector<2x64xf32>
    %593 = arith.mulf %573, %583 : vector<2x64xf32>
    %594 = arith.addf %592, %593 : vector<2x64xf32>
    %595 = math.tanh %594 : vector<2x64xf32>
    %596 = arith.mulf %591, %595 : vector<2x64xf32>
    %c14_i32 = arith.constant 14 : i32
    %c0_240 = arith.constant 0 : index
    %c0_241 = arith.constant 0 : index
    %597 = vector.load %arg3[%c0_240, %c0_241] : memref<64x256xf32, #tpu.memory_space<vmem>>, vector<64x256xf32>
    %cst_242 = arith.constant dense<0.000000e+00> : vector<2x256xf32>
    %598 = tpu.matmul %596, %597, %cst_242 {dimension_numbers = #tpu.dot_dimension_numbers<[1], [0], [0], [1], [0, 0, 1, 1], [], []>} : vector<2x64xf32>, vector<64x256xf32>, vector<2x256xf32> -> vector<2x256xf32>
    %c2_i32_243 = arith.constant 2 : i32
    %599 = arith.muli %c14_i32, %c2_i32_243 : i32
    %600 = arith.index_cast %599 : i32 to index
    %c0_244 = arith.constant 0 : index
    %601 = vector.load %arg7[%600, %c0_244] : memref<32x256xf32, #tpu.memory_space<vmem>>, vector<2x256xf32>
    %c15_i32_245 = arith.constant 15 : i32
    %602 = arith.subi %c15_i32_245, %c14_i32 : i32
    %c2_i32_246 = arith.constant 2 : i32
    %603 = arith.muli %602, %c2_i32_246 : i32
    %604 = arith.index_cast %603 : i32 to index
    %c0_247 = arith.constant 0 : index
    %605 = vector.load %arg7[%604, %c0_247] : memref<32x256xf32, #tpu.memory_space<vmem>>, vector<2x256xf32>
    %606 = arith.select %25, %601, %605 : vector<2x256xi1>, vector<2x256xf32>
    %607 = arith.addf %606, %598 : vector<2x256xf32>
    %608 = vector.extract_strided_slice %607 {offsets = [0, 0], sizes = [2, 64], strides = [1, 1]} : vector<2x256xf32> to vector<2x64xf32>
    %cst_248 = arith.constant 0.000000e+00 : f32
    %609 = vector.broadcast %cst_248 : f32 to vector<2x64xf32>
    %610 = arith.subf %609, %608 : vector<2x64xf32>
    %611 = math.exp %610 : vector<2x64xf32>
    %cst_249 = arith.constant 1.000000e+00 : f32
    %612 = vector.broadcast %cst_249 : f32 to vector<2x64xf32>
    %613 = arith.addf %612, %611 : vector<2x64xf32>
    %cst_250 = arith.constant 1.000000e+00 : f32
    %614 = vector.broadcast %cst_250 : f32 to vector<2x64xf32>
    %615 = arith.divf %614, %613 : vector<2x64xf32>
    %616 = vector.extract_strided_slice %607 {offsets = [0, 64], sizes = [2, 64], strides = [1, 1]} : vector<2x256xf32> to vector<2x64xf32>
    %cst_251 = arith.constant 0.000000e+00 : f32
    %617 = vector.broadcast %cst_251 : f32 to vector<2x64xf32>
    %618 = arith.subf %617, %616 : vector<2x64xf32>
    %619 = math.exp %618 : vector<2x64xf32>
    %cst_252 = arith.constant 1.000000e+00 : f32
    %620 = vector.broadcast %cst_252 : f32 to vector<2x64xf32>
    %621 = arith.addf %620, %619 : vector<2x64xf32>
    %cst_253 = arith.constant 1.000000e+00 : f32
    %622 = vector.broadcast %cst_253 : f32 to vector<2x64xf32>
    %623 = arith.divf %622, %621 : vector<2x64xf32>
    %624 = vector.extract_strided_slice %607 {offsets = [0, 128], sizes = [2, 64], strides = [1, 1]} : vector<2x256xf32> to vector<2x64xf32>
    %625 = math.tanh %624 : vector<2x64xf32>
    %626 = vector.extract_strided_slice %607 {offsets = [0, 192], sizes = [2, 64], strides = [1, 1]} : vector<2x256xf32> to vector<2x64xf32>
    %cst_254 = arith.constant 0.000000e+00 : f32
    %627 = vector.broadcast %cst_254 : f32 to vector<2x64xf32>
    %628 = arith.subf %627, %626 : vector<2x64xf32>
    %629 = math.exp %628 : vector<2x64xf32>
    %cst_255 = arith.constant 1.000000e+00 : f32
    %630 = vector.broadcast %cst_255 : f32 to vector<2x64xf32>
    %631 = arith.addf %630, %629 : vector<2x64xf32>
    %cst_256 = arith.constant 1.000000e+00 : f32
    %632 = vector.broadcast %cst_256 : f32 to vector<2x64xf32>
    %633 = arith.divf %632, %631 : vector<2x64xf32>
    %634 = arith.mulf %623, %594 : vector<2x64xf32>
    %635 = arith.mulf %615, %625 : vector<2x64xf32>
    %636 = arith.addf %634, %635 : vector<2x64xf32>
    %637 = math.tanh %636 : vector<2x64xf32>
    %638 = arith.mulf %633, %637 : vector<2x64xf32>
    %c15_i32_257 = arith.constant 15 : i32
    %c0_258 = arith.constant 0 : index
    %c0_259 = arith.constant 0 : index
    %639 = vector.load %arg3[%c0_258, %c0_259] : memref<64x256xf32, #tpu.memory_space<vmem>>, vector<64x256xf32>
    %cst_260 = arith.constant dense<0.000000e+00> : vector<2x256xf32>
    %640 = tpu.matmul %638, %639, %cst_260 {dimension_numbers = #tpu.dot_dimension_numbers<[1], [0], [0], [1], [0, 0, 1, 1], [], []>} : vector<2x64xf32>, vector<64x256xf32>, vector<2x256xf32> -> vector<2x256xf32>
    %c2_i32_261 = arith.constant 2 : i32
    %641 = arith.muli %c15_i32_257, %c2_i32_261 : i32
    %642 = arith.index_cast %641 : i32 to index
    %c0_262 = arith.constant 0 : index
    %643 = vector.load %arg7[%642, %c0_262] : memref<32x256xf32, #tpu.memory_space<vmem>>, vector<2x256xf32>
    %c15_i32_263 = arith.constant 15 : i32
    %644 = arith.subi %c15_i32_263, %c15_i32_257 : i32
    %c2_i32_264 = arith.constant 2 : i32
    %645 = arith.muli %644, %c2_i32_264 : i32
    %646 = arith.index_cast %645 : i32 to index
    %c0_265 = arith.constant 0 : index
    %647 = vector.load %arg7[%646, %c0_265] : memref<32x256xf32, #tpu.memory_space<vmem>>, vector<2x256xf32>
    %648 = arith.select %25, %643, %647 : vector<2x256xi1>, vector<2x256xf32>
    %649 = arith.addf %648, %640 : vector<2x256xf32>
    %650 = vector.extract_strided_slice %649 {offsets = [0, 0], sizes = [2, 64], strides = [1, 1]} : vector<2x256xf32> to vector<2x64xf32>
    %cst_266 = arith.constant 0.000000e+00 : f32
    %651 = vector.broadcast %cst_266 : f32 to vector<2x64xf32>
    %652 = arith.subf %651, %650 : vector<2x64xf32>
    %653 = math.exp %652 : vector<2x64xf32>
    %cst_267 = arith.constant 1.000000e+00 : f32
    %654 = vector.broadcast %cst_267 : f32 to vector<2x64xf32>
    %655 = arith.addf %654, %653 : vector<2x64xf32>
    %cst_268 = arith.constant 1.000000e+00 : f32
    %656 = vector.broadcast %cst_268 : f32 to vector<2x64xf32>
    %657 = arith.divf %656, %655 : vector<2x64xf32>
    %658 = vector.extract_strided_slice %649 {offsets = [0, 64], sizes = [2, 64], strides = [1, 1]} : vector<2x256xf32> to vector<2x64xf32>
    %cst_269 = arith.constant 0.000000e+00 : f32
    %659 = vector.broadcast %cst_269 : f32 to vector<2x64xf32>
    %660 = arith.subf %659, %658 : vector<2x64xf32>
    %661 = math.exp %660 : vector<2x64xf32>
    %cst_270 = arith.constant 1.000000e+00 : f32
    %662 = vector.broadcast %cst_270 : f32 to vector<2x64xf32>
    %663 = arith.addf %662, %661 : vector<2x64xf32>
    %cst_271 = arith.constant 1.000000e+00 : f32
    %664 = vector.broadcast %cst_271 : f32 to vector<2x64xf32>
    %665 = arith.divf %664, %663 : vector<2x64xf32>
    %666 = vector.extract_strided_slice %649 {offsets = [0, 128], sizes = [2, 64], strides = [1, 1]} : vector<2x256xf32> to vector<2x64xf32>
    %667 = math.tanh %666 : vector<2x64xf32>
    %668 = vector.extract_strided_slice %649 {offsets = [0, 192], sizes = [2, 64], strides = [1, 1]} : vector<2x256xf32> to vector<2x64xf32>
    %cst_272 = arith.constant 0.000000e+00 : f32
    %669 = vector.broadcast %cst_272 : f32 to vector<2x64xf32>
    %670 = arith.subf %669, %668 : vector<2x64xf32>
    %671 = math.exp %670 : vector<2x64xf32>
    %cst_273 = arith.constant 1.000000e+00 : f32
    %672 = vector.broadcast %cst_273 : f32 to vector<2x64xf32>
    %673 = arith.addf %672, %671 : vector<2x64xf32>
    %cst_274 = arith.constant 1.000000e+00 : f32
    %674 = vector.broadcast %cst_274 : f32 to vector<2x64xf32>
    %675 = arith.divf %674, %673 : vector<2x64xf32>
    %676 = arith.mulf %665, %636 : vector<2x64xf32>
    %677 = arith.mulf %657, %667 : vector<2x64xf32>
    %678 = arith.addf %676, %677 : vector<2x64xf32>
    %679 = math.tanh %678 : vector<2x64xf32>
    %680 = arith.mulf %675, %679 : vector<2x64xf32>
    %c15_i32_275 = arith.constant 15 : i32
    %681 = vector.extract_strided_slice %680 {offsets = [0, 0], sizes = [2, 32], strides = [1, 1]} : vector<2x64xf32> to vector<2x32xf32>
    %682 = tpu.concatenate %681, %50 in 1 : vector<2x32xf32>, vector<2x32xf32> -> vector<2x64xf32>
    %c0_276 = arith.constant 0 : index
    %c0_277 = arith.constant 0 : index
    %683 = vector.load %arg4[%c0_276, %c0_277] : memref<64x2xf32, #tpu.memory_space<vmem>>, vector<64x2xf32>
    %cst_278 = arith.constant dense<0.000000e+00> : vector<2x2xf32>
    %684 = tpu.matmul %682, %683, %cst_278 {dimension_numbers = #tpu.dot_dimension_numbers<[1], [0], [0], [1], [0, 0, 1, 1], [], []>} : vector<2x64xf32>, vector<64x2xf32>, vector<2x2xf32> -> vector<2x2xf32>
    %c0_279 = arith.constant 0 : index
    %c0_280 = arith.constant 0 : index
    %685 = vector.load %arg5[%c0_279, %c0_280] : memref<1x2xf32, #tpu.memory_space<vmem>>, vector<1x2xf32>
    %686 = vector.broadcast %685 : vector<1x2xf32> to vector<2x2xf32>
    %687 = arith.addf %684, %686 : vector<2x2xf32>
    %c0_281 = arith.constant 0 : index
    %c0_282 = arith.constant 0 : index
    %688 = vector.load %arg6[%c0_281, %c0_282] : memref<2x2xf32, #tpu.memory_space<vmem>>, vector<2x2xf32>
    tpu.vector_store %arg6[%c0_281, %c0_282], %687 {strides = array<i32>} : memref<2x2xf32, #tpu.memory_space<vmem>>, vector<2x2xf32>,
    return
  }
}

</mosaic_0001>

<bundles_post_ra>
// kernel: crnn_forward.7
= control target key start
LH: loop header
LB: loop body
LE: loop exit
PB: predicated region body
PF: predicated region fallthrough
CT: control target
= control target key end

     0   :  { %8 = vsyncpa [#allocation3], 0  ;;  %s509_s15 = smov [#allocation2]   ;;  %s510_s17 = smov 64   ;;  %s675_s0 = inlined_call_operand.vmem [shape: bf16[2,18,64], index: 0, kind: input, shape index: {}]   ;;  %s676_s1 = inlined_call_operand.hbm [shape: bf16[3,64,128], index: 1, kind: input, shape index: {}]   ;;  %s677_s2 = inlined_call_operand.vmem [shape: f32[1,128], index: 2, kind: input, shape index: {}]   ;;  %s678_s3 = inlined_call_operand.vmem [shape: bf16[2,18,128], index: 3, kind: output, shape index: {}]  }
   0x1   :  { %s15_s14 = sshll.u32 %s676_s1, 4  ;;  %s17_s16 = sshll.u32 %s509_s15, 4  ;;  %s16_s14 = int_to_ptr.hbm [resolvable:$true] %s15_s14  ;;  %s18_s16 = int_to_ptr.vmem [resolvable:$true] %s17_s16 }
   0x2   :  { %s511_s18 = smov 4  }
   0x3   :  { %23 = dma.hbm_to_vmem [thread:$0]  %s16_s14, 1536, %s18_s16, [#allocation3], %s510_s17, %s510_s17, %s511_s18  }
   0x4   :  { %507 = dma.done.wait [#allocation3], 1536  }
   0x5   :  { %508 = vsyncadd [#allocation3], 4294965760  ;;  %v469_v0 = vld [vmem:[#allocation2 + $0x38] sm:$0xff]  ;;  %v468_v3 = vld [vmem:[#allocation2 + $0x30] sm:$0xff]  ;;  %vm45_vm0 = vsmask.f32 3328 }
   0x6   :  { %v465_v1 = vld [vmem:[#allocation2 + $0x18] sm:$0xff]  ;;  %146 = vmatpush.bf16.msra.mxu0 %v469_v0  ;;  %v464_v4 = vld [vmem:[#allocation2 + $0x10] sm:$0xff]  ;;  %474 = vmatpush.bf16.msra.mxu3 %v469_v0  ;;  %vm46_vm1 = vsmask.f32 7440  ;;  %vm226_vm2 = vcmask 1042432   ;;  %vm227_vm3 = vcmask 1046532  }
   0x7   :  { %v473_v2 = vld [vmem:[#allocation2 + $0x58] sm:$0xff]  ;;  %205 = vmatpush.bf16.msra.mxu1 %v465_v1  ;;  %v472_v5 = vld [vmem:[#allocation2 + $0x50] sm:$0xff]  ;;  %v31_v6 = vld [vmem:[%s675_s0] sm:$0xf]  ;;  %vm135_vm6 = vcmask 523264   ;;  %vm372_vm7 = vcmask 1043456  }
   0x8   :  { %292 = vmatpush.bf16.msra.mxu2 %v473_v2  ;;  %v32_v7 = vld [vmem:[%s675_s0 + $0x4] sm:$0xf]  ;;  %v43_v8 = vld [vmem:[%s675_s0 + $0x8] sm:$0x1]  ;;  %v49_v11 = vshrl.u32 %v31_v6, 16  ;;  %v52_v12 = vshll.u32 %v31_v6, 16  ;;  %vm550_vm4 = vmor %vm226_vm2, %vm227_vm3 }
   0x9   :  { %v467_v9 = vld [vmem:[#allocation2 + $0x28] sm:$0xff]  ;;  %v58_v13 = vshll.u32 %v32_v7, 16  ;;  %v62_v14 = vshrl.u32 %v32_v7, 16  ;;  %v68_v16 = vshll.u32 %v43_v8, 16  ;;  %v220_v17 = vld [vmem:[%s675_s0] sm:$0xe]  ;;  %vm562_vm5 = vmor %vm45_vm0, %vm46_vm1 }
   0xa   :  { %v463_v10 = vld [vmem:[#allocation2 + $0x8] sm:$0xff]  ;;  %147 = vmatpush.bf16.msra.mxu0 %v468_v3  ;;  %v231_v18 = vrot.slane %v32_v7, 5  ;;  %v234_v19 = vrot.slane %v43_v8, 5  ;;  %475 = vmatpush.bf16.msra.mxu3 %v468_v3  ;;  %v51_v20 = vrot.slane %v49_v11, 4  ;;  %v54_v21 = vrot.slane %v52_v12, 5  ;;  %v466_v37 = vld [vmem:[#allocation2 + $0x20] sm:$0xff] }
   0xb   :  { %206 = vmatpush.bf16.msra.mxu1 %v464_v4  ;;  %v471_v15 = vld [vmem:[#allocation2 + $0x48] sm:$0xff]  ;;  %v60_v22 = vrot.slane %v58_v13, 5  ;;  %v64_v23 = vrot.slane %v62_v14, 4  ;;  %v70_v26 = vrot.slane %v68_v16, 5  ;;  %v440_v27 = vrot.slane %v220_v17, 9  ;;  %v462_v38 = vld [vmem:[#allocation2] sm:$0xff] }
   0xc   :  { %293 = vmatpush.bf16.msra.mxu2 %v472_v5  ;;  %v33_v25 = vld [vmem:[%s675_s0 + $0xc] sm:$0xf]  ;;  %v233_v28 = vrot.slane %v231_v18, 4  ;;  %v34_v29 = vld [vmem:[%s675_s0 + $0x10] sm:$0xf]  ;;  %v55_v32 = vor.u32 %v54_v21, %v51_v20  ;;  %v470_v43 = vld [vmem:[#allocation2 + $0x40] sm:$0xff] }
   0xd   :  { %v73_v30 = vshrl.u32 %v33_v25, 16  ;;  %v65_v33 = vor.u32 %v64_v23, %v60_v22  ;;  %v44_v34 = vld [vmem:[%s675_s0 + $0x14] sm:$0x1]  ;;  %v76_v35 = vshll.u32 %v33_v25, 16  ;;  %v82_v36 = vshll.u32 %v34_v29, 16  ;;  %v460_v54 = vld [vmem:[%s675_s0] sm:$0xff] }
   0xe   :  { %148 = vmatpush.bf16.msra.mxu0 %v467_v9  ;;  %v232_v39 = vsel %vm550_vm4, %v440_v27, %v231_v18  ;;  %v235_v40 = vsel %vm550_vm4, %v233_v28, %v234_v19  ;;  %v86_v42 = vshrl.u32 %v34_v29, 16  ;;  %476 = vmatpush.bf16.msra.mxu3 %v467_v9  ;;  %v56_v44 = vrot.slane %v55_v32, 4  ;;  %v221_v61 = vld [vmem:[%s675_s0 + $0xc] sm:$0xe]  ;;  %v482_v20 = vld [vmem:[%s677_s2] ss:$0 sm:$0xff] }
   0xf   :  { %207 = vmatpush.bf16.msra.mxu1 %v463_v10  ;;  %v75_v41 = vrot.slane %v73_v30, 4  ;;  %v66_v45 = vrot.slane %v65_v33, 4  ;;  %v252_v46 = vunpack.c.l.b16 %v232_v39  ;;  %v253_v47 = vunpack.c.l.b16 %v235_v40  ;;  %v461_v14 = vld [vmem:[%s675_s0 + $0xc] sm:$0xff] }
  0x10   :  { %294 = vmatpush.bf16.msra.mxu2 %v471_v15  ;;  %v78_v48 = vrot.slane %v76_v35, 5  ;;  %v84_v49 = vrot.slane %v82_v36, 5  ;;  %v88_v50 = vrot.slane %v86_v42, 4  ;;  %v92_v51 = vshll.u32 %v44_v34, 16 }
  0x11   :  { %v61_v52 = vsel %vm562_vm5, %v56_v44, %v60_v22  ;;  %v71_v53 = vsel %vm562_vm5, %v66_v45, %v70_v26  ;;  %v256_v55 = vpack.c.b16 %v253_v47, %v252_v46  ;;  %v238_v62 = vrot.slane %v34_v29, 5 }
  0x12   :  { %149 = vmatpush.bf16.msra.mxu0 %v466_v37  ;;  %v105_v56 = vunpack.c.l.b16 %v61_v52  ;;  %v106_v57 = vunpack.c.l.b16 %v71_v53  ;;  %v79_v58 = vor.u32 %v78_v48, %v75_v41  ;;  %v89_v59 = vor.u32 %v88_v50, %v84_v49  ;;  %477 = vmatpush.bf16.msra.mxu3 %v466_v37 }
  0x13   :  { %208 = vmatpush.bf16.msra.mxu1 %v462_v38  ;;  %v94_v60 = vrot.slane %v92_v51, 5  ;;  %v441_v4 = vrot.slane %v221_v61, 9  ;;  %v240_v7 = vrot.slane %v238_v62, 4  ;;  %v241_v8 = vrot.slane %v44_v34, 5 }
  0x14   :  { %295 = vmatpush.bf16.msra.mxu2 %v470_v43  ;;  %v109_v63 = vpack.c.b16 %v106_v57, %v105_v56  ;;  %v80_v0 = vrot.slane %v79_v58, 4  ;;  %v90_v1 = vrot.slane %v89_v59, 4  ;;  %v512_v16 = vmov 0  }
  0x15   :  { %v239_v10 = vsel %vm550_vm4, %v441_v4, %v238_v62  ;;  %v242_v11 = vsel %vm550_vm4, %v240_v7, %v241_v8  ;;  %323 = vst [vmem:[%s678_s3] sm:$0xf] %v512_v16  ;;  %vm373_vm8 = vsmask.f32 7938  ;;  %vm329_vm10 = vsmask.f32 256 }
  0x16   :  { %438 = vmatmul.msk.bf16.vlgmr.msra.gmra.mxu1 %vm135_vm6, %v460_v54  ;;  %412 = vmatmul.msk.bf16.vlgmr.msra.gmra.mxu0 %vm135_vm6, %v109_v63  ;;  %v85_v2 = vsel %vm562_vm5, %v80_v0, %v84_v49  ;;  %v95_v3 = vsel %vm562_vm5, %v90_v1, %v94_v60  ;;  %v254_v12 = vunpack.c.l.b16 %v239_v10  ;;  %v255_v13 = vunpack.c.l.b16 %v242_v11  ;;  %324 = vst [vmem:[%s678_s3 + $0x4] sm:$0xf] %v512_v16  ;;  %vm621_vm9 = vmand %vm372_vm7, %vm373_vm8 }
  0x17   :  { %458 = vmatmul.msk.bf16.vlgmr.msra.gmra.mxu2 %vm135_vm6, %v256_v55  ;;  %v107_v5 = vunpack.c.l.b16 %v85_v2  ;;  %v108_v6 = vunpack.c.l.b16 %v95_v3  ;;  %325 = vst [vmem:[%s678_s3 + $0x8] sm:$0x1] %v512_v16  ;;  %vm330_vm11 = vsmask.f32 4368  ;;  %vm379_vm12 = vcmask 1040384  }
  0x18   :  { %v257_v15 = vpack.c.b16 %v255_v13, %v254_v12  ;;  %326 = vst [vmem:[%s678_s3 + $0xc] sm:$0xf] %v512_v16  ;;  %vm633_vm13 = vmor %vm329_vm10, %vm330_vm11 }
  0x19   :  { %v110_v9 = vpack.c.b16 %v108_v6, %v107_v5  ;;  %327 = vst [vmem:[%s678_s3 + $0x10] sm:$0xf] %v512_v16  ;;  %vm637_vm14 = vmand %vm379_vm12, %vm329_vm10 }
  0x1a   :  { %328 = vst [vmem:[%s678_s3 + $0x14] sm:$0x1] %v512_v16 }
  0x1b   :  { %413 = vmatmul.msk.bf16.vlgmr.msra.gmra.mxu3 %vm135_vm6, %v110_v9 }
  0x1c   :  { %v375_v34 = vld [vmem:[%s678_s3] sm:$0xf] }
  0x1e   :  { %v381_v49 = vld [vmem:[%s678_s3 + $0x8] sm:$0x1] }
  0x1f   :  { %v384_v1 = vld [vmem:[%s678_s3 + $0xc] sm:$0xf] }
  0x21   :  { %v388_v9 = vld [vmem:[%s678_s3 + $0x14] sm:$0x1] }
  0x26   :  { %439 = vmatmul.msk.bf16.gmra.mxu1 %vm135_vm6, %v461_v14 }
  0x27   :  { %459 = vmatmul.msk.bf16.gmra.mxu2 %vm135_vm6, %v257_v15 }
  0x93   :  { %v210_v17 = vpop.f32.mrf.mxu1  ;;  %v151_v18 = vpop.f32.mrf.mxu0 }
  0x94   :  { %v211_v19 = vadd.f32 %v210_v17, %v151_v18 }
  0x9a   :  { %v297_v21 = vpop.f32.mrf.mxu2 }
  0x9b   :  { %v307_v22 = vadd.f32 %v297_v21, %v211_v19  ;;  %v212_v23 = vpop.f32.mrf.mxu1  ;;  %v153_v25 = vpop.f32.mrf.mxu0 }
  0x9c   :  { %v213_v28 = vadd.f32 %v212_v23, %v153_v25 }
  0x9d   :  { %v315_v24 = vadd.f32 %v482_v20, %v307_v22 }
  0x9e   :  { %v156_v38 = vpop.f32.mrf.mxu3 }
  0x9f   :  { %v319_v26 = vpack.c.bf16 %v315_v24, %v315_v24 }
  0xa1   :  { %v333_v27 = vshrl.u32 %v319_v26, 16  ;;  %v336_v31 = vshll.u32 %v319_v26, 16 }
  0xa2   :  { %v299_v29 = vpop.f32.mrf.mxu2 }
  0xa3   :  { %v335_v30 = vrot.slane %v333_v27, 7  ;;  %v308_v32 = vadd.f32 %v299_v29, %v213_v28  ;;  %v215_v35 = vpop.f32.mrf.mxu1 }
  0xa4   :  { %v216_v41 = vadd.f32 %v215_v35, %v156_v38 }
  0xa5   :  { %v338_v36 = vor.u32 %v336_v31, %v335_v30  ;;  %v316_v37 = vadd.f32 %v482_v20, %v308_v32  ;;  %v339_v50 = vrot.slane %v335_v30, 4 }
  0xa6   :  { %v158_v58 = vpop.f32.mrf.mxu3 }
  0xa7   :  { %v376_v39 = vsel %vm621_vm9, %v338_v36, %v375_v34  ;;  %v320_v40 = vpack.c.bf16 %v316_v37, %v316_v37 }
  0xa8   :  { %377 = vst [vmem:[%s678_s3] sm:$0xf] %v376_v39 }
  0xa9   :  { %v341_v42 = vshrl.u32 %v320_v40, 16  ;;  %v344_v46 = vshll.u32 %v320_v40, 16 }
  0xaa   :  { %v302_v43 = vpop.f32.mrf.mxu2 }
  0xab   :  { %v343_v45 = vrot.slane %v341_v42, 7  ;;  %v309_v47 = vadd.f32 %v302_v43, %v216_v41  ;;  %v217_v54 = vpop.f32.mrf.mxu1 }
  0xac   :  { %v218_v60 = vadd.f32 %v217_v54, %v158_v58 }
  0xad   :  { %v346_v51 = vor.u32 %v344_v46, %v343_v45  ;;  %v348_v52 = vrot.slane %v343_v45, 4  ;;  %v317_v53 = vadd.f32 %v482_v20, %v309_v47 }
  0xaf   :  { %v347_v55 = vsel %vm633_vm13, %v339_v50, %v346_v51  ;;  %v382_v56 = vsel %vm637_vm14, %v348_v52, %v381_v49  ;;  %v321_v57 = vpack.c.bf16 %v317_v53, %v317_v53 }
  0xb0   :  { %378 = vst [vmem:[%s678_s3 + $0x4] sm:$0xf] %v347_v55 }
  0xb1   :  { %383 = vst [vmem:[%s678_s3 + $0x8] sm:$0x1] %v382_v56  ;;  %v350_v59 = vshrl.u32 %v321_v57, 16  ;;  %v353_v63 = vshll.u32 %v321_v57, 16 }
  0xb2   :  { %v304_v61 = vpop.f32.mrf.mxu2 }
  0xb3   :  { %v352_v62 = vrot.slane %v350_v59, 7  ;;  %v310_v0 = vadd.f32 %v304_v61, %v218_v60 }
  0xb5   :  { %v355_v2 = vor.u32 %v353_v63, %v352_v62  ;;  %v318_v3 = vadd.f32 %v482_v20, %v310_v0  ;;  %v356_v10 = vrot.slane %v352_v62, 4 }
  0xb7   :  { %v385_v4 = vsel %vm621_vm9, %v355_v2, %v384_v1  ;;  %v322_v5 = vpack.c.bf16 %v318_v3, %v318_v3 }
  0xb8   :  { %386 = vst [vmem:[%s678_s3 + $0xc] sm:$0xf] %v385_v4 }
  0xb9   :  { %v358_v6 = vshrl.u32 %v322_v5, 16  ;;  %v361_v8 = vshll.u32 %v322_v5, 16 }
  0xbb   :  { %v360_v7 = vrot.slane %v358_v6, 7 }
  0xbd   :  { %v363_v11 = vor.u32 %v361_v8, %v360_v7  ;;  %v365_v12 = vrot.slane %v360_v7, 4 }
  0xbf   :  { %v364_v13 = vsel %vm633_vm13, %v356_v10, %v363_v11  ;;  %v389_v14 = vsel %vm637_vm14, %v365_v12, %v388_v9 }
  0xc0   :  { %387 = vst [vmem:[%s678_s3 + $0x10] sm:$0xf] %v364_v13 }
  0xc1   :  { %390 = vst [vmem:[%s678_s3 + $0x14] sm:$0x1] %v389_v14 }
  0xc2   :  { %395 = vsyncpa [#allocation3], 1 }

// kernel: crnn_forward.8
= control target key start
LH: loop header
LB: loop body
LE: loop exit
PB: predicated region body
PF: predicated region fallthrough
CT: control target
= control target key end

     0   :  { %vm36_vm0 = vsmask.f32 3328  ;;  %vm37_vm1 = vsmask.f32 7440  ;;  %vm264_vm2 = vcmask 1042432   ;;  %vm265_vm3 = vcmask 1046532   ;;  %s761_s1 = inlined_call_operand.vmem [shape: bf16[3,128,128], index: 1, kind: input, shape index: {}]   ;;  %s762_s0 = inlined_call_operand.vmem [shape: bf16[2,18,128], index: 0, kind: input, shape index: {}]   ;;  %s763_s2 = inlined_call_operand.vmem [shape: f32[1,128], index: 2, kind: input, shape index: {}]   ;;  %s764_s3 = inlined_call_operand.vmem [shape: bf16[2,16,128], index: 3, kind: output, shape index: {}]  }
   0x1   :  { %v552_v0 = vld [vmem:[%s761_s1 + $0x78] sm:$0xff]  ;;  %v551_v3 = vld [vmem:[%s761_s1 + $0x70] sm:$0xff]  ;;  %v550_v6 = vld [vmem:[%s761_s1 + $0x68] sm:$0xff] }
   0x2   :  { %v544_v1 = vld [vmem:[%s761_s1 + $0x38] sm:$0xff]  ;;  %160 = vmatpush.bf16.msra.mxu0 %v552_v0  ;;  %v543_v4 = vld [vmem:[%s761_s1 + $0x30] sm:$0xff]  ;;  %572 = vmatpush.bf16.msra.mxu3 %v552_v0  ;;  %v542_v7 = vld [vmem:[%s761_s1 + $0x28] sm:$0xff] }
   0x3   :  { %v560_v2 = vld [vmem:[%s761_s1 + $0xb8] sm:$0xff]  ;;  %239 = vmatpush.bf16.msra.mxu1 %v544_v1  ;;  %v559_v5 = vld [vmem:[%s761_s1 + $0xb0] sm:$0xff]  ;;  %v558_v8 = vld [vmem:[%s761_s1 + $0xa8] sm:$0xff] }
   0x4   :  { %354 = vmatpush.bf16.msra.mxu2 %v560_v2  ;;  %v14_v9 = vld [vmem:[%s762_s0] sm:$0xf]  ;;  %v634_v10 = vld [vmem:[%s762_s0 + $0x4] sm:$0xf]  ;;  %v650_v18 = vld [vmem:[%s762_s0 + $0x8] sm:$0x1] }
   0x5   :  { %v549_v11 = vld [vmem:[%s761_s1 + $0x60] sm:$0xff]  ;;  %v40_v12 = vshrl.u32 %v14_v9, 16  ;;  %v43_v13 = vshll.u32 %v14_v9, 16  ;;  %v49_v14 = vshll.u32 %v634_v10, 16  ;;  %v53_v15 = vshrl.u32 %v634_v10, 16  ;;  %v548_v30 = vld [vmem:[%s761_s1 + $0x58] sm:$0xff]  ;;  %vm692_vm4 = vmor %vm36_vm0, %vm37_vm1 }
   0x6   :  { %161 = vmatpush.bf16.msra.mxu0 %v551_v3  ;;  %573 = vmatpush.bf16.msra.mxu3 %v551_v3  ;;  %v541_v16 = vld [vmem:[%s761_s1 + $0x20] sm:$0xff]  ;;  %v16_v23 = vld [vmem:[%s762_s0 + $0xc] sm:$0xf]  ;;  %v660_v24 = vld [vmem:[%s762_s0 + $0x10] sm:$0xf]  ;;  %v59_v26 = vshll.u32 %v650_v18, 16 }
   0x7   :  { %240 = vmatpush.bf16.msra.mxu1 %v543_v4  ;;  %v557_v17 = vld [vmem:[%s761_s1 + $0xa0] sm:$0xff]  ;;  %v42_v19 = vrot.slane %v40_v12, 4  ;;  %v45_v20 = vrot.slane %v43_v13, 5  ;;  %v652_v21 = vrot.slane %v49_v14, 5  ;;  %v55_v22 = vrot.slane %v53_v15, 4  ;;  %v540_v31 = vld [vmem:[%s761_s1 + $0x18] sm:$0xff]  ;;  %vm701_vm5 = vmor %vm264_vm2, %vm265_vm3 }
   0x8   :  { %355 = vmatpush.bf16.msra.mxu2 %v559_v5  ;;  %v64_v25 = vshrl.u32 %v16_v23, 16  ;;  %v666_v27 = vld [vmem:[%s762_s0 + $0x14] sm:$0x1]  ;;  %v67_v28 = vshll.u32 %v16_v23, 16  ;;  %v73_v29 = vshll.u32 %v660_v24, 16  ;;  %v77_v36 = vshrl.u32 %v660_v24, 16 }
   0x9   :  { %v46_v32 = vor.u32 %v45_v20, %v42_v19  ;;  %v56_v33 = vor.u32 %v55_v22, %v652_v21  ;;  %v258_v34 = vld [vmem:[%s762_s0] sm:$0xe]  ;;  %v556_v37 = vld [vmem:[%s761_s1 + $0x98] sm:$0xff]  ;;  %v269_v38 = vrot.slane %v634_v10, 5  ;;  %v83_v42 = vshll.u32 %v666_v27, 16  ;;  %v547_v45 = vld [vmem:[%s761_s1 + $0x50] sm:$0xff] }
   0xa   :  { %162 = vmatpush.bf16.msra.mxu0 %v550_v6  ;;  %574 = vmatpush.bf16.msra.mxu3 %v550_v6  ;;  %v66_v35 = vrot.slane %v64_v25, 4  ;;  %v69_v39 = vrot.slane %v67_v28, 5  ;;  %v75_v40 = vrot.slane %v73_v29, 5  ;;  %v79_v41 = vrot.slane %v77_v36, 4  ;;  %v539_v46 = vld [vmem:[%s761_s1 + $0x10] sm:$0xff]  ;;  %v546_v59 = vld [vmem:[%s761_s1 + $0x48] sm:$0xff] }
   0xb   :  { %241 = vmatpush.bf16.msra.mxu1 %v542_v7  ;;  %v61_v43 = vrot.slane %v59_v26, 5  ;;  %v485_v44 = vrot.slane %v258_v34, 9  ;;  %v47_v48 = vrot.slane %v46_v32, 4  ;;  %v57_v49 = vrot.slane %v56_v33, 4  ;;  %v555_v52 = vld [vmem:[%s761_s1 + $0x90] sm:$0xff]  ;;  %v538_v60 = vld [vmem:[%s761_s1 + $0x8] sm:$0xff] }
   0xc   :  { %356 = vmatpush.bf16.msra.mxu2 %v558_v8  ;;  %v70_v50 = vor.u32 %v69_v39, %v66_v35  ;;  %v80_v51 = vor.u32 %v79_v41, %v75_v40  ;;  %v271_v54 = vrot.slane %v269_v38, 4  ;;  %v272_v55 = vrot.slane %v650_v18, 5  ;;  %v554_v0 = vld [vmem:[%s761_s1 + $0x88] sm:$0xff]  ;;  %v545_v6 = vld [vmem:[%s761_s1 + $0x40] sm:$0xff] }
   0xd   :  { %v85_v56 = vrot.slane %v83_v42, 5  ;;  %v52_v61 = vsel %vm692_vm4, %v47_v48, %v652_v21  ;;  %v62_v62 = vsel %vm692_vm4, %v57_v49, %v61_v43  ;;  %v270_v63 = vsel %vm701_vm5, %v485_v44, %v269_v38  ;;  %v537_v7 = vld [vmem:[%s761_s1] sm:$0xff]  ;;  %v259_v18 = vld [vmem:[%s762_s0 + $0xc] sm:$0xe] }
   0xe   :  { %163 = vmatpush.bf16.msra.mxu0 %v549_v11  ;;  %575 = vmatpush.bf16.msra.mxu3 %v549_v11  ;;  %v71_v57 = vrot.slane %v70_v50, 4  ;;  %v81_v58 = vrot.slane %v80_v51, 4  ;;  %v273_v1 = vsel %vm701_vm5, %v271_v54, %v272_v55  ;;  %v104_v4 = vunpack.c.l.b16 %v52_v61  ;;  %v553_v12 = vld [vmem:[%s761_s1 + $0x80] sm:$0xff]  ;;  %v536_v26 = vld [vmem:[%s762_s0 + $0xc] sm:$0xff] }
   0xf   :  { %242 = vmatpush.bf16.msra.mxu1 %v541_v16  ;;  %v105_v5 = vunpack.c.l.b16 %v62_v62  ;;  %v298_v8 = vunpack.c.l.b16 %v270_v63  ;;  %v299_v9 = vunpack.c.l.b16 %v273_v1  ;;  %v535_v14 = vld [vmem:[%s762_s0] sm:$0xff]  ;;  %v486_v19 = vrot.slane %v259_v18, 9 }
  0x10   :  { %357 = vmatpush.bf16.msra.mxu2 %v557_v17  ;;  %v76_v2 = vsel %vm692_vm4, %v71_v57, %v75_v40  ;;  %v86_v3 = vsel %vm692_vm4, %v81_v58, %v85_v56  ;;  %v276_v17 = vrot.slane %v660_v24, 5  ;;  %v279_v21 = vrot.slane %v666_v27, 5  ;;  %v580_v35 = vld [vmem:[%s763_s2] ss:$0 sm:$0xff] }
  0x11   :  { %v106_v10 = vunpack.c.l.b16 %v76_v2  ;;  %v107_v11 = vunpack.c.l.b16 %v86_v3  ;;  %v108_v13 = vpack.c.b16 %v105_v5, %v104_v4  ;;  %v302_v15 = vpack.c.b16 %v299_v9, %v298_v8 }
  0x12   :  { %164 = vmatpush.bf16.msra.mxu0 %v548_v30  ;;  %576 = vmatpush.bf16.msra.mxu3 %v548_v30  ;;  %v278_v20 = vrot.slane %v276_v17, 4  ;;  %v277_v22 = vsel %vm701_vm5, %v486_v19, %v276_v17 }
  0x13   :  { %243 = vmatpush.bf16.msra.mxu1 %v540_v31  ;;  %v109_v16 = vpack.c.b16 %v107_v11, %v106_v10  ;;  %v300_v25 = vunpack.c.l.b16 %v277_v22 }
  0x14   :  { %358 = vmatpush.bf16.msra.mxu2 %v556_v37  ;;  %v280_v23 = vsel %vm701_vm5, %v278_v20, %v279_v21 }
  0x15   :  { %v301_v24 = vunpack.c.l.b16 %v280_v23 }
  0x16   :  { %165 = vmatpush.bf16.msra.mxu0 %v547_v45  ;;  %577 = vmatpush.bf16.msra.mxu3 %v547_v45 }
  0x17   :  { %244 = vmatpush.bf16.msra.mxu1 %v539_v46  ;;  %v303_v28 = vpack.c.b16 %v301_v24, %v300_v25 }
  0x18   :  { %359 = vmatpush.bf16.msra.mxu2 %v555_v52 }
  0x1a   :  { %166 = vmatpush.bf16.msra.mxu0 %v546_v59  ;;  %578 = vmatpush.bf16.msra.mxu3 %v546_v59 }
  0x1b   :  { %245 = vmatpush.bf16.msra.mxu1 %v538_v60 }
  0x1c   :  { %360 = vmatpush.bf16.msra.mxu2 %v554_v0 }
  0x1e   :  { %167 = vmatpush.bf16.msra.mxu0 %v545_v6  ;;  %579 = vmatpush.bf16.msra.mxu3 %v545_v6 }
  0x1f   :  { %246 = vmatpush.bf16.msra.mxu1 %v537_v7 }
  0x20   :  { %361 = vmatpush.bf16.msra.mxu2 %v553_v12 }
  0x21   :  { %168 = vmatmul.bf16.vlgmr.msra.gmra.mxu0 %v108_v13  ;;  %173 = vmatmul.bf16.vlgmr.msra.gmra.mxu3 %v109_v16 }
  0x22   :  { %247 = vmatmul.bf16.vlgmr.msra.gmra.mxu1 %v535_v14 }
  0x23   :  { %362 = vmatmul.bf16.vlgmr.msra.gmra.mxu2 %v302_v15 }
  0x32   :  { %252 = vmatmul.bf16.gmra.mxu1 %v536_v26 }
  0x33   :  { %367 = vmatmul.bf16.gmra.mxu2 %v303_v28 }
  0x9e   :  { %v169_v30 = vpop.f32.mrf.mxu0 }
  0x9f   :  { %v248_v29 = vpop.f32.mrf.mxu1 }
  0xa0   :  { %v249_v27 = vadd.f32 %v248_v29, %v169_v30 }
  0xa4   :  { %v174_v42 = vpop.f32.mrf.mxu3 }
  0xa6   :  { %v363_v31 = vpop.f32.mrf.mxu2  ;;  %v171_v33 = vpop.f32.mrf.mxu0 }
  0xa7   :  { %v250_v32 = vpop.f32.mrf.mxu1  ;;  %v373_v34 = vadd.f32 %v363_v31, %v249_v27 }
  0xa8   :  { %v251_v36 = vadd.f32 %v250_v32, %v171_v33 }
  0xa9   :  { %v381_v40 = vadd.f32 %v580_v35, %v373_v34 }
  0xac   :  { %v176_v47 = vpop.f32.mrf.mxu3 }
  0xae   :  { %v365_v37 = vpop.f32.mrf.mxu2 }
  0xaf   :  { %v374_v38 = vadd.f32 %v365_v37, %v251_v36  ;;  %v253_v39 = vpop.f32.mrf.mxu1 }
  0xb0   :  { %v254_v45 = vadd.f32 %v253_v39, %v174_v42 }
  0xb1   :  { %v382_v41 = vadd.f32 %v580_v35, %v374_v38 }
  0xb3   :  { %v564_v43 = vpack.c.bf16 %v382_v41, %v381_v40 }
  0xb5   :  { %565 = vst [vmem:[%s764_s3] sm:$0xff] %v564_v43  }
  0xb6   :  { %v368_v44 = vpop.f32.mrf.mxu2 }
  0xb7   :  { %v255_v46 = vpop.f32.mrf.mxu1  ;;  %v375_v48 = vadd.f32 %v368_v44, %v254_v45 }
  0xb8   :  { %v256_v49 = vadd.f32 %v255_v46, %v176_v47 }
  0xb9   :  { %v383_v52 = vadd.f32 %v580_v35, %v375_v48 }
  0xbe   :  { %v370_v50 = vpop.f32.mrf.mxu2 }
  0xbf   :  { %v376_v51 = vadd.f32 %v370_v50, %v256_v49 }
  0xc1   :  { %v384_v53 = vadd.f32 %v580_v35, %v376_v51 }
  0xc3   :  { %v569_v54 = vpack.c.bf16 %v384_v53, %v383_v52 }
  0xc5   :  { %571 = vst [vmem:[%s764_s3 + $0x8] sm:$0xff] %v569_v54  }

// kernel: crnn_forward.5
= control target key start
LH: loop header
LB: loop body
LE: loop exit
PB: predicated region body
PF: predicated region fallthrough
CT: control target
= control target key end

     0   :  { %8 = vsyncpa [#allocation3], 0  ;;  %s391_s15 = smov [#allocation2]   ;;  %s392_s17 = smov 64   ;;  %s565_s0 = inlined_call_operand.vmem [shape: bf16[2,18,16], index: 0, kind: input, shape index: {}]   ;;  %s566_s1 = inlined_call_operand.hbm [shape: bf16[3,16,32], index: 1, kind: input, shape index: {}]   ;;  %s567_s2 = inlined_call_operand.vmem [shape: f32[1,32], index: 2, kind: input, shape index: {}]   ;;  %s568_s3 = inlined_call_operand.vmem [shape: bf16[2,18,32], index: 3, kind: output, shape index: {}]  }
   0x1   :  { %s15_s14 = sshll.u32 %s566_s1, 4  ;;  %s17_s16 = sshll.u32 %s391_s15, 4  ;;  %s16_s14 = int_to_ptr.hbm [resolvable:$true] %s15_s14  ;;  %s18_s16 = int_to_ptr.vmem [resolvable:$true] %s17_s16 }
   0x2   :  { %s393_s18 = smov 4  }
   0x3   :  { %23 = dma.hbm_to_vmem [thread:$0]  %s16_s14, 384, %s18_s16, [#allocation3], %s392_s17, %s392_s17, %s393_s18  }
   0x4   :  { %389 = dma.done.wait [#allocation3], 384  }
   0x5   :  { %390 = vsyncadd [#allocation3], 4294966912  ;;  %vm178_vm0 = vcmask 1042432   ;;  %vm179_vm1 = vcmask 1046532   ;;  %v356_v1 = vld [vmem:[#allocation2] sm:$0xff]  ;;  %vm105_vm3 = vcmask 130048  }
   0x6   :  { %vm418_vm2 = vmor %vm178_vm0, %vm179_vm1  ;;  %v354_v2 = vld [vmem:[%s565_s0] sm:$0xff]  ;;  %v358_v3 = vld [vmem:[#allocation2 + $0x10] sm:$0xff]  ;;  %vm39_vm4 = vsmask.f32 3328  ;;  %160 = vmatpush.bf16.msra.mxu1 %v356_v1  ;;  %vm40_vm5 = vsmask.f32 7440 }
   0x7   :  { %v32_v4 = vld [vmem:[%s565_s0 + $0x4] sm:$0xf]  ;;  %v37_v5 = vld [vmem:[%s565_s0 + $0x8] sm:$0x1]  ;;  %v172_v6 = vld [vmem:[%s565_s0] sm:$0xe]  ;;  %223 = vmatpush.bf16.msra.mxu2 %v358_v3 }
   0x8   :  { %v346_v7 = vrot.slane %v172_v6, 9  ;;  %v183_v8 = vrot.slane %v32_v4, 5  ;;  %v186_v9 = vrot.slane %v37_v5, 5  ;;  %v357_v10 = vld [vmem:[#allocation2 + $0x8] sm:$0xff]  ;;  %v31_v11 = vld [vmem:[%s565_s0] sm:$0xf]  ;;  %vm453_vm6 = vmor %vm39_vm4, %vm40_vm5 }
   0x9   :  { %v43_v12 = vshrl.u32 %v31_v11, 16  ;;  %v46_v13 = vshll.u32 %v31_v11, 16  ;;  %v52_v14 = vshll.u32 %v32_v4, 16  ;;  %v56_v15 = vshrl.u32 %v32_v4, 16  ;;  %v33_v16 = vld [vmem:[%s565_s0 + $0xc] sm:$0xf]  ;;  %119 = vmatpush.bf16.msra.mxu0 %v357_v10  ;;  %359 = vmatpush.bf16.msra.mxu3 %v357_v10 }
   0xa   :  { %v184_v17 = vsel %vm418_vm2, %v346_v7, %v183_v8  ;;  %v185_v18 = vrot.slane %v183_v8, 4  ;;  %v62_v19 = vshll.u32 %v37_v5, 16  ;;  %v34_v20 = vld [vmem:[%s565_s0 + $0x10] sm:$0xf]  ;;  %344 = vmatmul.msk.bf16.vlgmr.msra.gmra.mxu1 %vm105_vm3, %v354_v2  ;;  %v38_v25 = vld [vmem:[%s565_s0 + $0x14] sm:$0x1] }
   0xb   :  { %v198_v21 = vunpack.c.l.b16 %v184_v17  ;;  %v45_v22 = vrot.slane %v43_v12, 4  ;;  %v48_v23 = vrot.slane %v46_v13, 5  ;;  %v54_v24 = vrot.slane %v52_v14, 5  ;;  %v173_v39 = vld [vmem:[%s565_s0 + $0xc] sm:$0xe] }
   0xc   :  { %v187_v26 = vsel %vm418_vm2, %v185_v18, %v186_v9  ;;  %v58_v27 = vrot.slane %v56_v15, 4  ;;  %v64_v28 = vrot.slane %v62_v19, 5  ;;  %v67_v29 = vshrl.u32 %v33_v16, 16  ;;  %v355_v3 = vld [vmem:[%s565_s0 + $0xc] sm:$0xff]  ;;  %v364_v13 = vld [vmem:[%s567_s2] ss:$0 sm:$0xff] }
   0xd   :  { %v199_v30 = vunpack.c.l.b16 %v187_v26  ;;  %v49_v31 = vor.u32 %v48_v23, %v45_v22  ;;  %v70_v32 = vshll.u32 %v33_v16, 16  ;;  %v76_v33 = vshll.u32 %v34_v20, 16 }
   0xe   :  { %v59_v35 = vor.u32 %v58_v27, %v54_v24  ;;  %v69_v36 = vrot.slane %v67_v29, 4  ;;  %v80_v37 = vshrl.u32 %v34_v20, 16  ;;  %v86_v38 = vshll.u32 %v38_v25, 16 }
   0xf   :  { %v202_v40 = vpack.c.b16 %v199_v30, %v198_v21  ;;  %v50_v41 = vrot.slane %v49_v31, 4  ;;  %v72_v42 = vrot.slane %v70_v32, 5  ;;  %v78_v43 = vrot.slane %v76_v33, 5 }
  0x10   :  { %v60_v44 = vrot.slane %v59_v35, 4  ;;  %v82_v45 = vrot.slane %v80_v37, 4  ;;  %v88_v46 = vrot.slane %v86_v38, 5  ;;  %v347_v49 = vrot.slane %v173_v39, 9 }
  0x11   :  { %352 = vmatmul.msk.bf16.vlgmr.msra.gmra.mxu2 %vm105_vm3, %v202_v40  ;;  %v55_v47 = vsel %vm453_vm6, %v50_v41, %v54_v24  ;;  %v73_v48 = vor.u32 %v72_v42, %v69_v36  ;;  %v190_v50 = vrot.slane %v34_v20, 5  ;;  %v193_v54 = vrot.slane %v38_v25, 5 }
  0x12   :  { %v65_v51 = vsel %vm453_vm6, %v60_v44, %v64_v28  ;;  %v93_v52 = vunpack.c.l.b16 %v55_v47  ;;  %v83_v53 = vor.u32 %v82_v45, %v78_v43  ;;  %vm251_vm7 = vcmask 257024  }
  0x13   :  { %v94_v55 = vunpack.c.l.b16 %v65_v51  ;;  %v74_v56 = vrot.slane %v73_v48, 4  ;;  %v192_v57 = vrot.slane %v190_v50, 4  ;;  %v191_v63 = vsel %vm418_vm2, %v347_v49, %v190_v50 }
  0x14   :  { %v84_v58 = vrot.slane %v83_v53, 4  ;;  %v200_v5 = vunpack.c.l.b16 %v191_v63  ;;  %v394_v0 = vmov 0   ;;  %vm254_vm8 = vcmask 253952  }
  0x15   :  { %v97_v59 = vpack.c.b16 %v94_v55, %v93_v52  ;;  %v79_v60 = vsel %vm453_vm6, %v74_v56, %v78_v43  ;;  %v194_v1 = vsel %vm418_vm2, %v192_v57, %v193_v54  ;;  %252 = vst.msk [vmem:[%s568_s3] sm:$0xf] %vm251_vm7, %v394_v0  ;;  %vm303_vm9 = vsmask.f32 7938 }
  0x16   :  { %v89_v61 = vsel %vm453_vm6, %v84_v58, %v88_v46  ;;  %v95_v62 = vunpack.c.l.b16 %v79_v60  ;;  %v201_v6 = vunpack.c.l.b16 %v194_v1  ;;  %253 = vst.msk [vmem:[%s568_s3 + $0x4] sm:$0xf] %vm251_vm7, %v394_v0  ;;  %vm508_vm10 = vmand %vm251_vm7, %vm303_vm9  ;;  %vm259_vm11 = vsmask.f32 256 }
  0x17   :  { %330 = vmatmul.msk.bf16.vlgmr.msra.gmra.mxu0 %vm105_vm3, %v97_v59  ;;  %v96_v2 = vunpack.c.l.b16 %v89_v61  ;;  %256 = vst.msk [vmem:[%s568_s3 + $0xc] sm:$0xf] %vm251_vm7, %v394_v0  ;;  %vm260_vm12 = vsmask.f32 4368  ;;  %vm525_vm14 = vmand %vm254_vm8, %vm259_vm11 }
  0x18   :  { %v203_v7 = vpack.c.b16 %v201_v6, %v200_v5  ;;  %257 = vst.msk [vmem:[%s568_s3 + $0x10] sm:$0xf] %vm251_vm7, %v394_v0  ;;  %vm520_vm13 = vmor %vm259_vm11, %vm260_vm12 }
  0x19   :  { %v98_v4 = vpack.c.b16 %v96_v2, %v95_v62  ;;  %255 = vst.msk [vmem:[%s568_s3 + $0x8] sm:$0x1] %vm254_vm8, %v394_v0 }
  0x1a   :  { %345 = vmatmul.msk.bf16.gmra.mxu1 %vm105_vm3, %v355_v3  ;;  %258 = vst.msk [vmem:[%s568_s3 + $0x14] sm:$0x1] %vm254_vm8, %v394_v0 }
  0x1b   :  { %331 = vmatmul.msk.bf16.vlgmr.msra.gmra.mxu3 %vm105_vm3, %v98_v4 }
  0x1c   :  { %v305_v27 = vld [vmem:[%s568_s3] sm:$0xf] }
  0x1e   :  { %v314_v56 = vld [vmem:[%s568_s3 + $0xc] sm:$0xf] }
  0x20   :  { %v311_v41 = vld [vmem:[%s568_s3 + $0x8] sm:$0x1] }
  0x21   :  { %353 = vmatmul.msk.bf16.gmra.mxu2 %vm105_vm3, %v203_v7  ;;  %v318_v1 = vld [vmem:[%s568_s3 + $0x14] sm:$0x1] }
  0x87   :  { %v162_v8 = vpop.f32.mrf.mxu1 }
  0x8f   :  { %v164_v9 = vpop.f32.mrf.mxu1 }
  0x94   :  { %v121_v10 = vpop.f32.mrf.mxu0  ;;  %v225_v11 = vpop.f32.mrf.mxu2 }
  0x95   :  { %v163_v12 = vadd.f32 %v162_v8, %v121_v10 }
  0x97   :  { %v235_v14 = vadd.f32 %v225_v11, %v163_v12  ;;  %v167_v22 = vpop.f32.mrf.mxu1 }
  0x99   :  { %v243_v15 = vadd.f32 %v364_v13, %v235_v14 }
  0x9b   :  { %v247_v16 = vpack.c.bf16 %v243_v15, %v243_v15 }
  0x9c   :  { %v123_v17 = vpop.f32.mrf.mxu0  ;;  %v227_v18 = vpop.f32.mrf.mxu2 }
  0x9d   :  { %v263_v19 = vshrl.u32 %v247_v16, 16  ;;  %v165_v20 = vadd.f32 %v164_v9, %v123_v17  ;;  %v266_v24 = vshll.u32 %v247_v16, 16 }
  0x9e   :  { %v126_v21 = vpop.f32.mrf.mxu3 }
  0x9f   :  { %v265_v23 = vrot.slane %v263_v19, 7  ;;  %v236_v25 = vadd.f32 %v227_v18, %v165_v20  ;;  %v168_v29 = vadd.f32 %v167_v22, %v126_v21  ;;  %v169_v43 = vpop.f32.mrf.mxu1 }
  0xa1   :  { %v268_v28 = vor.u32 %v266_v24, %v265_v23  ;;  %v244_v30 = vadd.f32 %v364_v13, %v236_v25  ;;  %v269_v44 = vrot.slane %v265_v23, 4 }
  0xa3   :  { %v306_v31 = vsel %vm508_vm10, %v268_v28, %v305_v27  ;;  %v248_v32 = vpack.c.bf16 %v244_v30, %v244_v30 }
  0xa4   :  { %307 = vst [vmem:[%s568_s3] sm:$0xf] %v306_v31  ;;  %v230_v33 = vpop.f32.mrf.mxu2 }
  0xa5   :  { %v271_v34 = vshrl.u32 %v248_v32, 16  ;;  %v237_v35 = vadd.f32 %v230_v33, %v168_v29  ;;  %v274_v38 = vshll.u32 %v248_v32, 16 }
  0xa6   :  { %v128_v42 = vpop.f32.mrf.mxu3 }
  0xa7   :  { %v273_v37 = vrot.slane %v271_v34, 7  ;;  %v245_v39 = vadd.f32 %v364_v13, %v237_v35  ;;  %v170_v50 = vadd.f32 %v169_v43, %v128_v42 }
  0xa9   :  { %v276_v45 = vor.u32 %v274_v38, %v273_v37  ;;  %v278_v46 = vrot.slane %v273_v37, 4  ;;  %v249_v47 = vpack.c.bf16 %v245_v39, %v245_v39 }
  0xab   :  { %v277_v48 = vsel %vm520_vm13, %v269_v44, %v276_v45  ;;  %v312_v49 = vsel %vm525_vm14, %v278_v46, %v311_v41  ;;  %v280_v51 = vshrl.u32 %v249_v47, 16  ;;  %v283_v54 = vshll.u32 %v249_v47, 16 }
  0xac   :  { %308 = vst.msk [vmem:[%s568_s3 + $0x4] sm:$0xf] %vm251_vm7, %v277_v48  ;;  %v232_v52 = vpop.f32.mrf.mxu2 }
  0xad   :  { %313 = vst [vmem:[%s568_s3 + $0x8] sm:$0x1] %v312_v49  ;;  %v282_v53 = vrot.slane %v280_v51, 7  ;;  %v238_v55 = vadd.f32 %v232_v52, %v170_v50 }
  0xaf   :  { %v285_v57 = vor.u32 %v283_v54, %v282_v53  ;;  %v246_v58 = vadd.f32 %v364_v13, %v238_v55  ;;  %v286_v2 = vrot.slane %v282_v53, 4 }
  0xb1   :  { %v315_v59 = vsel %vm508_vm10, %v285_v57, %v314_v56  ;;  %v250_v60 = vpack.c.bf16 %v246_v58, %v246_v58 }
  0xb2   :  { %316 = vst [vmem:[%s568_s3 + $0xc] sm:$0xf] %v315_v59 }
  0xb3   :  { %v288_v61 = vshrl.u32 %v250_v60, 16  ;;  %v291_v63 = vshll.u32 %v250_v60, 16 }
  0xb5   :  { %v290_v62 = vrot.slane %v288_v61, 7 }
  0xb7   :  { %v293_v3 = vor.u32 %v291_v63, %v290_v62  ;;  %v295_v4 = vrot.slane %v290_v62, 4 }
  0xb9   :  { %v294_v5 = vsel %vm520_vm13, %v286_v2, %v293_v3  ;;  %v319_v6 = vsel %vm525_vm14, %v295_v4, %v318_v1 }
  0xba   :  { %317 = vst.msk [vmem:[%s568_s3 + $0x10] sm:$0xf] %vm251_vm7, %v294_v5 }
  0xbb   :  { %320 = vst [vmem:[%s568_s3 + $0x14] sm:$0x1] %v319_v6 }
  0xbc   :  { %325 = vsyncpa [#allocation3], 1 }

// kernel: crnn_forward.6
= control target key start
LH: loop header
LB: loop body
LE: loop exit
PB: predicated region body
PF: predicated region fallthrough
CT: control target
= control target key end

     0   :  { %8 = vsyncpa [#allocation3], 0  ;;  %s431_s15 = smov [#allocation2]   ;;  %s432_s17 = smov 64   ;;  %s605_s0 = inlined_call_operand.vmem [shape: bf16[2,18,32], index: 0, kind: input, shape index: {}]   ;;  %s606_s1 = inlined_call_operand.hbm [shape: bf16[3,32,64], index: 1, kind: input, shape index: {}]   ;;  %s607_s2 = inlined_call_operand.vmem [shape: f32[1,64], index: 2, kind: input, shape index: {}]   ;;  %s608_s3 = inlined_call_operand.vmem [shape: bf16[2,18,64], index: 3, kind: output, shape index: {}]  }
   0x1   :  { %s15_s14 = sshll.u32 %s606_s1, 4  ;;  %s17_s16 = sshll.u32 %s431_s15, 4  ;;  %s16_s14 = int_to_ptr.hbm [resolvable:$true] %s15_s14  ;;  %s18_s16 = int_to_ptr.vmem [resolvable:$true] %s17_s16 }
   0x2   :  { %s433_s18 = smov 4  }
   0x3   :  { %23 = dma.hbm_to_vmem [thread:$0]  %s16_s14, 768, %s18_s16, [#allocation3], %s432_s17, %s432_s17, %s433_s18  }
   0x4   :  { %429 = dma.done.wait [#allocation3], 768  }
   0x5   :  { %430 = vsyncadd [#allocation3], 4294966528  ;;  %vm194_vm0 = vcmask 1042432   ;;  %vm195_vm1 = vcmask 1046532   ;;  %v393_v0 = vld [vmem:[#allocation2 + $0x8] sm:$0xff]  ;;  %v395_v2 = vld [vmem:[#allocation2 + $0x18] sm:$0xff] }
   0x6   :  { %v397_v1 = vld [vmem:[#allocation2 + $0x28] sm:$0xff]  ;;  %v392_v3 = vld [vmem:[#allocation2] sm:$0xff]  ;;  %vm458_vm2 = vmor %vm194_vm0, %vm195_vm1  ;;  %vm41_vm3 = vsmask.f32 3328  ;;  %vm42_vm4 = vsmask.f32 7440  ;;  %175 = vmatpush.bf16.msra.mxu1 %v393_v0  ;;  %128 = vmatpush.bf16.msra.mxu0 %v395_v2 }
   0x7   :  { %v396_v4 = vld [vmem:[#allocation2 + $0x20] sm:$0xff]  ;;  %246 = vmatpush.bf16.msra.mxu2 %v397_v1  ;;  %v39_v7 = vld [vmem:[%s605_s0 + $0x8] sm:$0x1]  ;;  %398 = vmatpush.bf16.msra.mxu3 %v395_v2  ;;  %v394_v12 = vld [vmem:[#allocation2 + $0x10] sm:$0xff]  ;;  %vm115_vm5 = vcmask 261120   ;;  %vm275_vm7 = vcmask 519168  }
   0x8   :  { %v32_v6 = vld [vmem:[%s605_s0 + $0x4] sm:$0xf]  ;;  %v188_v8 = vld [vmem:[%s605_s0] sm:$0xe]  ;;  %v202_v11 = vrot.slane %v39_v7, 5  ;;  %v64_v22 = vshll.u32 %v39_v7, 16  ;;  %vm493_vm6 = vmor %vm41_vm3, %vm42_vm4 }
   0x9   :  { %v378_v9 = vrot.slane %v188_v8, 9  ;;  %v199_v10 = vrot.slane %v32_v6, 5  ;;  %v31_v13 = vld [vmem:[%s605_s0] sm:$0xf]  ;;  %v54_v16 = vshll.u32 %v32_v6, 16  ;;  %v58_v17 = vshrl.u32 %v32_v6, 16 }
   0xa   :  { %v45_v14 = vshrl.u32 %v31_v13, 16  ;;  %v48_v15 = vshll.u32 %v31_v13, 16  ;;  %v33_v18 = vld [vmem:[%s605_s0 + $0xc] sm:$0xf]  ;;  %v390_v19 = vld [vmem:[%s605_s0] sm:$0xff]  ;;  %176 = vmatpush.bf16.msra.mxu1 %v392_v3  ;;  %129 = vmatpush.bf16.msra.mxu0 %v394_v12  ;;  %v66_v31 = vrot.slane %v64_v22, 5 }
   0xb   :  { %v200_v20 = vsel %vm458_vm2, %v378_v9, %v199_v10  ;;  %v201_v21 = vrot.slane %v199_v10, 4  ;;  %v34_v23 = vld [vmem:[%s605_s0 + $0x10] sm:$0xf]  ;;  %247 = vmatpush.bf16.msra.mxu2 %v396_v4  ;;  %v56_v27 = vrot.slane %v54_v16, 5  ;;  %v40_v28 = vld [vmem:[%s605_s0 + $0x14] sm:$0x1]  ;;  %399 = vmatpush.bf16.msra.mxu3 %v394_v12 }
   0xc   :  { %v216_v24 = vunpack.c.l.b16 %v200_v20  ;;  %v47_v25 = vrot.slane %v45_v14, 4  ;;  %v50_v26 = vrot.slane %v48_v15, 5  ;;  %v60_v30 = vrot.slane %v58_v17, 4  ;;  %v189_v42 = vld [vmem:[%s605_s0 + $0xc] sm:$0xe] }
   0xd   :  { %v203_v29 = vsel %vm458_vm2, %v201_v21, %v202_v11  ;;  %v69_v32 = vshrl.u32 %v33_v18, 16  ;;  %v72_v35 = vshll.u32 %v33_v18, 16  ;;  %v78_v36 = vshll.u32 %v34_v23, 16  ;;  %376 = vmatmul.msk.bf16.vlgmr.msra.gmra.mxu1 %vm115_vm5, %v390_v19  ;;  %v391_v9 = vld [vmem:[%s605_s0 + $0xc] sm:$0xff]  ;;  %v404_v16 = vld [vmem:[%s607_s2] ss:$0 sm:$0xff] }
   0xe   :  { %v217_v33 = vunpack.c.l.b16 %v203_v29  ;;  %v51_v34 = vor.u32 %v50_v26, %v47_v25  ;;  %v61_v38 = vor.u32 %v60_v30, %v56_v27  ;;  %v82_v40 = vshrl.u32 %v34_v23, 16 }
   0xf   :  { %v71_v39 = vrot.slane %v69_v32, 4  ;;  %v88_v41 = vshll.u32 %v40_v28, 16  ;;  %v74_v45 = vrot.slane %v72_v35, 5  ;;  %v80_v46 = vrot.slane %v78_v36, 5 }
  0x10   :  { %v220_v43 = vpack.c.b16 %v217_v33, %v216_v24  ;;  %v52_v44 = vrot.slane %v51_v34, 4  ;;  %v62_v47 = vrot.slane %v61_v38, 4  ;;  %v84_v48 = vrot.slane %v82_v40, 4 }
  0x11   :  { %v90_v49 = vrot.slane %v88_v41, 5  ;;  %v75_v51 = vor.u32 %v74_v45, %v71_v39  ;;  %v379_v52 = vrot.slane %v189_v42, 9  ;;  %v206_v53 = vrot.slane %v34_v23, 5 }
  0x12   :  { %388 = vmatmul.msk.bf16.vlgmr.msra.gmra.mxu2 %vm115_vm5, %v220_v43  ;;  %v57_v50 = vsel %vm493_vm6, %v52_v44, %v56_v27  ;;  %v67_v54 = vsel %vm493_vm6, %v62_v47, %v66_v31  ;;  %v85_v56 = vor.u32 %v84_v48, %v80_v46  ;;  %v209_v57 = vrot.slane %v40_v28, 5 }
  0x13   :  { %v97_v55 = vunpack.c.l.b16 %v57_v50  ;;  %v98_v58 = vunpack.c.l.b16 %v67_v54  ;;  %v76_v59 = vrot.slane %v75_v51, 4  ;;  %v208_v60 = vrot.slane %v206_v53, 4 }
  0x14   :  { %v86_v61 = vrot.slane %v85_v56, 4  ;;  %v207_v2 = vsel %vm458_vm2, %v379_v52, %v206_v53  ;;  %v434_v5 = vmov 0   ;;  %vm278_vm8 = vcmask 516096  }
  0x15   :  { %v101_v62 = vpack.c.b16 %v98_v58, %v97_v55  ;;  %v81_v63 = vsel %vm493_vm6, %v76_v59, %v80_v46  ;;  %v210_v3 = vsel %vm458_vm2, %v208_v60, %v209_v57  ;;  %v218_v7 = vunpack.c.l.b16 %v207_v2  ;;  %276 = vst.msk [vmem:[%s608_s3] sm:$0xf] %vm275_vm7, %v434_v5 }
  0x16   :  { %v91_v0 = vsel %vm493_vm6, %v86_v61, %v90_v49  ;;  %v99_v1 = vunpack.c.l.b16 %v81_v63  ;;  %v219_v8 = vunpack.c.l.b16 %v210_v3  ;;  %277 = vst.msk [vmem:[%s608_s3 + $0x4] sm:$0xf] %vm275_vm7, %v434_v5  ;;  %vm327_vm9 = vsmask.f32 7938 }
  0x17   :  { %358 = vmatmul.msk.bf16.vlgmr.msra.gmra.mxu0 %vm115_vm5, %v101_v62  ;;  %v100_v4 = vunpack.c.l.b16 %v91_v0  ;;  %280 = vst.msk [vmem:[%s608_s3 + $0xc] sm:$0xf] %vm275_vm7, %v434_v5  ;;  %vm548_vm10 = vmand %vm275_vm7, %vm327_vm9  ;;  %vm283_vm11 = vsmask.f32 256  ;;  %vm284_vm12 = vsmask.f32 4368 }
  0x18   :  { %v221_v10 = vpack.c.b16 %v219_v8, %v218_v7  ;;  %281 = vst.msk [vmem:[%s608_s3 + $0x10] sm:$0xf] %vm275_vm7, %v434_v5  ;;  %vm560_vm13 = vmor %vm283_vm11, %vm284_vm12 }
  0x19   :  { %v102_v6 = vpack.c.b16 %v100_v4, %v99_v1  ;;  %279 = vst.msk [vmem:[%s608_s3 + $0x8] sm:$0x1] %vm278_vm8, %v434_v5  ;;  %vm565_vm14 = vmand %vm278_vm8, %vm283_vm11 }
  0x1a   :  { %282 = vst.msk [vmem:[%s608_s3 + $0x14] sm:$0x1] %vm278_vm8, %v434_v5 }
  0x1b   :  { %359 = vmatmul.msk.bf16.vlgmr.msra.gmra.mxu3 %vm115_vm5, %v102_v6 }
  0x1c   :  { %v329_v29 = vld [vmem:[%s608_s3] sm:$0xf] }
  0x1d   :  { %377 = vmatmul.msk.bf16.gmra.mxu1 %vm115_vm5, %v391_v9 }
  0x1e   :  { %v338_v59 = vld [vmem:[%s608_s3 + $0xc] sm:$0xf] }
  0x20   :  { %v335_v44 = vld [vmem:[%s608_s3 + $0x8] sm:$0x1] }
  0x21   :  { %v342_v3 = vld [vmem:[%s608_s3 + $0x14] sm:$0x1] }
  0x22   :  { %389 = vmatmul.msk.bf16.gmra.mxu2 %vm115_vm5, %v221_v10 }
  0x8a   :  { %v178_v11 = vpop.f32.mrf.mxu1 }
  0x92   :  { %v180_v12 = vpop.f32.mrf.mxu1 }
  0x94   :  { %v131_v13 = vpop.f32.mrf.mxu0 }
  0x95   :  { %v249_v14 = vpop.f32.mrf.mxu2  ;;  %v179_v15 = vadd.f32 %v178_v11, %v131_v13 }
  0x97   :  { %v259_v17 = vadd.f32 %v249_v14, %v179_v15 }
  0x99   :  { %v267_v18 = vadd.f32 %v404_v16, %v259_v17 }
  0x9a   :  { %v183_v24 = vpop.f32.mrf.mxu1 }
  0x9b   :  { %v271_v19 = vpack.c.bf16 %v267_v18, %v267_v18 }
  0x9c   :  { %v133_v20 = vpop.f32.mrf.mxu0 }
  0x9d   :  { %v251_v21 = vpop.f32.mrf.mxu2  ;;  %v287_v22 = vshrl.u32 %v271_v19, 16  ;;  %v181_v23 = vadd.f32 %v180_v12, %v133_v20  ;;  %v290_v26 = vshll.u32 %v271_v19, 16 }
  0x9e   :  { %v136_v30 = vpop.f32.mrf.mxu3 }
  0x9f   :  { %v289_v25 = vrot.slane %v287_v22, 7  ;;  %v260_v27 = vadd.f32 %v251_v21, %v181_v23  ;;  %v184_v33 = vadd.f32 %v183_v24, %v136_v30 }
  0xa1   :  { %v292_v31 = vor.u32 %v290_v26, %v289_v25  ;;  %v268_v32 = vadd.f32 %v404_v16, %v260_v27  ;;  %v293_v46 = vrot.slane %v289_v25, 4 }
  0xa2   :  { %v185_v45 = vpop.f32.mrf.mxu1 }
  0xa3   :  { %v330_v34 = vsel %vm548_vm10, %v292_v31, %v329_v29  ;;  %v272_v35 = vpack.c.bf16 %v268_v32, %v268_v32 }
  0xa4   :  { %331 = vst [vmem:[%s608_s3] sm:$0xf] %v330_v34 }
  0xa5   :  { %v254_v36 = vpop.f32.mrf.mxu2  ;;  %v295_v37 = vshrl.u32 %v272_v35, 16  ;;  %v298_v41 = vshll.u32 %v272_v35, 16 }
  0xa6   :  { %v261_v38 = vadd.f32 %v254_v36, %v184_v33  ;;  %v138_v50 = vpop.f32.mrf.mxu3 }
  0xa7   :  { %v297_v40 = vrot.slane %v295_v37, 7  ;;  %v186_v54 = vadd.f32 %v185_v45, %v138_v50 }
  0xa8   :  { %v269_v42 = vadd.f32 %v404_v16, %v261_v38 }
  0xa9   :  { %v300_v47 = vor.u32 %v298_v41, %v297_v40  ;;  %v302_v48 = vrot.slane %v297_v40, 4 }
  0xaa   :  { %v273_v49 = vpack.c.bf16 %v269_v42, %v269_v42 }
  0xab   :  { %v301_v51 = vsel %vm560_vm13, %v293_v46, %v300_v47  ;;  %v336_v52 = vsel %vm565_vm14, %v302_v48, %v335_v44 }
  0xac   :  { %v304_v53 = vshrl.u32 %v273_v49, 16  ;;  %332 = vst.msk [vmem:[%s608_s3 + $0x4] sm:$0xf] %vm275_vm7, %v301_v51  ;;  %v307_v57 = vshll.u32 %v273_v49, 16 }
  0xad   :  { %v256_v55 = vpop.f32.mrf.mxu2  ;;  %337 = vst [vmem:[%s608_s3 + $0x8] sm:$0x1] %v336_v52 }
  0xae   :  { %v306_v56 = vrot.slane %v304_v53, 7  ;;  %v262_v58 = vadd.f32 %v256_v55, %v186_v54 }
  0xb0   :  { %v309_v60 = vor.u32 %v307_v57, %v306_v56  ;;  %v270_v61 = vadd.f32 %v404_v16, %v262_v58  ;;  %v310_v4 = vrot.slane %v306_v56, 4 }
  0xb2   :  { %v339_v62 = vsel %vm548_vm10, %v309_v60, %v338_v59  ;;  %v274_v63 = vpack.c.bf16 %v270_v61, %v270_v61 }
  0xb3   :  { %340 = vst [vmem:[%s608_s3 + $0xc] sm:$0xf] %v339_v62 }
  0xb4   :  { %v312_v0 = vshrl.u32 %v274_v63, 16  ;;  %v315_v2 = vshll.u32 %v274_v63, 16 }
  0xb6   :  { %v314_v1 = vrot.slane %v312_v0, 7 }
  0xb8   :  { %v317_v6 = vor.u32 %v315_v2, %v314_v1  ;;  %v319_v7 = vrot.slane %v314_v1, 4 }
  0xba   :  { %v318_v8 = vsel %vm560_vm13, %v310_v4, %v317_v6  ;;  %v343_v9 = vsel %vm565_vm14, %v319_v7, %v342_v3 }
  0xbb   :  { %341 = vst.msk [vmem:[%s608_s3 + $0x10] sm:$0xf] %vm275_vm7, %v318_v8 }
  0xbc   :  { %344 = vst [vmem:[%s608_s3 + $0x14] sm:$0x1] %v343_v9 }
  0xbd   :  { %349 = vsyncpa [#allocation3], 1 }

// kernel: crnn_forward.9
= control target key start
LH: loop header
LB: loop body
LE: loop exit
PB: predicated region body
PF: predicated region fallthrough
CT: control target
= control target key end

     0   :  { %s3308_s0 = inlined_call_operand.vmem [shape: bf16[32,128], index: 0, kind: input, shape index: {}]   ;;  %s3309_s1 = inlined_call_operand.vmem [shape: bf16[128,256], index: 1, kind: input, shape index: {}]   ;;  %s3310_s2 = inlined_call_operand.vmem [shape: f32[1,256], index: 2, kind: input, shape index: {}]   ;;  %s3311_s3 = inlined_call_operand.vmem [shape: f32[64,256], index: 3, kind: input, shape index: {}]   ;;  %s3312_s4 = inlined_call_operand.vmem [shape: f32[64,2], index: 4, kind: input, shape index: {}]   ;;  %s3313_s5 = inlined_call_operand.vmem [shape: f32[1,2], index: 5, kind: input, shape index: {}]   ;;  %s3314_s6 = inlined_call_operand.hbm [shape: f32[2,2], index: 6, kind: output, shape index: {}]  }
   0x1   :  { %v2125_v0 = vld [vmem:[%s3309_s1 + $0x70] sm:$0xf]  ;;  %v2179_v1 = vld [vmem:[%s3309_s1 + $0x74] sm:$0xf0]  ;;  %v2178_v2 = vld [vmem:[%s3309_s1 + $0x74] sm:$0xf] }
   0x2   :  { %v2126_v3 = vor.u32 %v2179_v1, %v2125_v0  ;;  %v2127_v4 = vld [vmem:[%s3309_s1 + $0x78] sm:$0xf0]  ;;  %v2117_v5 = vld [vmem:[%s3309_s1 + $0x60] sm:$0xf]  ;;  %v2177_v6 = vld [vmem:[%s3309_s1 + $0x64] sm:$0xf0] }
   0x3   :  { %v2130_v7 = vor.u32 %v2178_v2, %v2127_v4  ;;  %v2176_v8 = vld [vmem:[%s3309_s1 + $0x64] sm:$0xf]  ;;  %v2119_v9 = vld [vmem:[%s3309_s1 + $0x68] sm:$0xf0]  ;;  %v2118_v10 = vor.u32 %v2177_v6, %v2117_v5  ;;  %v2109_v12 = vld [vmem:[%s3309_s1 + $0x50] sm:$0xf] }
   0x4   :  { %142 = vmatpush.bf16.msra.mxu0 %v2126_v3  ;;  %v2122_v11 = vor.u32 %v2176_v8, %v2119_v9  ;;  %v2175_v13 = vld [vmem:[%s3309_s1 + $0x54] sm:$0xf0]  ;;  %v2174_v14 = vld [vmem:[%s3309_s1 + $0x54] sm:$0xf]  ;;  %v2111_v15 = vld [vmem:[%s3309_s1 + $0x58] sm:$0xf0] }
   0x5   :  { %161 = vmatpush.bf16.msra.mxu1 %v2130_v7  ;;  %v2110_v16 = vor.u32 %v2175_v13, %v2109_v12  ;;  %v2114_v17 = vor.u32 %v2174_v14, %v2111_v15  ;;  %v2101_v18 = vld [vmem:[%s3309_s1 + $0x40] sm:$0xf]  ;;  %v2173_v19 = vld [vmem:[%s3309_s1 + $0x44] sm:$0xf0]  ;;  %v2172_v20 = vld [vmem:[%s3309_s1 + $0x44] sm:$0xf] }
   0x6   :  { %v2103_v21 = vld [vmem:[%s3309_s1 + $0x48] sm:$0xf0]  ;;  %v2102_v22 = vor.u32 %v2173_v19, %v2101_v18 }
   0x8   :  { %143 = vmatpush.bf16.msra.mxu0 %v2118_v10 }
   0x9   :  { %162 = vmatpush.bf16.msra.mxu1 %v2122_v11 }
   0xc   :  { %144 = vmatpush.bf16.msra.mxu0 %v2110_v16 }
   0xd   :  { %11 = vsyncpa [#allocation4], 0  ;;  %163 = vmatpush.bf16.msra.mxu1 %v2114_v17  ;;  %v2106_v23 = vor.u32 %v2172_v20, %v2103_v21  ;;  %v2093_v24 = vld [vmem:[%s3309_s1 + $0x30] sm:$0xf]  ;;  %v2171_v25 = vld [vmem:[%s3309_s1 + $0x34] sm:$0xf0]  ;;  %v188_v61 = vlaneseq }
   0xe   :  { %v2170_v26 = vld [vmem:[%s3309_s1 + $0x34] sm:$0xf]  ;;  %v2095_v27 = vld [vmem:[%s3309_s1 + $0x38] sm:$0xf0]  ;;  %v2094_v28 = vor.u32 %v2171_v25, %v2093_v24  ;;  %v2085_v30 = vld [vmem:[%s3309_s1 + $0x20] sm:$0xf] }
   0xf   :  { %v2098_v29 = vor.u32 %v2170_v26, %v2095_v27  ;;  %v2169_v31 = vld [vmem:[%s3309_s1 + $0x24] sm:$0xf0]  ;;  %v2168_v32 = vld [vmem:[%s3309_s1 + $0x24] sm:$0xf]  ;;  %v2087_v33 = vld [vmem:[%s3309_s1 + $0x28] sm:$0xf0] }
  0x10   :  { %145 = vmatpush.bf16.msra.mxu0 %v2102_v22  ;;  %v2086_v34 = vor.u32 %v2169_v31, %v2085_v30  ;;  %v2090_v35 = vor.u32 %v2168_v32, %v2087_v33  ;;  %v2077_v36 = vld [vmem:[%s3309_s1 + $0x10] sm:$0xf]  ;;  %v2167_v37 = vld [vmem:[%s3309_s1 + $0x14] sm:$0xf0]  ;;  %v2166_v38 = vld [vmem:[%s3309_s1 + $0x14] sm:$0xf] }
  0x11   :  { %164 = vmatpush.bf16.msra.mxu1 %v2106_v23  ;;  %v2079_v39 = vld [vmem:[%s3309_s1 + $0x18] sm:$0xf0]  ;;  %v2078_v40 = vor.u32 %v2167_v37, %v2077_v36  ;;  %v2069_v42 = vld [vmem:[%s3309_s1] sm:$0xf]  ;;  %v2165_v43 = vld [vmem:[%s3309_s1 + $0x4] sm:$0xf0] }
  0x12   :  { %v2082_v41 = vor.u32 %v2166_v38, %v2079_v39  ;;  %v2164_v44 = vld [vmem:[%s3309_s1 + $0x4] sm:$0xf]  ;;  %v2071_v45 = vld [vmem:[%s3309_s1 + $0x8] sm:$0xf0]  ;;  %v2070_v46 = vor.u32 %v2165_v43, %v2069_v42  ;;  %v44_v50 = vld [vmem:[%s3310_s2] sm:$0x3] }
  0x13   :  { %v2074_v47 = vor.u32 %v2164_v44, %v2071_v45  ;;  %v2162_v48 = vld [vmem:[%s3308_s0] sm:$0xff]  ;;  %v2163_v49 = vld [vmem:[%s3308_s0 + $0x8] sm:$0xff]  ;;  %v46_v51 = vperm.slane %v44_v50, 0  ;;  %v47_v53 = vperm.slane %v44_v50, 1  ;;  %v189_v62 = vand.u32 127, %v188_v61  ;;  %s2429_s0 = smov 64  }
  0x14   :  { %146 = vmatpush.bf16.msra.mxu0 %v2094_v28  ;;  %vm294_vm10 = vcmask 523264   ;;  %s2050_s23 = sshll.u32 %s3314_s6, 4  ;;  %s2051_s23 = int_to_ptr.hbm [resolvable:$true] %s2050_s23 }
  0x15   :  { %165 = vmatpush.bf16.msra.mxu1 %v2098_v29  ;;  %v190_v3 = vadd.s32 128, %v189_v62  ;;  %v195_v4 = vand.u32 63, %v189_v62 }
  0x17   :  { %v202_v9 = vand.u32 63, %v190_v3  ;;  %vm2575_vm0 = vcmp.lt.s32.totalorder %v195_v4, 32 }
  0x18   :  { %147 = vmatpush.bf16.msra.mxu0 %v2086_v34 }
  0x19   :  { %166 = vmatpush.bf16.msra.mxu1 %v2090_v35  ;;  %vm2583_vm1 = vcmp.lt.s32.totalorder %v202_v9, 32 }
  0x1c   :  { %148 = vmatpush.bf16.msra.mxu0 %v2078_v40 }
  0x1d   :  { %167 = vmatpush.bf16.msra.mxu1 %v2082_v41 }
  0x20   :  { %149 = vmatpush.bf16.msra.mxu0 %v2070_v46 }
  0x21   :  { %168 = vmatpush.bf16.msra.mxu1 %v2074_v47 }
  0x23   :  { %150 = vmatmul.bf16.vlgmr.msra.gmra.mxu0 %v2162_v48 }
  0x24   :  { %169 = vmatmul.bf16.vlgmr.msra.gmra.mxu1 %v2162_v48 }
  0x33   :  { %155 = vmatmul.bf16.gmra.mxu0 %v2163_v49 }
  0x34   :  { %174 = vmatmul.bf16.gmra.mxu1 %v2163_v49 }
  0xa0   :  { %v151_v52 = vpop.f32.mrf.mxu0 }
  0xa1   :  { %v152_v54 = vadd.f32 %v151_v52, %v46_v51  ;;  %v170_v55 = vpop.f32.mrf.mxu1 }
  0xa2   :  { %v171_v56 = vadd.f32 %v170_v55, %v47_v53 }
  0xa3   :  { %180 = vst [vmem:[#allocation2 + $0x30] sm:$0xff] %v152_v54 }
  0xa4   :  { %181 = vst [vmem:[#allocation2] sm:$0xff] %v171_v56 }
  0xa8   :  { %v153_v57 = vpop.f32.mrf.mxu0 }
  0xa9   :  { %v154_v58 = vadd.f32 %v153_v57, %v46_v51  ;;  %v172_v59 = vpop.f32.mrf.mxu1 }
  0xaa   :  { %v173_v60 = vadd.f32 %v172_v59, %v47_v53  ;;  %v2593_v31 = vld [vmem:[#allocation2 + $0x30] sm:$0xc]  ;;  %v2595_v32 = vld [vmem:[#allocation2 + $0x30] sm:$0x30]  ;;  %v2643_v59 = vld [vmem:[#allocation2 + $0x30] sm:$0xc0] }
  0xab   :  { %182 = vst [vmem:[#allocation2 + $0x18] sm:$0xff] %v154_v58  ;;  %v2611_v37 = vld [vmem:[#allocation2] sm:$0xc]  ;;  %v2613_v40 = vld [vmem:[#allocation2] sm:$0x30]  ;;  %v1817_v50 = vrot.slane %v2593_v31, 6 }
  0xac   :  { %183 = vst [vmem:[#allocation2 + $0x10] sm:$0xff] %v173_v60  ;;  %v218_v47 = vld [vmem:[#allocation2] sm:$0x3]  ;;  %v1818_v48 = vrot.slane %v2611_v37, 6  ;;  %v1705_v52 = vrot.slane %v2613_v40, 2 }
  0xad   :  { %v217_v62 = vld [vmem:[#allocation2 + $0x30] sm:$0x3] }
  0xb0   :  { %v156_v63 = vpop.f32.mrf.mxu0 }
  0xb1   :  { %v157_v0 = vadd.f32 %v156_v63, %v46_v51  ;;  %v175_v1 = vpop.f32.mrf.mxu1 }
  0xb2   :  { %v176_v2 = vadd.f32 %v175_v1, %v47_v53  ;;  %v2571_v5 = vld [vmem:[#allocation2 + $0x18] sm:$0x3]  ;;  %v800_v7 = vld [vmem:[#allocation2 + $0x18] sm:$0xc]  ;;  %v917_v8 = vld [vmem:[#allocation2 + $0x18] sm:$0x30] }
  0xb3   :  { %184 = vst [vmem:[#allocation2 + $0x8] sm:$0xff] %v157_v0  ;;  %v2573_v6 = vld [vmem:[#allocation2 + $0x10] sm:$0x3]  ;;  %v1485_v12 = vrot.slane %v2571_v5, 2  ;;  %v918_v14 = vld [vmem:[#allocation2 + $0x10] sm:$0x30] }
  0xb4   :  { %185 = vst [vmem:[#allocation2 + $0x20] sm:$0xff] %v176_v2  ;;  %v1486_v13 = vrot.slane %v2573_v6, 2  ;;  %v1035_v15 = vld [vmem:[#allocation2 + $0x10] sm:$0xc0]  ;;  %v1372_v18 = vrot.slane %v800_v7, 6  ;;  %v1259_v20 = vrot.slane %v917_v8, 2 }
  0xb5   :  { %v801_v19 = vld [vmem:[#allocation2 + $0x10] sm:$0xc]  ;;  %v1034_v21 = vld [vmem:[#allocation2 + $0x18] sm:$0xc0]  ;;  %v1260_v28 = vrot.slane %v918_v14, 2  ;;  %v1154_v29 = vrot.slane %v1035_v15, 6 }
  0xb6   :  { %v1373_v33 = vrot.slane %v801_v19, 6  ;;  %v1153_v39 = vrot.slane %v1034_v21, 6  ;;  %v1931_v8 = vrot.slane %v218_v47, 2 }
  0xb8   :  { %v158_v11 = vpop.f32.mrf.mxu0 }
  0xb9   :  { %v159_v16 = vadd.f32 %v158_v11, %v46_v51  ;;  %v177_v17 = vpop.f32.mrf.mxu1  ;;  %v1704_v51 = vrot.slane %v2595_v32, 2 }
  0xba   :  { %v178_v22 = vadd.f32 %v177_v17, %v47_v53  ;;  %v2581_v23 = vld [vmem:[#allocation2 + $0x8] sm:$0xc0]  ;;  %v802_v24 = vld [vmem:[#allocation2 + $0x8] sm:$0x30]  ;;  %v919_v25 = vld [vmem:[#allocation2 + $0x8] sm:$0xc] }
  0xbb   :  { %186 = vst [vmem:[#allocation2 + $0x28] sm:$0xff] %v159_v16  ;;  %v2587_v27 = vld [vmem:[#allocation2 + $0x20] sm:$0xc0]  ;;  %v2591_v30 = vsel %vm2575_vm0, %v919_v25, %v1259_v20  ;;  %v2599_v34 = vsel %vm2575_vm0, %v802_v24, %v1372_v18  ;;  %v2604_v35 = vsel %vm2575_vm0, %v2581_v23, %v1485_v12  ;;  %v1036_v38 = vld [vmem:[#allocation2 + $0x8] sm:$0x3]  ;;  %v1598_v12 = vrot.slane %v2643_v59, 6 }
  0xbc   :  { %187 = vst [vmem:[#allocation2 + $0x38] sm:$0xff] %v178_v22  ;;  %v2609_v36 = vsel %vm2583_vm1, %v2587_v27, %v1486_v13  ;;  %v920_v41 = vld [vmem:[#allocation2 + $0x20] sm:$0xc]  ;;  %v1037_v42 = vld [vmem:[#allocation2 + $0x20] sm:$0x3]  ;;  %v2617_v44 = vsel %vm2575_vm0, %v1036_v38, %v1153_v39  ;;  %v1930_v13 = vrot.slane %v217_v62, 2 }
  0xbd   :  { %v803_v43 = vld [vmem:[#allocation2 + $0x20] sm:$0x30]  ;;  %v2621_v45 = vsel %vm2583_vm1, %v1037_v42, %v1154_v29  ;;  %v2625_v46 = vsel %vm2583_vm1, %v920_v41, %v1260_v28  ;;  %v2635_v53 = vld [vmem:[#allocation2] sm:$0xc0] }
  0xbe   :  { %v2630_v49 = vsel %vm2583_vm1, %v803_v43, %v1373_v33  ;;  %v1599_v0 = vrot.slane %v2635_v53, 6 }
  0xc2   :  { %v219_v54 = vld [vmem:[#allocation2 + $0x28] sm:$0xc0]  ;;  %v2637_v55 = vld [vmem:[#allocation2 + $0x28] sm:$0x30]  ;;  %v2639_v56 = vld [vmem:[#allocation2 + $0x28] sm:$0xc] }
  0xc3   :  { %v223_v57 = vrot.slane %v219_v54, 6  ;;  %v2641_v58 = vld [vmem:[#allocation2 + $0x38] sm:$0x30]  ;;  %v2648_v60 = vsel %vm2575_vm0, %v2639_v56, %v1704_v51  ;;  %v2653_v61 = vsel %vm2575_vm0, %v2637_v55, %v1817_v50  ;;  %v2655_v63 = vld [vmem:[#allocation2 + $0x38] sm:$0xc]  ;;  %v2687_v17 = vsel %vm2575_vm0, %v219_v54, %v1930_v13  ;;  %v2739_v13 = vld [vmem:[%s3311_s3 + $0x40] sm:$0xff] }
  0xc4   :  { %v2661_v1 = vsel %vm2583_vm1, %v2641_v58, %v1818_v48  ;;  %v2665_v3 = vld [vmem:[#allocation2 + $0x28] sm:$0x3]  ;;  %v2667_v4 = vld [vmem:[#allocation2 + $0x38] sm:$0x3]  ;;  %v2672_v7 = vsel %vm2583_vm1, %v2655_v63, %v1705_v52  ;;  %v220_v9 = vld [vmem:[#allocation2 + $0x38] sm:$0xc0] }
  0xc5   :  { %v227_v2 = vsel %vm2575_vm0, %v217_v62, %v223_v57  ;;  %v2678_v15 = vsel %vm2575_vm0, %v2665_v3, %v1598_v12  ;;  %v2683_v16 = vsel %vm2583_vm1, %v2667_v4, %v1599_v0  ;;  %3320 = vst [vmem:[#allocation6_spill] sm:$0xff] %v2687_v17  ;;  %v2691_v18 = vsel %vm2583_vm1, %v220_v9, %v1931_v8  ;;  %v2702_v0 = vld [vmem:[%s3311_s3 + $0x70] sm:$0xff]  ;;  %v2712_v8 = vld [vmem:[%s3311_s3 + $0x60] sm:$0xff]  ;;  %v2730_v12 = vld [vmem:[%s3311_s3 + $0x58] sm:$0xff] }
  0xc6   :  { %v229_v11 = vsub.f32 0.0, %v227_v2  ;;  %3321 = vst [vmem:[#allocation7_spill] sm:$0xff] %v2691_v18  ;;  %v224_v21 = vrot.slane %v220_v9, 6  ;;  %v2707_v2 = vld [vmem:[%s3311_s3 + $0x78] sm:$0xff]  ;;  %305 = vmatpush.msra.mxu2 %v2702_v0  ;;  %v2720_v9 = vld [vmem:[%s3311_s3 + $0x68] sm:$0xff]  ;;  %658 = vmatpush.msrb.mxu0 %v2702_v0 }
  0xc7   :  { %325 = vmatpush.msra.mxu3 %v2707_v2  ;;  %678 = vmatpush.msrb.mxu1 %v2707_v2 }
  0xc8   :  { %v230_v14 = vmul.f32 1.442695, %v229_v11  ;;  %v228_v24 = vsel %vm2583_vm1, %v218_v47, %v224_v21  ;;  %v2725_v11 = vld [vmem:[%s3311_s3 + $0x50] sm:$0xff]  ;;  %306 = vmatpush.msra.mxu2 %v2712_v8  ;;  %659 = vmatpush.msrb.mxu0 %v2712_v8 }
  0xc9   :  { %v249_v52 = vsub.f32 0.0, %v228_v24  ;;  %326 = vmatpush.msra.mxu3 %v2720_v9  ;;  %679 = vmatpush.msrb.mxu1 %v2720_v9 }
  0xca   :  { %2183 = vpow2.f32 %v230_v14  ;;  %v2744_v14 = vld [vmem:[%s3311_s3 + $0x48] sm:$0xff]  ;;  %307 = vmatpush.msra.mxu2 %v2725_v11  ;;  %660 = vmatpush.msrb.mxu0 %v2725_v11 }
  0xcb   :  { %v250_v54 = vmul.f32 1.442695, %v249_v52  ;;  %327 = vmatpush.msra.mxu3 %v2730_v12  ;;  %680 = vmatpush.msrb.mxu1 %v2730_v12 }
  0xcc   :  { %308 = vmatpush.msra.mxu2 %v2739_v13  ;;  %661 = vmatpush.msrb.mxu0 %v2739_v13 }
  0xcd   :  { %328 = vmatpush.msra.mxu3 %v2744_v14  ;;  %681 = vmatpush.msrb.mxu1 %v2744_v14 }
  0xd0   :  { %v2184_v19 = vpop.eup %2183 }
  0xd1   :  { %v232_v20 = vadd.f32 1.0, %v2184_v19  ;;  %v2753_v19 = vld [vmem:[%s3311_s3 + $0x30] sm:$0xff] }
  0xd2   :  { %309 = vmatpush.msra.mxu2 %v2753_v19  ;;  %662 = vmatpush.msrb.mxu0 %v2753_v19 }
  0xd3   :  { %2185 = vrcp.f32 %v232_v20  ;;  %v244_v29 = vand.u32 2147483648, %v232_v20  ;;  %v242_v38 = vand.u32 2147483647, %v232_v20  ;;  %vm238_vm3 = vweird.f32 %v232_v20 }
  0xd4   :  { %2187 = vtanh.f32 %v228_v24  ;;  %v2774_v24 = vld [vmem:[%s3311_s3 + $0x28] sm:$0xff] }
  0xd5   :  { %v245_v41 = vor.u32 1.1754944e-38, %v244_v29  ;;  %vm243_vm5 = vcmp.eq.f32.partialorder %v242_v38, 8.507059e+37  ;;  %v2790_v29 = vld [vmem:[%s3311_s3 + $0x18] sm:$0xff]  ;;  %v2804_v38 = vld [vmem:[%s3311_s3 + $0x8] sm:$0xff] }
  0xd9   :  { %v2186_v22 = vpop.eup %2185 }
  0xda   :  { %v234_v25 = vmul.f32 %v2186_v22, %v232_v20  ;;  %vm239_vm2 = vweird.f32 %v2186_v22  ;;  %v2188_v43 = vpop.eup %2187  ;;  %v2758_v20 = vld [vmem:[%s3311_s3 + $0x38] sm:$0xff] }
  0xdb   :  { %vm240_vm4 = vmor %vm238_vm3, %vm239_vm2  ;;  %329 = vmatpush.msra.mxu3 %v2758_v20  ;;  %682 = vmatpush.msrb.mxu1 %v2758_v20 }
  0xdc   :  { %v235_v28 = vsub.f32 1.0, %v234_v25 }
  0xdd   :  { %330 = vmatpush.msra.mxu3 %v2774_v24  ;;  %683 = vmatpush.msrb.mxu1 %v2774_v24 }
  0xde   :  { %v236_v33 = vmul.f32 %v2186_v22, %v235_v28  ;;  %v2785_v28 = vld [vmem:[%s3311_s3 + $0x10] sm:$0xff] }
  0xdf   :  { %331 = vmatpush.msra.mxu3 %v2790_v29  ;;  %684 = vmatpush.msrb.mxu1 %v2790_v29 }
  0xe0   :  { %v237_v39 = vadd.f32 %v2186_v22, %v236_v33  ;;  %v2799_v33 = vld [vmem:[%s3311_s3] sm:$0xff] }
  0xe1   :  { %332 = vmatpush.msra.mxu3 %v2804_v38  ;;  %685 = vmatpush.msrb.mxu1 %v2804_v38 }
  0xe2   :  { %v241_v42 = vsel %vm240_vm4, %v2186_v22, %v237_v39  ;;  %v2769_v22 = vld [vmem:[%s3311_s3 + $0x20] sm:$0xff] }
  0xe3   :  { %v246_v48 = vsel %vm243_vm5, %v245_v41, %v241_v42  ;;  %310 = vmatpush.msra.mxu2 %v2769_v22  ;;  %663 = vmatpush.msrb.mxu0 %v2769_v22 }
  0xe4   :  { %v268_v50 = vmul.f32 %v2188_v43, %v246_v48  ;;  %444 = vmatpush.msrb.mxu3 %v2707_v2  ;;  %905 = vmatpush.msra.mxu1 %v2707_v2 }
  0xe5   :  { %311 = vmatpush.msra.mxu2 %v2785_v28  ;;  %664 = vmatpush.msrb.mxu0 %v2785_v28 }
  0xe6   :  { %v397_v51 = vrot.slane %v268_v50, 6  ;;  %2189 = vtanh.f32 %v268_v50  ;;  %445 = vmatpush.msrb.mxu3 %v2720_v9  ;;  %906 = vmatpush.msra.mxu1 %v2720_v9 }
  0xe7   :  { %2191 = vpow2.f32 %v250_v54  ;;  %312 = vmatpush.msra.mxu2 %v2799_v33  ;;  %665 = vmatpush.msrb.mxu0 %v2799_v33 }
  0xe8   :  { %398 = vrot.lane.b32.xlu1 %v397_v51, %s2429_s0  ;;  %446 = vmatpush.msrb.mxu3 %v2730_v12 }
  0xe9   :  { %424 = vmatpush.msrb.mxu2 %v2702_v0  ;;  %885 = vmatpush.msra.mxu0 %v2702_v0 }
  0xea   :  { %447 = vmatpush.msrb.mxu3 %v2744_v14  ;;  %907 = vmatpush.msra.mxu1 %v2730_v12 }
  0xeb   :  { %425 = vmatpush.msrb.mxu2 %v2712_v8  ;;  %886 = vmatpush.msra.mxu0 %v2712_v8 }
  0xec   :  { %v2190_v47 = vpop.eup %2189  ;;  %448 = vmatpush.msrb.mxu3 %v2758_v20  ;;  %908 = vmatpush.msra.mxu1 %v2744_v14 }
  0xed   :  { %271 = vrot.lane.b32.xlu0 %v2190_v47, %s2429_s0  ;;  %v2192_v57 = vpop.eup %2191  ;;  %426 = vmatpush.msrb.mxu2 %v2725_v11 }
  0xee   :  { %v2697_v62 = vadd.f32 1.0, %v2192_v57  ;;  %887 = vmatpush.msra.mxu0 %v2725_v11  ;;  %449 = vmatpush.msrb.mxu3 %v2774_v24 }
  0xef   :  { %427 = vmatpush.msrb.mxu2 %v2739_v13  ;;  %909 = vmatpush.msra.mxu1 %v2758_v20 }
  0xf0   :  { %2193 = vrcp.f32 %v2697_v62  ;;  %v264_v43 = vand.u32 2147483648, %v2697_v62  ;;  %vm258_vm7 = vweird.f32 %v2697_v62  ;;  %v262_v48 = vand.u32 2147483647, %v2697_v62  ;;  %888 = vmatpush.msra.mxu0 %v2739_v13  ;;  %450 = vmatpush.msrb.mxu3 %v2790_v29 }
  0xf1   :  { %428 = vmatpush.msrb.mxu2 %v2753_v19  ;;  %910 = vmatpush.msra.mxu1 %v2774_v24 }
  0xf2   :  { %v265_v51 = vor.u32 1.1754944e-38, %v264_v43  ;;  %889 = vmatpush.msra.mxu0 %v2753_v19  ;;  %vm263_vm9 = vcmp.eq.f32.partialorder %v262_v48, 8.507059e+37  ;;  %451 = vmatpush.msrb.mxu3 %v2804_v38 }
  0xf3   :  { %429 = vmatpush.msrb.mxu2 %v2769_v22  ;;  %911 = vmatpush.msra.mxu1 %v2790_v29 }
  0xf4   :  { %890 = vmatpush.msra.mxu0 %v2769_v22 }
  0xf5   :  { %430 = vmatpush.msrb.mxu2 %v2785_v28  ;;  %912 = vmatpush.msra.mxu1 %v2804_v38 }
  0xf6   :  { %v2762_v21 = vpop.eup %2193  ;;  %891 = vmatpush.msra.mxu0 %v2785_v28 }
  0xf7   :  { %v254_v25 = vmul.f32 %v2762_v21, %v2697_v62  ;;  %vm259_vm6 = vweird.f32 %v2762_v21  ;;  %431 = vmatpush.msrb.mxu2 %v2799_v33  ;;  %v343_v62 = vrot.slane %v2637_v55, 2 }
  0xf8   :  { %vm260_vm8 = vmor %vm258_vm7, %vm259_vm6  ;;  %892 = vmatpush.msra.mxu0 %v2799_v33 }
  0xf9   :  { %v255_v39 = vsub.f32 1.0, %v254_v25 }
  0xfb   :  { %v256_v41 = vmul.f32 %v2762_v21, %v255_v39  ;;  %v347_v39 = vsel %vm2575_vm0, %v2593_v31, %v343_v62 }
  0xfd   :  { %v257_v42 = vadd.f32 %v2762_v21, %v256_v41 }
  0xff   :  { %v261_v50 = vsel %vm260_vm8, %v2762_v21, %v257_v42 }
 0x100   :  { %v266_v47 = vsel %vm263_vm9, %v265_v51, %v261_v50 }
 0x15f   :  { %v272_v52 = vpop.permute.xlu0 %271 }
 0x160   :  { %v2849_v54 = vmul.f32 %v272_v52, %v266_v47  ;;  %v344_v47 = vrot.slane %v2641_v58, 2 }
 0x162   :  { %3322 = vst [vmem:[#allocation8_spill] sm:$0xff] %v2849_v54  ;;  %292 = vrot.lane.b32.xlu0 %v2849_v54, %s2429_s0  ;;  %v348_v55 = vsel %vm2583_vm1, %v2611_v37, %v344_v47 }
 0x1d4   :  { %v293_v57 = vpop.permute.xlu0 %292 }
 0x1d5   :  { %2131 = vmatmul.msk.f32.vlgmr.msra.gmra.mxu2 %vm294_vm10, %v293_v57  ;;  %2132 = vmatmul.msk.f32.vlgmr.msra.gmra.mxu3 %vm294_vm10, %v293_v57 }
 0x1d6   :  { %541 = vmatpush.msra.mxu2 %v2702_v0  ;;  %561 = vmatpush.msra.mxu3 %v2707_v2 }
 0x1d8   :  { %542 = vmatpush.msra.mxu2 %v2712_v8  ;;  %562 = vmatpush.msra.mxu3 %v2720_v9 }
 0x1da   :  { %543 = vmatpush.msra.mxu2 %v2725_v11  ;;  %563 = vmatpush.msra.mxu3 %v2730_v12 }
 0x1dc   :  { %544 = vmatpush.msra.mxu2 %v2739_v13  ;;  %564 = vmatpush.msra.mxu3 %v2744_v14 }
 0x1de   :  { %545 = vmatpush.msra.mxu2 %v2753_v19  ;;  %565 = vmatpush.msra.mxu3 %v2758_v20 }
 0x1e0   :  { %546 = vmatpush.msra.mxu2 %v2769_v22  ;;  %566 = vmatpush.msra.mxu3 %v2774_v24 }
 0x1e2   :  { %547 = vmatpush.msra.mxu2 %v2785_v28  ;;  %567 = vmatpush.msra.mxu3 %v2790_v29 }
 0x1e4   :  { %548 = vmatpush.msra.mxu2 %v2799_v33  ;;  %568 = vmatpush.msra.mxu3 %v2804_v38 }
 0x258   :  { %v314_v21 = vpop.f32.mrf.mxu2  ;;  %v334_v51 = vpop.f32.mrf.mxu3 }
 0x259   :  { %v351_v25 = vrot.slane %v314_v21, 6  ;;  %v352_v52 = vrot.slane %v334_v51, 6 }
 0x25b   :  { %v355_v41 = vadd.f32 %v351_v25, %v347_v39  ;;  %v356_v21 = vadd.f32 %v352_v52, %v348_v55  ;;  %v399_v55 = vpop.permute.xlu1 %398 }
 0x25d   :  { %v357_v42 = vsub.f32 0.0, %v355_v41  ;;  %v377_v37 = vsub.f32 0.0, %v356_v21 }
 0x25f   :  { %v358_v43 = vmul.f32 1.442695, %v357_v42  ;;  %v378_v51 = vmul.f32 1.442695, %v377_v37 }
 0x261   :  { %2195 = vpow2.f32 %v358_v43 }
 0x267   :  { %v2196_v48 = vpop.eup %2195 }
 0x268   :  { %v360_v50 = vadd.f32 1.0, %v2196_v48 }
 0x26a   :  { %2197 = vrcp.f32 %v360_v50  ;;  %v372_v31 = vand.u32 2147483648, %v360_v50  ;;  %v370_v25 = vand.u32 2147483647, %v360_v50  ;;  %vm366_vm12 = vweird.f32 %v360_v50 }
 0x26b   :  { %2199 = vtanh.f32 %v356_v21 }
 0x26c   :  { %v373_v41 = vor.u32 1.1754944e-38, %v372_v31  ;;  %vm371_vm14 = vcmp.eq.f32.partialorder %v370_v25, 8.507059e+37  ;;  %2201 = vpow2.f32 %v378_v51 }
 0x270   :  { %v2198_v57 = vpop.eup %2197 }
 0x271   :  { %v362_v18 = vmul.f32 %v2198_v57, %v360_v50  ;;  %vm367_vm11 = vweird.f32 %v2198_v57  ;;  %v2200_v58 = vpop.eup %2199 }
 0x272   :  { %vm368_vm13 = vmor %vm366_vm12, %vm367_vm11 }
 0x273   :  { %v363_v17 = vsub.f32 1.0, %v362_v18  ;;  %v2202_v18 = vpop.eup %2201 }
 0x274   :  { %v380_v47 = vadd.f32 1.0, %v2202_v18 }
 0x275   :  { %v364_v62 = vmul.f32 %v2198_v57, %v363_v17 }
 0x276   :  { %2203 = vrcp.f32 %v380_v47  ;;  %vm386_vm2 = vweird.f32 %v380_v47  ;;  %v390_v21 = vand.u32 2147483647, %v380_v47 }
 0x277   :  { %v365_v39 = vadd.f32 %v2198_v57, %v364_v62 }
 0x278   :  { %vm391_vm4 = vcmp.eq.f32.partialorder %v390_v21, 8.507059e+37 }
 0x279   :  { %v369_v42 = vsel %vm368_vm13, %v2198_v57, %v365_v39  ;;  %v392_v39 = vand.u32 2147483648, %v380_v47 }
 0x27a   :  { %v374_v43 = vsel %vm371_vm14, %v373_v41, %v369_v42 }
 0x27b   :  { %v402_v48 = vmul.f32 %v2200_v58, %v374_v43  ;;  %v401_v54 = vmul.f32 %v399_v55, %v374_v43  ;;  %v393_v42 = vor.u32 1.1754944e-38, %v392_v39  ;;  %v463_v39 = vrot.slane %v2655_v63, 6 }
 0x27c   :  { %v2204_v17 = vpop.eup %2203 }
 0x27d   :  { %404 = vrot.lane.b32.xlu1 %v402_v48, %s2429_s0  ;;  %v382_v52 = vmul.f32 %v2204_v17, %v380_v47  ;;  %vm387_vm15 = vweird.f32 %v2204_v17 }
 0x27e   :  { %vm388_vm3 = vmor %vm386_vm2, %vm387_vm15 }
 0x27f   :  { %v383_v62 = vsub.f32 1.0, %v382_v52 }
 0x281   :  { %v384_v50 = vmul.f32 %v2204_v17, %v383_v62 }
 0x283   :  { %v385_v25 = vadd.f32 %v2204_v17, %v384_v50 }
 0x285   :  { %v389_v41 = vsel %vm388_vm3, %v2204_v17, %v385_v25 }
 0x286   :  { %v394_v48 = vsel %vm391_vm4, %v393_v42, %v389_v41 }
 0x2ef   :  { %v405_v31 = vpop.permute.xlu1 %404 }
 0x2f0   :  { %v2886_v57 = vadd.f32 %v405_v31, %v401_v54  ;;  %v462_v54 = vrot.slane %v2639_v56, 6  ;;  %v467_v56 = vsel %vm2583_vm1, %v2613_v40, %v463_v39 }
 0x2f2   :  { %2205 = vtanh.f32 %v2886_v57  ;;  %v466_v17 = vsel %vm2575_vm0, %v2595_v32, %v462_v54  ;;  %v516_v63 = vrot.slane %v2886_v57, 6 }
 0x2f8   :  { %v2206_v58 = vpop.eup %2205 }
 0x2f9   :  { %v409_v37 = vmul.f32 %v2206_v58, %v394_v48 }
 0x2fb   :  { %v411_v51 = vrot.slane %v409_v37, 2 }
 0x2fd   :  { %412 = vrot.lane.b32.xlu2 %v411_v51, %s2429_s0 }
 0x357   :  { %v413_v43 = vpop.permute.xlu2 %412 }
 0x358   :  { %2133 = vmatmul.msk.f32.vlgmr.msrb.gmra.mxu2 %vm294_vm10, %v413_v43  ;;  %2134 = vmatmul.msk.f32.vlgmr.msrb.gmra.mxu3 %vm294_vm10, %v413_v43 }
 0x359   :  { %768 = vmatpush.msrb.mxu2 %v2702_v0  ;;  %788 = vmatpush.msrb.mxu3 %v2707_v2 }
 0x35b   :  { %769 = vmatpush.msrb.mxu2 %v2712_v8  ;;  %789 = vmatpush.msrb.mxu3 %v2720_v9 }
 0x35d   :  { %770 = vmatpush.msrb.mxu2 %v2725_v11  ;;  %790 = vmatpush.msrb.mxu3 %v2730_v12 }
 0x35f   :  { %771 = vmatpush.msrb.mxu2 %v2739_v13  ;;  %791 = vmatpush.msrb.mxu3 %v2744_v14 }
 0x361   :  { %772 = vmatpush.msrb.mxu2 %v2753_v19  ;;  %792 = vmatpush.msrb.mxu3 %v2758_v20 }
 0x363   :  { %773 = vmatpush.msrb.mxu2 %v2769_v22  ;;  %793 = vmatpush.msrb.mxu3 %v2774_v24 }
 0x365   :  { %774 = vmatpush.msrb.mxu2 %v2785_v28  ;;  %794 = vmatpush.msrb.mxu3 %v2790_v29 }
 0x367   :  { %775 = vmatpush.msrb.mxu2 %v2799_v33  ;;  %795 = vmatpush.msrb.mxu3 %v2804_v38 }
 0x3db   :  { %v433_v18 = vpop.f32.mrf.mxu2  ;;  %v453_v25 = vpop.f32.mrf.mxu3 }
 0x3dc   :  { %v470_v47 = vrot.slane %v433_v18, 4  ;;  %v471_v21 = vrot.slane %v453_v25, 4 }
 0x3de   :  { %v474_v52 = vadd.f32 %v470_v47, %v466_v17  ;;  %v475_v42 = vadd.f32 %v471_v21, %v467_v56 }
 0x3e0   :  { %v476_v55 = vsub.f32 0.0, %v474_v52 }
 0x3e2   :  { %v477_v62 = vmul.f32 1.442695, %v476_v55  ;;  %v496_v55 = vsub.f32 0.0, %v475_v42 }
 0x3e4   :  { %2207 = vpow2.f32 %v477_v62  ;;  %v497_v62 = vmul.f32 1.442695, %v496_v55 }
 0x3ea   :  { %v2208_v50 = vpop.eup %2207 }
 0x3eb   :  { %v479_v31 = vadd.f32 1.0, %v2208_v50 }
 0x3ed   :  { %2209 = vrcp.f32 %v479_v31  ;;  %v491_v32 = vand.u32 2147483648, %v479_v31  ;;  %v489_v51 = vand.u32 2147483647, %v479_v31  ;;  %vm485_vm6 = vweird.f32 %v479_v31 }
 0x3ee   :  { %2211 = vtanh.f32 %v475_v42 }
 0x3ef   :  { %v492_v54 = vor.u32 1.1754944e-38, %v491_v32  ;;  %vm490_vm8 = vcmp.eq.f32.partialorder %v489_v51, 8.507059e+37  ;;  %2213 = vpow2.f32 %v497_v62 }
 0x3f3   :  { %v2210_v41 = vpop.eup %2209 }
 0x3f4   :  { %v481_v58 = vmul.f32 %v2210_v41, %v479_v31  ;;  %vm486_vm5 = vweird.f32 %v2210_v41  ;;  %v2212_v47 = vpop.eup %2211 }
 0x3f5   :  { %vm487_vm7 = vmor %vm485_vm6, %vm486_vm5  ;;  %v2214_v50 = vpop.eup %2213 }
 0x3f6   :  { %v482_v48 = vsub.f32 1.0, %v481_v58  ;;  %v499_v25 = vadd.f32 1.0, %v2214_v50 }
 0x3f8   :  { %v483_v37 = vmul.f32 %v2210_v41, %v482_v48  ;;  %2215 = vrcp.f32 %v499_v25  ;;  %v511_v48 = vand.u32 2147483648, %v499_v25  ;;  %vm505_vm11 = vweird.f32 %v499_v25 }
 0x3f9   :  { %v509_v32 = vand.u32 2147483647, %v499_v25 }
 0x3fa   :  { %v484_v43 = vadd.f32 %v2210_v41, %v483_v37  ;;  %v512_v37 = vor.u32 1.1754944e-38, %v511_v48 }
 0x3fb   :  { %vm510_vm13 = vcmp.eq.f32.partialorder %v509_v32, 8.507059e+37 }
 0x3fc   :  { %v488_v18 = vsel %vm487_vm7, %v2210_v41, %v484_v43 }
 0x3fd   :  { %v493_v17 = vsel %vm490_vm8, %v492_v54, %v488_v18 }
 0x3fe   :  { %v519_v40 = vmul.f32 %v2212_v47, %v493_v17  ;;  %v518_v52 = vmul.f32 %v516_v63, %v493_v17  ;;  %v2216_v39 = vpop.eup %2215  ;;  %v579_v47 = vrot.slane %v2665_v3, 2 }
 0x3ff   :  { %v501_v31 = vmul.f32 %v2216_v39, %v499_v25  ;;  %vm506_vm9 = vweird.f32 %v2216_v39 }
 0x400   :  { %521 = vrot.lane.b32.xlu2 %v519_v40, %s2429_s0  ;;  %vm507_vm12 = vmor %vm505_vm11, %vm506_vm9 }
 0x401   :  { %v502_v21 = vsub.f32 1.0, %v501_v31 }
 0x403   :  { %v503_v56 = vmul.f32 %v2216_v39, %v502_v21  ;;  %v580_v21 = vrot.slane %v2667_v4, 2 }
 0x405   :  { %v504_v41 = vadd.f32 %v2216_v39, %v503_v56  ;;  %v584_v3 = vsel %vm2583_vm1, %v2635_v53, %v580_v21 }
 0x407   :  { %v508_v42 = vsel %vm507_vm12, %v2216_v39, %v504_v41 }
 0x408   :  { %v513_v43 = vsel %vm510_vm13, %v512_v37, %v508_v42 }
 0x45a   :  { %v522_v58 = vpop.permute.xlu2 %521 }
 0x45b   :  { %v2918_v57 = vadd.f32 %v522_v58, %v518_v52  ;;  %v583_v52 = vsel %vm2575_vm0, %v2643_v59, %v579_v47 }
 0x45d   :  { %2217 = vtanh.f32 %v2918_v57  ;;  %v633_v4 = vrot.slane %v2918_v57, 6 }
 0x463   :  { %v2218_v51 = vpop.eup %2217 }
 0x464   :  { %v526_v54 = vmul.f32 %v2218_v51, %v513_v43 }
 0x466   :  { %v528_v63 = vrot.slane %v526_v54, 4 }
 0x468   :  { %529 = vrot.lane.b32.xlu0 %v528_v63, %s2429_s0 }
 0x4da   :  { %v530_v18 = vpop.permute.xlu0 %529 }
 0x4db   :  { %2135 = vmatmul.msk.f32.vlgmr.msra.gmra.mxu2 %vm294_vm10, %v530_v18  ;;  %2136 = vmatmul.msk.f32.vlgmr.msra.gmra.mxu3 %vm294_vm10, %v530_v18 }
 0x4dc   :  { %1002 = vmatpush.msra.mxu2 %v2702_v0  ;;  %1022 = vmatpush.msra.mxu3 %v2707_v2 }
 0x4de   :  { %1003 = vmatpush.msra.mxu2 %v2712_v8  ;;  %1023 = vmatpush.msra.mxu3 %v2720_v9 }
 0x4e0   :  { %1004 = vmatpush.msra.mxu2 %v2725_v11  ;;  %1024 = vmatpush.msra.mxu3 %v2730_v12 }
 0x4e2   :  { %1005 = vmatpush.msra.mxu2 %v2739_v13  ;;  %1025 = vmatpush.msra.mxu3 %v2744_v14 }
 0x4e4   :  { %1006 = vmatpush.msra.mxu2 %v2753_v19  ;;  %1026 = vmatpush.msra.mxu3 %v2758_v20 }
 0x4e6   :  { %1007 = vmatpush.msra.mxu2 %v2769_v22  ;;  %1027 = vmatpush.msra.mxu3 %v2774_v24 }
 0x4e8   :  { %1008 = vmatpush.msra.mxu2 %v2785_v28  ;;  %1028 = vmatpush.msra.mxu3 %v2790_v29 }
 0x4ea   :  { %1009 = vmatpush.msra.mxu2 %v2799_v33  ;;  %1029 = vmatpush.msra.mxu3 %v2804_v38 }
 0x55e   :  { %v550_v17 = vpop.f32.mrf.mxu2  ;;  %v570_v31 = vpop.f32.mrf.mxu3 }
 0x55f   :  { %v587_v40 = vrot.slane %v550_v17, 2  ;;  %v588_v56 = vrot.slane %v570_v31, 2 }
 0x561   :  { %v591_v55 = vadd.f32 %v587_v40, %v583_v52  ;;  %v592_v41 = vadd.f32 %v588_v56, %v584_v3 }
 0x563   :  { %v593_v62 = vsub.f32 0.0, %v591_v55  ;;  %v613_v17 = vsub.f32 0.0, %v592_v41 }
 0x565   :  { %v594_v50 = vmul.f32 1.442695, %v593_v62  ;;  %v614_v40 = vmul.f32 1.442695, %v613_v17  ;;  %v697_v17 = vrot.slane %v2587_v27, 6 }
 0x567   :  { %2219 = vpow2.f32 %v594_v50 }
 0x56d   :  { %v2220_v25 = vpop.eup %2219 }
 0x56e   :  { %v596_v39 = vadd.f32 1.0, %v2220_v25 }
 0x570   :  { %2221 = vrcp.f32 %v596_v39  ;;  %v608_v59 = vand.u32 2147483648, %v596_v39  ;;  %v606_v37 = vand.u32 2147483647, %v596_v39  ;;  %vm602_vm15 = vweird.f32 %v596_v39 }
 0x571   :  { %2223 = vtanh.f32 %v592_v41 }
 0x572   :  { %v609_v43 = vor.u32 1.1754944e-38, %v608_v59  ;;  %vm607_vm3 = vcmp.eq.f32.partialorder %v606_v37, 8.507059e+37  ;;  %2225 = vpow2.f32 %v614_v40 }
 0x576   :  { %v2222_v58 = vpop.eup %2221 }
 0x577   :  { %v598_v48 = vmul.f32 %v2222_v58, %v596_v39  ;;  %vm603_vm14 = vweird.f32 %v2222_v58  ;;  %v2224_v63 = vpop.eup %2223 }
 0x578   :  { %vm604_vm2 = vmor %vm602_vm15, %vm603_vm14  ;;  %v2226_v52 = vpop.eup %2225 }
 0x579   :  { %v599_v32 = vsub.f32 1.0, %v598_v48  ;;  %v616_v55 = vadd.f32 1.0, %v2226_v52  ;;  %v701_v52 = vsel %vm2583_vm1, %v2573_v6, %v697_v17 }
 0x57b   :  { %v600_v42 = vmul.f32 %v2222_v58, %v599_v32  ;;  %2227 = vrcp.f32 %v616_v55  ;;  %v628_v56 = vand.u32 2147483648, %v616_v55  ;;  %vm622_vm5 = vweird.f32 %v616_v55 }
 0x57c   :  { %v626_v3 = vand.u32 2147483647, %v616_v55 }
 0x57d   :  { %v601_v51 = vadd.f32 %v2222_v58, %v600_v42  ;;  %v629_v41 = vor.u32 1.1754944e-38, %v628_v56 }
 0x57e   :  { %vm627_vm7 = vcmp.eq.f32.partialorder %v626_v3, 8.507059e+37 }
 0x57f   :  { %v605_v54 = vsel %vm604_vm2, %v2222_v58, %v601_v51  ;;  %v696_v51 = vrot.slane %v2581_v23, 6 }
 0x580   :  { %v610_v18 = vsel %vm607_vm3, %v609_v43, %v605_v54 }
 0x581   :  { %v636_v53 = vmul.f32 %v2224_v63, %v610_v18  ;;  %v635_v47 = vmul.f32 %v633_v4, %v610_v18  ;;  %v2228_v62 = vpop.eup %2227  ;;  %v700_v4 = vsel %vm2575_vm0, %v2571_v5, %v696_v51 }
 0x582   :  { %v618_v50 = vmul.f32 %v2228_v62, %v616_v55  ;;  %vm623_vm4 = vweird.f32 %v2228_v62 }
 0x583   :  { %638 = vrot.lane.b32.xlu1 %v636_v53, %s2429_s0  ;;  %vm624_vm6 = vmor %vm622_vm5, %vm623_vm4 }
 0x584   :  { %v619_v25 = vsub.f32 1.0, %v618_v50 }
 0x586   :  { %v620_v39 = vmul.f32 %v2228_v62, %v619_v25 }
 0x588   :  { %v621_v21 = vadd.f32 %v2228_v62, %v620_v39 }
 0x58a   :  { %v625_v58 = vsel %vm624_vm6, %v2228_v62, %v621_v21 }
 0x58b   :  { %v630_v32 = vsel %vm627_vm7, %v629_v41, %v625_v58 }
 0x5f5   :  { %v639_v31 = vpop.permute.xlu1 %638 }
 0x5f6   :  { %v2950_v57 = vadd.f32 %v639_v31, %v635_v47 }
 0x5f8   :  { %2229 = vtanh.f32 %v2950_v57  ;;  %v744_v27 = vrot.slane %v2950_v57, 6 }
 0x5fe   :  { %v2230_v48 = vpop.eup %2229 }
 0x5ff   :  { %v643_v59 = vmul.f32 %v2230_v48, %v630_v32 }
 0x601   :  { %v645_v42 = vrot.slane %v643_v59, 6 }
 0x603   :  { %646 = vrot.lane.b32.xlu2 %v645_v42, %s2429_s0 }
 0x65d   :  { %v647_v37 = vpop.permute.xlu2 %646 }
 0x65e   :  { %2137 = vmatmul.msk.f32.vlgmr.msrb.gmra.mxu0 %vm294_vm10, %v647_v37  ;;  %2138 = vmatmul.msk.f32.vlgmr.msrb.gmra.mxu1 %vm294_vm10, %v647_v37 }
 0x65f   :  { %1119 = vmatpush.msrb.mxu0 %v2702_v0  ;;  %1139 = vmatpush.msrb.mxu1 %v2707_v2 }
 0x661   :  { %1120 = vmatpush.msrb.mxu0 %v2712_v8  ;;  %1140 = vmatpush.msrb.mxu1 %v2720_v9 }
 0x663   :  { %1121 = vmatpush.msrb.mxu0 %v2725_v11  ;;  %1141 = vmatpush.msrb.mxu1 %v2730_v12 }
 0x665   :  { %1122 = vmatpush.msrb.mxu0 %v2739_v13  ;;  %1142 = vmatpush.msrb.mxu1 %v2744_v14 }
 0x667   :  { %1123 = vmatpush.msrb.mxu0 %v2753_v19  ;;  %1143 = vmatpush.msrb.mxu1 %v2758_v20 }
 0x669   :  { %1124 = vmatpush.msrb.mxu0 %v2769_v22  ;;  %1144 = vmatpush.msrb.mxu1 %v2774_v24 }
 0x66b   :  { %1125 = vmatpush.msrb.mxu0 %v2785_v28  ;;  %1145 = vmatpush.msrb.mxu1 %v2790_v29 }
 0x66d   :  { %1126 = vmatpush.msrb.mxu0 %v2799_v33  ;;  %1146 = vmatpush.msrb.mxu1 %v2804_v38 }
 0x6db   :  { %v667_v43 = vpop.f32.mrf.mxu0  ;;  %v687_v40 = vpop.f32.mrf.mxu1 }
 0x6dc   :  { %v702_v54 = vadd.f32 %v700_v4, %v667_v43  ;;  %v703_v55 = vadd.f32 %v701_v52, %v687_v40 }
 0x6de   :  { %v704_v63 = vsub.f32 0.0, %v702_v54  ;;  %v724_v48 = vsub.f32 0.0, %v703_v55 }
 0x6e0   :  { %v705_v18 = vmul.f32 1.442695, %v704_v63  ;;  %v725_v32 = vmul.f32 1.442695, %v724_v48 }
 0x6e2   :  { %2231 = vpow2.f32 %v705_v18 }
 0x6e8   :  { %v2232_v53 = vpop.eup %2231 }
 0x6e9   :  { %v707_v47 = vadd.f32 1.0, %v2232_v53 }
 0x6eb   :  { %2233 = vrcp.f32 %v707_v47  ;;  %v719_v5 = vand.u32 2147483648, %v707_v47  ;;  %v717_v39 = vand.u32 2147483647, %v707_v47  ;;  %vm713_vm9 = vweird.f32 %v707_v47 }
 0x6ec   :  { %2235 = vtanh.f32 %v703_v55 }
 0x6ed   :  { %v720_v21 = vor.u32 1.1754944e-38, %v719_v5  ;;  %vm718_vm12 = vcmp.eq.f32.partialorder %v717_v39, 8.507059e+37  ;;  %2237 = vpow2.f32 %v725_v32  ;;  %v2376_v39 = vld [vmem:[#allocation2 + $0x18] sm:$0xc] }
 0x6f1   :  { %v2234_v23 = vpop.eup %2233 }
 0x6f2   :  { %v709_v62 = vmul.f32 %v2234_v23, %v707_v47  ;;  %vm714_vm8 = vweird.f32 %v2234_v23  ;;  %v2236_v3 = vpop.eup %2235 }
 0x6f3   :  { %vm715_vm11 = vmor %vm713_vm9, %vm714_vm8  ;;  %v2238_v59 = vpop.eup %2237 }
 0x6f4   :  { %v710_v50 = vsub.f32 1.0, %v709_v62  ;;  %v727_v42 = vadd.f32 1.0, %v2238_v59  ;;  %v2375_v62 = vld [vmem:[#allocation2 + $0x8] sm:$0x30]  ;;  %v2378_v59 = vld [vmem:[#allocation2 + $0x10] sm:$0xc] }
 0x6f6   :  { %v711_v25 = vmul.f32 %v2234_v23, %v710_v50  ;;  %2239 = vrcp.f32 %v727_v42  ;;  %v739_v18 = vand.u32 2147483648, %v727_v42  ;;  %vm733_vm14 = vweird.f32 %v727_v42 }
 0x6f7   :  { %v737_v53 = vand.u32 2147483647, %v727_v42  ;;  %v806_v50 = vrot.slane %v2375_v62, 2 }
 0x6f8   :  { %v712_v31 = vadd.f32 %v2234_v23, %v711_v25  ;;  %v740_v17 = vor.u32 1.1754944e-38, %v739_v18 }
 0x6f9   :  { %vm738_vm2 = vcmp.eq.f32.partialorder %v737_v53, 8.507059e+37 }
 0x6fa   :  { %v716_v56 = vsel %vm715_vm11, %v2234_v23, %v712_v31  ;;  %v810_v31 = vsel %vm2575_vm0, %v2376_v39, %v806_v50 }
 0x6fb   :  { %v721_v58 = vsel %vm718_vm12, %v720_v21, %v716_v56 }
 0x6fc   :  { %v747_v6 = vmul.f32 %v2236_v3, %v721_v58  ;;  %v746_v41 = vmul.f32 %v744_v27, %v721_v58  ;;  %v2240_v37 = vpop.eup %2239 }
 0x6fd   :  { %v729_v51 = vmul.f32 %v2240_v37, %v727_v42  ;;  %vm734_vm13 = vweird.f32 %v2240_v37 }
 0x6fe   :  { %749 = vrot.lane.b32.xlu0 %v747_v6, %s2429_s0  ;;  %vm735_vm15 = vmor %vm733_vm14, %vm734_vm13 }
 0x6ff   :  { %v730_v43 = vsub.f32 1.0, %v729_v51 }
 0x701   :  { %v731_v4 = vmul.f32 %v2240_v37, %v730_v43 }
 0x703   :  { %v732_v63 = vadd.f32 %v2240_v37, %v731_v4 }
 0x705   :  { %v736_v47 = vsel %vm735_vm15, %v2240_v37, %v732_v63 }
 0x706   :  { %v741_v52 = vsel %vm738_vm2, %v740_v17, %v736_v47 }
 0x770   :  { %v750_v54 = vpop.permute.xlu0 %749 }
 0x771   :  { %v2982_v57 = vadd.f32 %v750_v54, %v746_v41  ;;  %v2377_v41 = vld [vmem:[#allocation2 + $0x20] sm:$0x30] }
 0x772   :  { %v807_v48 = vrot.slane %v2377_v41, 2 }
 0x773   :  { %2241 = vtanh.f32 %v2982_v57  ;;  %v860_v17 = vrot.slane %v2982_v57, 6 }
 0x774   :  { %v811_v42 = vsel %vm2583_vm1, %v2378_v59, %v807_v48 }
 0x779   :  { %v2242_v40 = vpop.eup %2241 }
 0x77a   :  { %v754_v23 = vmul.f32 %v2242_v40, %v741_v52 }
 0x77c   :  { %756 = vrot.lane.b32.xlu1 %v754_v23, %s2429_s0 }
 0x7ee   :  { %v757_v55 = vpop.permute.xlu1 %756 }
 0x7ef   :  { %2139 = vmatmul.msk.f32.vlgmr.msrb.gmra.mxu2 %vm294_vm10, %v757_v55  ;;  %2140 = vmatmul.msk.f32.vlgmr.msrb.gmra.mxu3 %vm294_vm10, %v757_v55 }
 0x7f0   :  { %1225 = vmatpush.msrb.mxu2 %v2702_v0  ;;  %1245 = vmatpush.msrb.mxu3 %v2707_v2 }
 0x7f2   :  { %1226 = vmatpush.msrb.mxu2 %v2712_v8  ;;  %1246 = vmatpush.msrb.mxu3 %v2720_v9 }
 0x7f4   :  { %1227 = vmatpush.msrb.mxu2 %v2725_v11  ;;  %1247 = vmatpush.msrb.mxu3 %v2730_v12 }
 0x7f6   :  { %1228 = vmatpush.msrb.mxu2 %v2739_v13  ;;  %1248 = vmatpush.msrb.mxu3 %v2744_v14 }
 0x7f8   :  { %1229 = vmatpush.msrb.mxu2 %v2753_v19  ;;  %1249 = vmatpush.msrb.mxu3 %v2758_v20 }
 0x7fa   :  { %1230 = vmatpush.msrb.mxu2 %v2769_v22  ;;  %1250 = vmatpush.msrb.mxu3 %v2774_v24 }
 0x7fc   :  { %1231 = vmatpush.msrb.mxu2 %v2785_v28  ;;  %1251 = vmatpush.msrb.mxu3 %v2790_v29 }
 0x7fe   :  { %1232 = vmatpush.msrb.mxu2 %v2799_v33  ;;  %1252 = vmatpush.msrb.mxu3 %v2804_v38 }
 0x872   :  { %v777_v5 = vpop.f32.mrf.mxu2  ;;  %v797_v6 = vpop.f32.mrf.mxu3 }
 0x873   :  { %v814_v25 = vrot.slane %v777_v5, 6  ;;  %v815_v32 = vrot.slane %v797_v6, 6 }
 0x875   :  { %v818_v21 = vadd.f32 %v814_v25, %v810_v31  ;;  %v819_v51 = vadd.f32 %v815_v32, %v811_v42 }
 0x877   :  { %v820_v27 = vsub.f32 0.0, %v818_v21  ;;  %v840_v50 = vsub.f32 0.0, %v819_v51 }
 0x879   :  { %v821_v56 = vmul.f32 1.442695, %v820_v27  ;;  %v841_v5 = vmul.f32 1.442695, %v840_v50 }
 0x87b   :  { %2243 = vpow2.f32 %v821_v56 }
 0x881   :  { %v2244_v3 = vpop.eup %2243 }
 0x882   :  { %v823_v58 = vadd.f32 1.0, %v2244_v3 }
 0x884   :  { %2245 = vrcp.f32 %v823_v58  ;;  %v835_v54 = vand.u32 2147483648, %v823_v58  ;;  %v833_v18 = vand.u32 2147483647, %v823_v58  ;;  %vm829_vm4 = vweird.f32 %v823_v58 }
 0x885   :  { %2247 = vtanh.f32 %v819_v51 }
 0x886   :  { %v836_v47 = vor.u32 1.1754944e-38, %v835_v54  ;;  %vm834_vm6 = vcmp.eq.f32.partialorder %v833_v18, 8.507059e+37  ;;  %2249 = vpow2.f32 %v841_v5 }
 0x88a   :  { %v2246_v37 = vpop.eup %2245 }
 0x88b   :  { %v825_v43 = vmul.f32 %v2246_v37, %v823_v58  ;;  %vm830_vm3 = vweird.f32 %v2246_v37  ;;  %v2248_v52 = vpop.eup %2247 }
 0x88c   :  { %vm831_vm5 = vmor %vm829_vm4, %vm830_vm3  ;;  %v2250_v25 = vpop.eup %2249 }
 0x88d   :  { %v826_v4 = vsub.f32 1.0, %v825_v43  ;;  %v843_v39 = vadd.f32 1.0, %v2250_v25 }
 0x88f   :  { %v827_v63 = vmul.f32 %v2246_v37, %v826_v4  ;;  %2251 = vrcp.f32 %v843_v39  ;;  %v855_v6 = vand.u32 2147483648, %v843_v39  ;;  %vm849_vm8 = vweird.f32 %v843_v39 }
 0x890   :  { %v853_v41 = vand.u32 2147483647, %v843_v39 }
 0x891   :  { %v828_v53 = vadd.f32 %v2246_v37, %v827_v63  ;;  %v856_v32 = vor.u32 1.1754944e-38, %v855_v6 }
 0x892   :  { %vm854_vm11 = vcmp.eq.f32.partialorder %v853_v41, 8.507059e+37 }
 0x893   :  { %v832_v40 = vsel %vm831_vm5, %v2246_v37, %v828_v53 }
 0x894   :  { %v837_v23 = vsel %vm834_vm6, %v836_v47, %v832_v40 }
 0x895   :  { %v863_v55 = vmul.f32 %v2248_v52, %v837_v23  ;;  %v862_v62 = vmul.f32 %v860_v17, %v837_v23  ;;  %v2252_v31 = vpop.eup %2251 }
 0x896   :  { %v845_v21 = vmul.f32 %v2252_v31, %v843_v39  ;;  %vm850_vm7 = vweird.f32 %v2252_v31 }
 0x897   :  { %865 = vrot.lane.b32.xlu2 %v863_v55, %s2429_s0  ;;  %vm851_vm9 = vmor %vm849_vm8, %vm850_vm7 }
 0x898   :  { %v846_v27 = vsub.f32 1.0, %v845_v21 }
 0x89a   :  { %v847_v56 = vmul.f32 %v2252_v31, %v846_v27 }
 0x89c   :  { %v848_v58 = vadd.f32 %v2252_v31, %v847_v56 }
 0x89e   :  { %v852_v48 = vsel %vm851_vm9, %v2252_v31, %v848_v58 }
 0x89f   :  { %v857_v42 = vsel %vm854_vm11, %v856_v32, %v852_v48 }
 0x8f1   :  { %v866_v3 = vpop.permute.xlu2 %865 }
 0x8f2   :  { %v3010_v57 = vadd.f32 %v866_v3, %v862_v62 }
 0x8f4   :  { %2253 = vtanh.f32 %v3010_v57  ;;  %v977_v55 = vrot.slane %v3010_v57, 6 }
 0x8fa   :  { %v2254_v59 = vpop.eup %2253 }
 0x8fb   :  { %v870_v37 = vmul.f32 %v2254_v59, %v857_v42 }
 0x8fd   :  { %v872_v51 = vrot.slane %v870_v37, 2 }
 0x8ff   :  { %873 = vrot.lane.b32.xlu0 %v872_v51, %s2429_s0 }
 0x971   :  { %v874_v43 = vpop.permute.xlu0 %873 }
 0x972   :  { %2141 = vmatmul.msk.f32.vlgmr.msra.gmra.mxu0 %vm294_vm10, %v874_v43  ;;  %2142 = vmatmul.msk.f32.vlgmr.msra.gmra.mxu1 %vm294_vm10, %v874_v43 }
 0x973   :  { %1338 = vmatpush.msra.mxu0 %v2702_v0  ;;  %1358 = vmatpush.msra.mxu1 %v2707_v2  ;;  %v2379_v0 = vld [vmem:[#allocation2 + $0x8] sm:$0xc] }
 0x974   :  { %v923_v2 = vrot.slane %v2379_v0, 6 }
 0x975   :  { %1339 = vmatpush.msra.mxu0 %v2712_v8  ;;  %1359 = vmatpush.msra.mxu1 %v2720_v9 }
 0x977   :  { %1340 = vmatpush.msra.mxu0 %v2725_v11  ;;  %1360 = vmatpush.msra.mxu1 %v2730_v12  ;;  %v2380_v11 = vld [vmem:[#allocation2 + $0x18] sm:$0x30] }
 0x978   :  { %v927_v12 = vsel %vm2575_vm0, %v2380_v11, %v923_v2  ;;  %v3047_v11 = vld [vmem:[%s3311_s3 + $0x70] sm:$0xff] }
 0x979   :  { %1341 = vmatpush.msra.mxu0 %v2739_v13  ;;  %1361 = vmatpush.msra.mxu1 %v2744_v14 }
 0x97b   :  { %1342 = vmatpush.msra.mxu0 %v2753_v19  ;;  %1362 = vmatpush.msra.mxu1 %v2758_v20 }
 0x97d   :  { %1343 = vmatpush.msra.mxu0 %v2769_v22  ;;  %1363 = vmatpush.msra.mxu1 %v2774_v24 }
 0x97f   :  { %1344 = vmatpush.msra.mxu0 %v2785_v28  ;;  %1364 = vmatpush.msra.mxu1 %v2790_v29  ;;  %v2381_v28 = vld [vmem:[#allocation2 + $0x20] sm:$0xc] }
 0x980   :  { %v924_v29 = vrot.slane %v2381_v28, 6  ;;  %v3095_v28 = vld [vmem:[%s3311_s3 + $0x30] sm:$0xff] }
 0x981   :  { %1345 = vmatpush.msra.mxu0 %v2799_v33  ;;  %1365 = vmatpush.msra.mxu1 %v2804_v38  ;;  %v2382_v38 = vld [vmem:[#allocation2 + $0x10] sm:$0x30] }
 0x982   :  { %v928_v4 = vsel %vm2583_vm1, %v2382_v38, %v924_v29  ;;  %v3101_v29 = vld [vmem:[%s3311_s3 + $0x38] sm:$0xff]  ;;  %v3113_v38 = vld [vmem:[%s3311_s3 + $0x28] sm:$0xff] }
 0x9ef   :  { %v894_v8 = vpop.f32.mrf.mxu0  ;;  %v914_v24 = vpop.f32.mrf.mxu1 }
 0x9f0   :  { %v931_v9 = vrot.slane %v894_v8, 4  ;;  %v932_v33 = vrot.slane %v914_v24, 4  ;;  %v3089_v24 = vld [vmem:[%s3311_s3 + $0x48] sm:$0xff] }
 0x9f2   :  { %v935_v13 = vadd.f32 %v931_v9, %v927_v12  ;;  %v936_v63 = vadd.f32 %v932_v33, %v928_v4  ;;  %v3053_v12 = vld [vmem:[%s3311_s3 + $0x78] sm:$0xff]  ;;  %v3107_v33 = vld [vmem:[%s3311_s3 + $0x20] sm:$0xff]  ;;  %v3119_v4 = vld [vmem:[%s3311_s3 + $0x10] sm:$0xff] }
 0x9f4   :  { %v937_v14 = vsub.f32 0.0, %v935_v13  ;;  %v957_v31 = vsub.f32 0.0, %v936_v63  ;;  %v3059_v13 = vld [vmem:[%s3311_s3 + $0x60] sm:$0xff] }
 0x9f6   :  { %v938_v19 = vmul.f32 1.442695, %v937_v14  ;;  %v958_v21 = vmul.f32 1.442695, %v957_v31  ;;  %v3065_v14 = vld [vmem:[%s3311_s3 + $0x68] sm:$0xff] }
 0x9f7   :  { %v2401_v31 = vld [vmem:[#allocation2 + $0x20] sm:$0x3] }
 0x9f8   :  { %2255 = vpow2.f32 %v938_v19  ;;  %v3071_v19 = vld [vmem:[%s3311_s3 + $0x50] sm:$0xff] }
 0x9fe   :  { %v2256_v20 = vpop.eup %2255 }
 0x9ff   :  { %v940_v22 = vadd.f32 1.0, %v2256_v20  ;;  %v3077_v20 = vld [vmem:[%s3311_s3 + $0x58] sm:$0xff] }
 0xa01   :  { %2257 = vrcp.f32 %v940_v22  ;;  %v952_v47 = vand.u32 2147483648, %v940_v22  ;;  %v950_v40 = vand.u32 2147483647, %v940_v22  ;;  %vm946_vm13 = vweird.f32 %v940_v22 }
 0xa02   :  { %2259 = vtanh.f32 %v936_v63  ;;  %v3131_v63 = vld [vmem:[%s3311_s3] sm:$0xff] }
 0xa03   :  { %v953_v23 = vor.u32 1.1754944e-38, %v952_v47  ;;  %vm951_vm15 = vcmp.eq.f32.partialorder %v950_v40, 8.507059e+37  ;;  %2261 = vpow2.f32 %v958_v21  ;;  %v1041_v21 = vrot.slane %v2401_v31, 2 }
 0xa07   :  { %v2258_v54 = vpop.eup %2257 }
 0xa08   :  { %v942_v18 = vmul.f32 %v2258_v54, %v940_v22  ;;  %vm947_vm12 = vweird.f32 %v2258_v54  ;;  %v2260_v50 = vpop.eup %2259  ;;  %v3083_v22 = vld [vmem:[%s3311_s3 + $0x40] sm:$0xff] }
 0xa09   :  { %vm948_vm14 = vmor %vm946_vm13, %vm947_vm12  ;;  %v2262_v27 = vpop.eup %2261 }
 0xa0a   :  { %v943_v53 = vsub.f32 1.0, %v942_v18  ;;  %v960_v56 = vadd.f32 1.0, %v2262_v27  ;;  %v3137_v18 = vld [vmem:[%s3311_s3 + $0x8] sm:$0xff] }
 0xa0c   :  { %v944_v17 = vmul.f32 %v2258_v54, %v943_v53  ;;  %2263 = vrcp.f32 %v960_v56  ;;  %v972_v59 = vand.u32 2147483648, %v960_v56  ;;  %vm966_vm3 = vweird.f32 %v960_v56  ;;  %v2399_v53 = vld [vmem:[#allocation2 + $0x8] sm:$0x3] }
 0xa0d   :  { %v970_v42 = vand.u32 2147483647, %v960_v56  ;;  %v1040_v47 = vrot.slane %v2399_v53, 2 }
 0xa0e   :  { %v945_v52 = vadd.f32 %v2258_v54, %v944_v17  ;;  %v973_v51 = vor.u32 1.1754944e-38, %v972_v59 }
 0xa0f   :  { %vm971_vm5 = vcmp.eq.f32.partialorder %v970_v42, 8.507059e+37 }
 0xa10   :  { %v949_v62 = vsel %vm948_vm14, %v2258_v54, %v945_v52  ;;  %v3125_v54 = vld [vmem:[%s3311_s3 + $0x18] sm:$0xff] }
 0xa11   :  { %v954_v5 = vsel %vm951_vm15, %v953_v23, %v949_v62  ;;  %v2400_v52 = vld [vmem:[#allocation2 + $0x18] sm:$0xc0] }
 0xa12   :  { %v980_v25 = vmul.f32 %v2260_v50, %v954_v5  ;;  %v979_v39 = vmul.f32 %v977_v55, %v954_v5  ;;  %v2264_v3 = vpop.eup %2263  ;;  %v1044_v23 = vsel %vm2575_vm0, %v2400_v52, %v1040_v47 }
 0xa13   :  { %v962_v58 = vmul.f32 %v2264_v3, %v960_v56  ;;  %vm967_vm2 = vweird.f32 %v2264_v3  ;;  %v2402_v56 = vld [vmem:[#allocation2 + $0x10] sm:$0xc0] }
 0xa14   :  { %982 = vrot.lane.b32.xlu1 %v980_v25, %s2429_s0  ;;  %vm968_vm4 = vmor %vm966_vm3, %vm967_vm2 }
 0xa15   :  { %v963_v6 = vsub.f32 1.0, %v962_v58 }
 0xa17   :  { %v964_v41 = vmul.f32 %v2264_v3, %v963_v6 }
 0xa19   :  { %v965_v32 = vadd.f32 %v2264_v3, %v964_v41 }
 0xa1b   :  { %v969_v37 = vsel %vm968_vm4, %v2264_v3, %v965_v32  ;;  %v1045_v3 = vsel %vm2583_vm1, %v2402_v56, %v1041_v21 }
 0xa1c   :  { %v974_v0 = vsel %vm971_vm5, %v973_v51, %v969_v37 }
 0xa86   :  { %v983_v48 = vpop.permute.xlu1 %982 }
 0xa87   :  { %v3038_v57 = vadd.f32 %v983_v48, %v979_v39 }
 0xa89   :  { %2265 = vtanh.f32 %v3038_v57  ;;  %v1094_v51 = vrot.slane %v3038_v57, 6 }
 0xa8f   :  { %v2266_v43 = vpop.eup %2265 }
 0xa90   :  { %v987_v2 = vmul.f32 %v2266_v43, %v974_v0 }
 0xa92   :  { %v989_v8 = vrot.slane %v987_v2, 4 }
 0xa94   :  { %990 = vrot.lane.b32.xlu2 %v989_v8, %s2429_s0 }
 0xaee   :  { %v991_v9 = vpop.permute.xlu2 %990 }
 0xaef   :  { %2143 = vmatmul.msk.f32.vlgmr.msra.gmra.mxu2 %vm294_vm10, %v991_v9  ;;  %2144 = vmatmul.msk.f32.vlgmr.msra.gmra.mxu3 %vm294_vm10, %v991_v9 }
 0xaf0   :  { %1451 = vmatpush.msra.mxu2 %v3047_v11  ;;  %1471 = vmatpush.msra.mxu3 %v3053_v12 }
 0xaf2   :  { %1452 = vmatpush.msra.mxu2 %v3059_v13  ;;  %1472 = vmatpush.msra.mxu3 %v3065_v14 }
 0xaf4   :  { %1453 = vmatpush.msra.mxu2 %v3071_v19  ;;  %1473 = vmatpush.msra.mxu3 %v3077_v20 }
 0xaf6   :  { %1454 = vmatpush.msra.mxu2 %v3083_v22  ;;  %1474 = vmatpush.msra.mxu3 %v3089_v24 }
 0xaf8   :  { %1455 = vmatpush.msra.mxu2 %v3095_v28  ;;  %1475 = vmatpush.msra.mxu3 %v3101_v29 }
 0xafa   :  { %1456 = vmatpush.msra.mxu2 %v3107_v33  ;;  %1476 = vmatpush.msra.mxu3 %v3113_v38 }
 0xafc   :  { %1457 = vmatpush.msra.mxu2 %v3119_v4  ;;  %1477 = vmatpush.msra.mxu3 %v3125_v54 }
 0xafe   :  { %1458 = vmatpush.msra.mxu2 %v3131_v63  ;;  %1478 = vmatpush.msra.mxu3 %v3137_v18 }
 0xb72   :  { %v1011_v17 = vpop.f32.mrf.mxu2  ;;  %v1031_v39 = vpop.f32.mrf.mxu3 }
 0xb73   :  { %v1048_v40 = vrot.slane %v1011_v17, 2  ;;  %v1049_v27 = vrot.slane %v1031_v39, 2 }
 0xb75   :  { %v1052_v55 = vadd.f32 %v1048_v40, %v1044_v23  ;;  %v1053_v6 = vadd.f32 %v1049_v27, %v1045_v3 }
 0xb77   :  { %v1054_v62 = vsub.f32 0.0, %v1052_v55  ;;  %v1074_v9 = vsub.f32 0.0, %v1053_v6 }
 0xb79   :  { %v1055_v50 = vmul.f32 1.442695, %v1054_v62  ;;  %v1075_v53 = vmul.f32 1.442695, %v1074_v9 }
 0xb7b   :  { %2267 = vpow2.f32 %v1055_v50 }
 0xb81   :  { %v2268_v5 = vpop.eup %2267 }
 0xb82   :  { %v1057_v25 = vadd.f32 1.0, %v2268_v5 }
 0xb84   :  { %2269 = vrcp.f32 %v1057_v25  ;;  %v1069_v48 = vand.u32 2147483648, %v1057_v25  ;;  %v1067_v59 = vand.u32 2147483647, %v1057_v25  ;;  %vm1063_vm6 = vweird.f32 %v1057_v25 }
 0xb85   :  { %2271 = vtanh.f32 %v1053_v6 }
 0xb86   :  { %v1070_v37 = vor.u32 1.1754944e-38, %v1069_v48  ;;  %vm1068_vm8 = vcmp.eq.f32.partialorder %v1067_v59, 8.507059e+37  ;;  %2273 = vpow2.f32 %v1075_v53 }
 0xb8a   :  { %v2270_v58 = vpop.eup %2269 }
 0xb8b   :  { %v1059_v41 = vmul.f32 %v2270_v58, %v1057_v25  ;;  %vm1064_vm0 = vweird.f32 %v2270_v58  ;;  %v2272_v0 = vpop.eup %2271 }
 0xb8c   :  { %vm1065_vm7 = vmor %vm1063_vm6, %vm1064_vm0  ;;  %v2274_v47 = vpop.eup %2273 }
 0xb8d   :  { %v1060_v10 = vsub.f32 1.0, %v1059_v41  ;;  %v1077_v17 = vadd.f32 1.0, %v2274_v47 }
 0xb8f   :  { %v1061_v32 = vmul.f32 %v2270_v58, %v1060_v10  ;;  %2275 = vrcp.f32 %v1077_v17  ;;  %v1089_v5 = vand.u32 2147483648, %v1077_v17  ;;  %vm1083_vm9 = vweird.f32 %v1077_v17 }
 0xb90   :  { %v1087_v25 = vand.u32 2147483647, %v1077_v17 }
 0xb91   :  { %v1062_v42 = vadd.f32 %v2270_v58, %v1061_v32  ;;  %v1090_v31 = vor.u32 1.1754944e-38, %v1089_v5 }
 0xb92   :  { %vm1088_vm12 = vcmp.eq.f32.partialorder %v1087_v25, 8.507059e+37 }
 0xb93   :  { %v1066_v43 = vsel %vm1065_vm7, %v2270_v58, %v1062_v42 }
 0xb94   :  { %v1071_v26 = vsel %vm1068_vm8, %v1070_v37, %v1066_v43 }
 0xb95   :  { %v1097_v2 = vmul.f32 %v2272_v0, %v1071_v26  ;;  %v1096_v8 = vmul.f32 %v1094_v51, %v1071_v26  ;;  %v2276_v40 = vpop.eup %2275 }
 0xb96   :  { %v1079_v52 = vmul.f32 %v2276_v40, %v1077_v17  ;;  %vm1084_vm1 = vweird.f32 %v2276_v40 }
 0xb97   :  { %1099 = vrot.lane.b32.xlu0 %v1097_v2, %s2429_s0  ;;  %vm1085_vm11 = vmor %vm1083_vm9, %vm1084_vm1 }
 0xb98   :  { %v1080_v23 = vsub.f32 1.0, %v1079_v52 }
 0xb9a   :  { %v1081_v55 = vmul.f32 %v2276_v40, %v1080_v23 }
 0xb9c   :  { %v1082_v50 = vadd.f32 %v2276_v40, %v1081_v55 }
 0xb9e   :  { %v1086_v39 = vsel %vm1085_vm11, %v2276_v40, %v1082_v50 }
 0xb9f   :  { %v1091_v27 = vsel %vm1088_vm12, %v1090_v31, %v1086_v39 }
 0xc09   :  { %v1100_v62 = vpop.permute.xlu0 %1099 }
 0xc0a   :  { %v3146_v57 = vadd.f32 %v1100_v62, %v1096_v8 }
 0xc0c   :  { %2277 = vtanh.f32 %v3146_v57  ;;  %v1201_v53 = vrot.slane %v3146_v57, 6 }
 0xc12   :  { %v2278_v21 = vpop.eup %2277 }
 0xc13   :  { %v1104_v56 = vmul.f32 %v2278_v21, %v1091_v27 }
 0xc15   :  { %v1106_v3 = vrot.slane %v1104_v56, 6 }
 0xc17   :  { %1107 = vrot.lane.b32.xlu1 %v1106_v3, %s2429_s0 }
 0xc89   :  { %v1108_v58 = vpop.permute.xlu1 %1107 }
 0xc8a   :  { %2145 = vmatmul.msk.f32.vlgmr.msrb.gmra.mxu0 %vm294_vm10, %v1108_v58  ;;  %2146 = vmatmul.msk.f32.vlgmr.msrb.gmra.mxu1 %vm294_vm10, %v1108_v58 }
 0xc8b   :  { %1564 = vmatpush.msrb.mxu0 %v3047_v11  ;;  %1584 = vmatpush.msrb.mxu1 %v3053_v12 }
 0xc8d   :  { %1565 = vmatpush.msrb.mxu0 %v3059_v13  ;;  %1585 = vmatpush.msrb.mxu1 %v3065_v14 }
 0xc8f   :  { %1566 = vmatpush.msrb.mxu0 %v3071_v19  ;;  %1586 = vmatpush.msrb.mxu1 %v3077_v20 }
 0xc91   :  { %1567 = vmatpush.msrb.mxu0 %v3083_v22  ;;  %1587 = vmatpush.msrb.mxu1 %v3089_v24 }
 0xc93   :  { %1568 = vmatpush.msrb.mxu0 %v3095_v28  ;;  %1588 = vmatpush.msrb.mxu1 %v3101_v29 }
 0xc95   :  { %1569 = vmatpush.msrb.mxu0 %v3107_v33  ;;  %1589 = vmatpush.msrb.mxu1 %v3113_v38 }
 0xc97   :  { %1570 = vmatpush.msrb.mxu0 %v3119_v4  ;;  %1590 = vmatpush.msrb.mxu1 %v3125_v54 }
 0xc99   :  { %1571 = vmatpush.msrb.mxu0 %v3131_v63  ;;  %1591 = vmatpush.msrb.mxu1 %v3137_v18 }
 0xd07   :  { %v1128_v6 = vpop.f32.mrf.mxu0  ;;  %v1148_v42 = vpop.f32.mrf.mxu1 }
 0xd08   :  { %v1159_v41 = vadd.f32 %v2617_v44, %v1128_v6  ;;  %v1160_v51 = vadd.f32 %v2621_v45, %v1148_v42 }
 0xd0a   :  { %v1161_v10 = vsub.f32 0.0, %v1159_v41  ;;  %v1181_v45 = vsub.f32 0.0, %v1160_v51 }
 0xd0c   :  { %v1162_v48 = vmul.f32 1.442695, %v1161_v10  ;;  %v1182_v55 = vmul.f32 1.442695, %v1181_v45 }
 0xd0e   :  { %2279 = vpow2.f32 %v1162_v48 }
 0xd14   :  { %v2280_v32 = vpop.eup %2279 }
 0xd15   :  { %v1164_v59 = vadd.f32 1.0, %v2280_v32 }
 0xd17   :  { %2281 = vrcp.f32 %v1164_v59  ;;  %v1176_v26 = vand.u32 2147483648, %v1164_v59  ;;  %v1174_v8 = vand.u32 2147483647, %v1164_v59  ;;  %vm1170_vm14 = vweird.f32 %v1164_v59 }
 0xd18   :  { %2283 = vtanh.f32 %v1160_v51 }
 0xd19   :  { %v1177_v44 = vor.u32 1.1754944e-38, %v1176_v26  ;;  %vm1175_vm2 = vcmp.eq.f32.partialorder %v1174_v8, 8.507059e+37  ;;  %2285 = vpow2.f32 %v1182_v55 }
 0xd1d   :  { %v2282_v37 = vpop.eup %2281 }
 0xd1e   :  { %v1166_v43 = vmul.f32 %v2282_v37, %v1164_v59  ;;  %vm1171_vm13 = vweird.f32 %v2282_v37  ;;  %v2284_v17 = vpop.eup %2283 }
 0xd1f   :  { %vm1172_vm15 = vmor %vm1170_vm14, %vm1171_vm13  ;;  %v2286_v62 = vpop.eup %2285 }
 0xd20   :  { %v1167_v0 = vsub.f32 1.0, %v1166_v43  ;;  %v1184_v50 = vadd.f32 1.0, %v2286_v62 }
 0xd22   :  { %v1168_v2 = vmul.f32 %v2282_v37, %v1167_v0  ;;  %2287 = vrcp.f32 %v1184_v50  ;;  %v1196_v56 = vand.u32 2147483648, %v1184_v50  ;;  %vm1190_vm4 = vweird.f32 %v1184_v50 }
 0xd23   :  { %v1194_v3 = vand.u32 2147483647, %v1184_v50 }
 0xd24   :  { %v1169_v9 = vadd.f32 %v2282_v37, %v1168_v2  ;;  %v1197_v6 = vor.u32 1.1754944e-38, %v1196_v56 }
 0xd25   :  { %vm1195_vm0 = vcmp.eq.f32.partialorder %v1194_v3, 8.507059e+37 }
 0xd26   :  { %v1173_v47 = vsel %vm1172_vm15, %v2282_v37, %v1169_v9 }
 0xd27   :  { %v1178_v40 = vsel %vm1175_vm2, %v1177_v44, %v1173_v47 }
 0xd28   :  { %v1204_v52 = vmul.f32 %v2284_v17, %v1178_v40  ;;  %v1203_v23 = vmul.f32 %v1201_v53, %v1178_v40  ;;  %v2288_v5 = vpop.eup %2287 }
 0xd29   :  { %v1186_v25 = vmul.f32 %v2288_v5, %v1184_v50  ;;  %vm1191_vm3 = vweird.f32 %v2288_v5 }
 0xd2a   :  { %1206 = vrot.lane.b32.xlu2 %v1204_v52, %s2429_s0  ;;  %vm1192_vm5 = vmor %vm1190_vm4, %vm1191_vm3 }
 0xd2b   :  { %v1187_v39 = vsub.f32 1.0, %v1186_v25 }
 0xd2d   :  { %v1188_v31 = vmul.f32 %v2288_v5, %v1187_v39 }
 0xd2f   :  { %v1189_v27 = vadd.f32 %v2288_v5, %v1188_v31 }
 0xd31   :  { %v1193_v58 = vsel %vm1192_vm5, %v2288_v5, %v1189_v27 }
 0xd32   :  { %v1198_v10 = vsel %vm1195_vm0, %v1197_v6, %v1193_v58 }
 0xd84   :  { %v1207_v21 = vpop.permute.xlu2 %1206 }
 0xd85   :  { %v3172_v57 = vadd.f32 %v1207_v21, %v1203_v23 }
 0xd87   :  { %2289 = vtanh.f32 %v3172_v57  ;;  %v1313_v45 = vrot.slane %v3172_v57, 6 }
 0xd8d   :  { %v2290_v41 = vpop.eup %2289 }
 0xd8e   :  { %v1211_v48 = vmul.f32 %v2290_v41, %v1198_v10 }
 0xd90   :  { %1213 = vrot.lane.b32.xlu0 %v1211_v48, %s2429_s0 }
 0xe02   :  { %v1214_v32 = vpop.permute.xlu0 %1213 }
 0xe03   :  { %2147 = vmatmul.msk.f32.vlgmr.msrb.gmra.mxu2 %vm294_vm10, %v1214_v32  ;;  %2148 = vmatmul.msk.f32.vlgmr.msrb.gmra.mxu3 %vm294_vm10, %v1214_v32 }
 0xe04   :  { %1670 = vmatpush.msrb.mxu2 %v3047_v11  ;;  %1690 = vmatpush.msrb.mxu3 %v3053_v12 }
 0xe06   :  { %1671 = vmatpush.msrb.mxu2 %v3059_v13  ;;  %1691 = vmatpush.msrb.mxu3 %v3065_v14 }
 0xe08   :  { %1672 = vmatpush.msrb.mxu2 %v3071_v19  ;;  %1692 = vmatpush.msrb.mxu3 %v3077_v20 }
 0xe0a   :  { %1673 = vmatpush.msrb.mxu2 %v3083_v22  ;;  %1693 = vmatpush.msrb.mxu3 %v3089_v24 }
 0xe0c   :  { %1674 = vmatpush.msrb.mxu2 %v3095_v28  ;;  %1694 = vmatpush.msrb.mxu3 %v3101_v29 }
 0xe0e   :  { %1675 = vmatpush.msrb.mxu2 %v3107_v33  ;;  %1695 = vmatpush.msrb.mxu3 %v3113_v38 }
 0xe10   :  { %1676 = vmatpush.msrb.mxu2 %v3119_v4  ;;  %1696 = vmatpush.msrb.mxu3 %v3125_v54 }
 0xe12   :  { %1677 = vmatpush.msrb.mxu2 %v3131_v63  ;;  %1697 = vmatpush.msrb.mxu3 %v3137_v18 }
 0xe86   :  { %v1234_v59 = vpop.f32.mrf.mxu2  ;;  %v1254_v2 = vpop.f32.mrf.mxu3 }
 0xe87   :  { %v1267_v42 = vrot.slane %v1234_v59, 6  ;;  %v1268_v8 = vrot.slane %v1254_v2, 6 }
 0xe89   :  { %v1271_v37 = vadd.f32 %v1267_v42, %v2591_v30  ;;  %v1272_v44 = vadd.f32 %v1268_v8, %v2625_v46 }
 0xe8b   :  { %v1273_v51 = vsub.f32 0.0, %v1271_v37  ;;  %v1293_v46 = vsub.f32 0.0, %v1272_v44 }
 0xe8d   :  { %v1274_v43 = vmul.f32 1.442695, %v1273_v51  ;;  %v1294_v39 = vmul.f32 1.442695, %v1293_v46 }
 0xe8f   :  { %2291 = vpow2.f32 %v1274_v43 }
 0xe95   :  { %v2292_v0 = vpop.eup %2291 }
 0xe96   :  { %v1276_v26 = vadd.f32 1.0, %v2292_v0 }
 0xe98   :  { %2293 = vrcp.f32 %v1276_v26  ;;  %v1288_v17 = vand.u32 2147483648, %v1276_v26  ;;  %v1286_v52 = vand.u32 2147483647, %v1276_v26  ;;  %vm1282_vm7 = vweird.f32 %v1276_v26 }
 0xe99   :  { %2295 = vtanh.f32 %v1272_v44 }
 0xe9a   :  { %v1289_v30 = vor.u32 1.1754944e-38, %v1288_v17  ;;  %vm1287_vm1 = vcmp.eq.f32.partialorder %v1286_v52, 8.507059e+37  ;;  %2297 = vpow2.f32 %v1294_v39 }
 0xe9e   :  { %v2294_v9 = vpop.eup %2293 }
 0xe9f   :  { %v1278_v53 = vmul.f32 %v2294_v9, %v1276_v26  ;;  %vm1283_vm6 = vweird.f32 %v2294_v9  ;;  %v2296_v62 = vpop.eup %2295 }
 0xea0   :  { %vm1284_vm8 = vmor %vm1282_vm7, %vm1283_vm6  ;;  %v2298_v31 = vpop.eup %2297 }
 0xea1   :  { %v1279_v47 = vsub.f32 1.0, %v1278_v53  ;;  %v1296_v21 = vadd.f32 1.0, %v2298_v31 }
 0xea3   :  { %v1280_v40 = vmul.f32 %v2294_v9, %v1279_v47  ;;  %2299 = vrcp.f32 %v1296_v21  ;;  %v1308_v10 = vand.u32 2147483648, %v1296_v21  ;;  %vm1302_vm11 = vweird.f32 %v1296_v21 }
 0xea4   :  { %v1306_v48 = vand.u32 2147483647, %v1296_v21 }
 0xea5   :  { %v1281_v23 = vadd.f32 %v2294_v9, %v1280_v40  ;;  %v1309_v59 = vor.u32 1.1754944e-38, %v1308_v10 }
 0xea6   :  { %vm1307_vm13 = vcmp.eq.f32.partialorder %v1306_v48, 8.507059e+37 }
 0xea7   :  { %v1285_v55 = vsel %vm1284_vm8, %v2294_v9, %v1281_v23 }
 0xea8   :  { %v1290_v50 = vsel %vm1287_vm1, %v1289_v30, %v1285_v55 }
 0xea9   :  { %v1316_v5 = vmul.f32 %v2296_v62, %v1290_v50  ;;  %v1315_v25 = vmul.f32 %v1313_v45, %v1290_v50  ;;  %v2300_v27 = vpop.eup %2299 }
 0xeaa   :  { %v1298_v56 = vmul.f32 %v2300_v27, %v1296_v21  ;;  %vm1303_vm9 = vweird.f32 %v2300_v27 }
 0xeab   :  { %1318 = vrot.lane.b32.xlu1 %v1316_v5, %s2429_s0  ;;  %vm1304_vm12 = vmor %vm1302_vm11, %vm1303_vm9 }
 0xeac   :  { %v1299_v3 = vsub.f32 1.0, %v1298_v56 }
 0xeae   :  { %v1300_v58 = vmul.f32 %v2300_v27, %v1299_v3 }
 0xeb0   :  { %v1301_v41 = vadd.f32 %v2300_v27, %v1300_v58 }
 0xeb2   :  { %v1305_v32 = vsel %vm1304_vm12, %v2300_v27, %v1301_v41 }
 0xeb3   :  { %v1310_v37 = vsel %vm1307_vm13, %v1309_v59, %v1305_v32 }
 0xf1d   :  { %v1319_v6 = vpop.permute.xlu1 %1318 }
 0xf1e   :  { %v3198_v57 = vadd.f32 %v1319_v6, %v1315_v25 }
 0xf20   :  { %2301 = vtanh.f32 %v3198_v57  ;;  %v1426_v25 = vrot.slane %v3198_v57, 6 }
 0xf26   :  { %v2302_v42 = vpop.eup %2301 }
 0xf27   :  { %v1323_v51 = vmul.f32 %v2302_v42, %v1310_v37 }
 0xf29   :  { %v1325_v43 = vrot.slane %v1323_v51, 2 }
 0xf2b   :  { %1326 = vrot.lane.b32.xlu2 %v1325_v43, %s2429_s0 }
 0xf85   :  { %v1327_v0 = vpop.permute.xlu2 %1326 }
 0xf86   :  { %2149 = vmatmul.msk.f32.vlgmr.msra.gmra.mxu0 %vm294_vm10, %v1327_v0  ;;  %2150 = vmatmul.msk.f32.vlgmr.msra.gmra.mxu1 %vm294_vm10, %v1327_v0 }
 0xf87   :  { %1783 = vmatpush.msra.mxu0 %v3047_v11  ;;  %1803 = vmatpush.msra.mxu1 %v3053_v12 }
 0xf89   :  { %1784 = vmatpush.msra.mxu0 %v3059_v13  ;;  %1804 = vmatpush.msra.mxu1 %v3065_v14 }
 0xf8b   :  { %1785 = vmatpush.msra.mxu0 %v3071_v19  ;;  %1805 = vmatpush.msra.mxu1 %v3077_v20 }
 0xf8d   :  { %1786 = vmatpush.msra.mxu0 %v3083_v22  ;;  %1806 = vmatpush.msra.mxu1 %v3089_v24 }
 0xf8f   :  { %1787 = vmatpush.msra.mxu0 %v3095_v28  ;;  %1807 = vmatpush.msra.mxu1 %v3101_v29 }
 0xf91   :  { %1788 = vmatpush.msra.mxu0 %v3107_v33  ;;  %1808 = vmatpush.msra.mxu1 %v3113_v38 }
 0xf93   :  { %1789 = vmatpush.msra.mxu0 %v3119_v4  ;;  %1809 = vmatpush.msra.mxu1 %v3125_v54 }
 0xf95   :  { %1790 = vmatpush.msra.mxu0 %v3131_v63  ;;  %1810 = vmatpush.msra.mxu1 %v3137_v18 }
0x1003   :  { %v1347_v26 = vpop.f32.mrf.mxu0  ;;  %v1367_v17 = vpop.f32.mrf.mxu1 }
0x1004   :  { %v1380_v2 = vrot.slane %v1347_v26, 4  ;;  %v1381_v40 = vrot.slane %v1367_v17, 4 }
0x1006   :  { %v1384_v8 = vadd.f32 %v1380_v2, %v2599_v34  ;;  %v1385_v23 = vadd.f32 %v1381_v40, %v2630_v49 }
0x1008   :  { %v1386_v9 = vsub.f32 0.0, %v1384_v8  ;;  %v1406_v49 = vsub.f32 0.0, %v1385_v23 }
0x100a   :  { %v1387_v44 = vmul.f32 1.442695, %v1386_v9  ;;  %v1407_v56 = vmul.f32 1.442695, %v1406_v49 }
0x100c   :  { %2303 = vpow2.f32 %v1387_v44 }
0x1012   :  { %v2304_v53 = vpop.eup %2303 }
0x1013   :  { %v1389_v47 = vadd.f32 1.0, %v2304_v53 }
0x1015   :  { %2305 = vrcp.f32 %v1389_v47  ;;  %v1401_v55 = vand.u32 2147483648, %v1389_v47  ;;  %v1399_v50 = vand.u32 2147483647, %v1389_v47  ;;  %vm1395_vm15 = vweird.f32 %v1389_v47 }
0x1016   :  { %2307 = vtanh.f32 %v1385_v23 }
0x1017   :  { %v1402_v34 = vor.u32 1.1754944e-38, %v1401_v55  ;;  %vm1400_vm3 = vcmp.eq.f32.partialorder %v1399_v50, 8.507059e+37  ;;  %2309 = vpow2.f32 %v1407_v56 }
0x101b   :  { %v2306_v52 = vpop.eup %2305 }
0x101c   :  { %v1391_v30 = vmul.f32 %v2306_v52, %v1389_v47  ;;  %vm1396_vm14 = vweird.f32 %v2306_v52  ;;  %v2308_v39 = vpop.eup %2307 }
0x101d   :  { %vm1397_vm2 = vmor %vm1395_vm15, %vm1396_vm14  ;;  %v2310_v3 = vpop.eup %2309 }
0x101e   :  { %v1392_v45 = vsub.f32 1.0, %v1391_v30  ;;  %v1409_v58 = vadd.f32 1.0, %v2310_v3 }
0x1020   :  { %v1393_v62 = vmul.f32 %v2306_v52, %v1392_v45  ;;  %2311 = vrcp.f32 %v1409_v58  ;;  %v1421_v42 = vand.u32 2147483648, %v1409_v58  ;;  %vm1415_vm5 = vweird.f32 %v1409_v58 }
0x1021   :  { %v1419_v37 = vand.u32 2147483647, %v1409_v58 }
0x1022   :  { %v1394_v5 = vadd.f32 %v2306_v52, %v1393_v62  ;;  %v1422_v43 = vor.u32 1.1754944e-38, %v1421_v42 }
0x1023   :  { %vm1420_vm6 = vcmp.eq.f32.partialorder %v1419_v37, 8.507059e+37 }
0x1024   :  { %v1398_v46 = vsel %vm1397_vm2, %v2306_v52, %v1394_v5 }
0x1025   :  { %v1403_v31 = vsel %vm1400_vm3, %v1402_v34, %v1398_v46 }
0x1026   :  { %v1429_v21 = vmul.f32 %v2308_v39, %v1403_v31  ;;  %v1428_v27 = vmul.f32 %v1426_v25, %v1403_v31  ;;  %v2312_v6 = vpop.eup %2311 }
0x1027   :  { %v1411_v41 = vmul.f32 %v2312_v6, %v1409_v58  ;;  %vm1416_vm4 = vweird.f32 %v2312_v6 }
0x1028   :  { %1431 = vrot.lane.b32.xlu0 %v1429_v21, %s2429_s0  ;;  %vm1417_vm0 = vmor %vm1415_vm5, %vm1416_vm4 }
0x1029   :  { %v1412_v10 = vsub.f32 1.0, %v1411_v41 }
0x102b   :  { %v1413_v48 = vmul.f32 %v2312_v6, %v1412_v10 }
0x102d   :  { %v1414_v59 = vadd.f32 %v2312_v6, %v1413_v48 }
0x102f   :  { %v1418_v51 = vsel %vm1417_vm0, %v2312_v6, %v1414_v59 }
0x1030   :  { %v1423_v26 = vsel %vm1420_vm6, %v1422_v43, %v1418_v51 }
0x109a   :  { %v1432_v32 = vpop.permute.xlu0 %1431 }
0x109b   :  { %v3224_v57 = vadd.f32 %v1432_v32, %v1428_v27 }
0x109d   :  { %2313 = vtanh.f32 %v3224_v57  ;;  %v1539_v53 = vrot.slane %v3224_v57, 6 }
0x10a3   :  { %v2314_v0 = vpop.eup %2313 }
0x10a4   :  { %v1436_v2 = vmul.f32 %v2314_v0, %v1423_v26 }
0x10a6   :  { %v1438_v8 = vrot.slane %v1436_v2, 4 }
0x10a8   :  { %1439 = vrot.lane.b32.xlu1 %v1438_v8, %s2429_s0 }
0x111a   :  { %v1440_v9 = vpop.permute.xlu1 %1439 }
0x111b   :  { %2151 = vmatmul.msk.f32.vlgmr.msra.gmra.mxu2 %vm294_vm10, %v1440_v9  ;;  %2152 = vmatmul.msk.f32.vlgmr.msra.gmra.mxu3 %vm294_vm10, %v1440_v9 }
0x111c   :  { %1896 = vmatpush.msra.mxu2 %v3047_v11  ;;  %1916 = vmatpush.msra.mxu3 %v3053_v12 }
0x111e   :  { %1897 = vmatpush.msra.mxu2 %v3059_v13  ;;  %1917 = vmatpush.msra.mxu3 %v3065_v14 }
0x1120   :  { %1898 = vmatpush.msra.mxu2 %v3071_v19  ;;  %1918 = vmatpush.msra.mxu3 %v3077_v20 }
0x1122   :  { %1899 = vmatpush.msra.mxu2 %v3083_v22  ;;  %1919 = vmatpush.msra.mxu3 %v3089_v24 }
0x1124   :  { %1900 = vmatpush.msra.mxu2 %v3095_v28  ;;  %1920 = vmatpush.msra.mxu3 %v3101_v29 }
0x1126   :  { %1901 = vmatpush.msra.mxu2 %v3107_v33  ;;  %1921 = vmatpush.msra.mxu3 %v3113_v38 }
0x1128   :  { %1902 = vmatpush.msra.mxu2 %v3119_v4  ;;  %1922 = vmatpush.msra.mxu3 %v3125_v54 }
0x112a   :  { %1903 = vmatpush.msra.mxu2 %v3131_v63  ;;  %1923 = vmatpush.msra.mxu3 %v3137_v18 }
0x119e   :  { %v1460_v11 = vpop.f32.mrf.mxu2  ;;  %v1480_v24 = vpop.f32.mrf.mxu3 }
0x119f   :  { %v1493_v12 = vrot.slane %v1460_v11, 2  ;;  %v1494_v28 = vrot.slane %v1480_v24, 2 }
0x11a1   :  { %v1497_v13 = vadd.f32 %v1493_v12, %v2604_v35  ;;  %v1498_v33 = vadd.f32 %v1494_v28, %v2609_v36 }
0x11a3   :  { %v1499_v14 = vsub.f32 0.0, %v1497_v13  ;;  %v1519_v36 = vsub.f32 0.0, %v1498_v33 }
0x11a5   :  { %v1500_v19 = vmul.f32 1.442695, %v1499_v14  ;;  %v1520_v30 = vmul.f32 1.442695, %v1519_v36 }
0x11a7   :  { %2315 = vpow2.f32 %v1500_v19 }
0x11ad   :  { %v2316_v20 = vpop.eup %2315 }
0x11ae   :  { %v1502_v22 = vadd.f32 1.0, %v2316_v20 }
0x11b0   :  { %2317 = vrcp.f32 %v1502_v22  ;;  %v1514_v54 = vand.u32 2147483648, %v1502_v22  ;;  %v1512_v18 = vand.u32 2147483647, %v1502_v22  ;;  %vm1508_vm8 = vweird.f32 %v1502_v22 }
0x11b1   :  { %2319 = vtanh.f32 %v1498_v33 }
0x11b2   :  { %v1515_v35 = vor.u32 1.1754944e-38, %v1514_v54  ;;  %vm1513_vm9 = vcmp.eq.f32.partialorder %v1512_v18, 8.507059e+37  ;;  %2321 = vpow2.f32 %v1520_v30 }
0x11b6   :  { %v2318_v29 = vpop.eup %2317 }
0x11b7   :  { %v1504_v38 = vmul.f32 %v2318_v29, %v1502_v22  ;;  %vm1509_vm7 = vweird.f32 %v2318_v29  ;;  %v2320_v17 = vpop.eup %2319 }
0x11b8   :  { %vm1510_vm1 = vmor %vm1508_vm8, %vm1509_vm7  ;;  %v2322_v45 = vpop.eup %2321 }
0x11b9   :  { %v1505_v4 = vsub.f32 1.0, %v1504_v38  ;;  %v1522_v55 = vadd.f32 1.0, %v2322_v45 }
0x11bb   :  { %v1506_v63 = vmul.f32 %v2318_v29, %v1505_v4  ;;  %2323 = vrcp.f32 %v1522_v55  ;;  %v1534_v31 = vand.u32 2147483648, %v1522_v55  ;;  %vm1528_vm12 = vweird.f32 %v1522_v55 }
0x11bc   :  { %v1532_v21 = vand.u32 2147483647, %v1522_v55 }
0x11bd   :  { %v1507_v44 = vadd.f32 %v2318_v29, %v1506_v63  ;;  %v1535_v49 = vor.u32 1.1754944e-38, %v1534_v31 }
0x11be   :  { %vm1533_vm14 = vcmp.eq.f32.partialorder %v1532_v21, 8.507059e+37 }
0x11bf   :  { %v1511_v47 = vsel %vm1510_vm1, %v2318_v29, %v1507_v44 }
0x11c0   :  { %v1516_v40 = vsel %vm1513_vm9, %v1515_v35, %v1511_v47 }
0x11c1   :  { %v1542_v52 = vmul.f32 %v2320_v17, %v1516_v40  ;;  %v1541_v23 = vmul.f32 %v1539_v53, %v1516_v40  ;;  %v2324_v62 = vpop.eup %2323 }
0x11c2   :  { %v1524_v50 = vmul.f32 %v2324_v62, %v1522_v55  ;;  %vm1529_vm11 = vweird.f32 %v2324_v62 }
0x11c3   :  { %1544 = vrot.lane.b32.xlu2 %v1542_v52, %s2429_s0  ;;  %vm1530_vm13 = vmor %vm1528_vm12, %vm1529_vm11 }
0x11c4   :  { %v1525_v5 = vsub.f32 1.0, %v1524_v50 }
0x11c6   :  { %v1526_v34 = vmul.f32 %v2324_v62, %v1525_v5 }
0x11c8   :  { %v1527_v39 = vadd.f32 %v2324_v62, %v1526_v34 }
0x11ca   :  { %v1531_v27 = vsel %vm1530_vm13, %v2324_v62, %v1527_v39 }
0x11cb   :  { %v1536_v3 = vsel %vm1533_vm14, %v1535_v49, %v1531_v27 }
0x121d   :  { %v1545_v25 = vpop.permute.xlu2 %1544 }
0x121e   :  { %v1547_v46 = vadd.f32 %v1545_v25, %v1541_v23 }
0x1220   :  { %2325 = vtanh.f32 %v1547_v46  ;;  %v1646_v12 = vrot.slane %v1547_v46, 6 }
0x1226   :  { %v2326_v56 = vpop.eup %2325 }
0x1227   :  { %v1549_v58 = vmul.f32 %v2326_v56, %v1536_v3 }
0x1229   :  { %v1551_v6 = vrot.slane %v1549_v58, 6 }
0x122b   :  { %1552 = vrot.lane.b32.xlu0 %v1551_v6, %s2429_s0 }
0x129d   :  { %v1553_v41 = vpop.permute.xlu0 %1552 }
0x129e   :  { %2153 = vmatmul.msk.f32.vlgmr.msrb.gmra.mxu0 %vm294_vm10, %v1553_v41  ;;  %2154 = vmatmul.msk.f32.vlgmr.msrb.gmra.mxu1 %vm294_vm10, %v1553_v41 }
0x131b   :  { %v1573_v10 = vpop.f32.mrf.mxu0  ;;  %v1593_v37 = vpop.f32.mrf.mxu1 }
0x131c   :  { %v1604_v48 = vadd.f32 %v2678_v15, %v1573_v10  ;;  %v1605_v43 = vadd.f32 %v2683_v16, %v1593_v37 }
0x131e   :  { %v1606_v32 = vsub.f32 0.0, %v1604_v48  ;;  %v1626_v16 = vsub.f32 0.0, %v1605_v43 }
0x1320   :  { %v1607_v57 = vmul.f32 1.442695, %v1606_v32  ;;  %v1627_v24 = vmul.f32 1.442695, %v1626_v16 }
0x1322   :  { %2327 = vpow2.f32 %v1607_v57 }
0x1328   :  { %v2328_v59 = vpop.eup %2327 }
0x1329   :  { %v1609_v42 = vadd.f32 1.0, %v2328_v59 }
0x132b   :  { %2329 = vrcp.f32 %v1609_v42  ;;  %v1621_v2 = vand.u32 2147483648, %v1609_v42  ;;  %v1619_v9 = vand.u32 2147483647, %v1609_v42  ;;  %vm1615_vm2 = vweird.f32 %v1609_v42 }
0x132c   :  { %2331 = vtanh.f32 %v1605_v43 }
0x132d   :  { %v1622_v15 = vor.u32 1.1754944e-38, %v1621_v2  ;;  %vm1620_vm4 = vcmp.eq.f32.partialorder %v1619_v9, 8.507059e+37  ;;  %2333 = vpow2.f32 %v1627_v24 }
0x1331   :  { %v2330_v51 = vpop.eup %2329 }
0x1332   :  { %v1611_v0 = vmul.f32 %v2330_v51, %v1609_v42  ;;  %vm1616_vm15 = vweird.f32 %v2330_v51  ;;  %v2332_v14 = vpop.eup %2331 }
0x1333   :  { %vm1617_vm3 = vmor %vm1615_vm2, %vm1616_vm15  ;;  %v2334_v28 = vpop.eup %2333 }
0x1334   :  { %v1612_v26 = vsub.f32 1.0, %v1611_v0  ;;  %v1629_v29 = vadd.f32 1.0, %v2334_v28 }
0x1336   :  { %v1613_v8 = vmul.f32 %v2330_v51, %v1612_v26  ;;  %2335 = vrcp.f32 %v1629_v29  ;;  %v1641_v35 = vand.u32 2147483648, %v1629_v29  ;;  %vm1635_vm0 = vweird.f32 %v1629_v29 }
0x1337   :  { %v1639_v53 = vand.u32 2147483647, %v1629_v29 }
0x1338   :  { %v1614_v11 = vadd.f32 %v2330_v51, %v1613_v8  ;;  %v1642_v17 = vor.u32 1.1754944e-38, %v1641_v35 }
0x1339   :  { %vm1640_vm7 = vcmp.eq.f32.partialorder %v1639_v53, 8.507059e+37 }
0x133a   :  { %v1618_v13 = vsel %vm1617_vm3, %v2330_v51, %v1614_v11 }
0x133b   :  { %v1623_v19 = vsel %vm1620_vm4, %v1622_v15, %v1618_v13 }
0x133c   :  { %v1649_v20 = vmul.f32 %v2332_v14, %v1623_v19  ;;  %v1648_v22 = vmul.f32 %v1646_v12, %v1623_v19  ;;  %v2336_v33 = vpop.eup %2335 }
0x133d   :  { %v1631_v38 = vmul.f32 %v2336_v33, %v1629_v29  ;;  %vm1636_vm5 = vweird.f32 %v2336_v33 }
0x133e   :  { %1651 = vrot.lane.b32.xlu1 %v1649_v20, %s2429_s0  ;;  %vm1637_vm6 = vmor %vm1635_vm0, %vm1636_vm5 }
0x133f   :  { %v1632_v4 = vsub.f32 1.0, %v1631_v38 }
0x1341   :  { %v1633_v54 = vmul.f32 %v2336_v33, %v1632_v4 }
0x1343   :  { %v1634_v44 = vadd.f32 %v2336_v33, %v1633_v54 }
0x1345   :  { %v1638_v47 = vsel %vm1637_vm6, %v2336_v33, %v1634_v44 }
0x1346   :  { %v1643_v52 = vsel %vm1640_vm7, %v1642_v17, %v1638_v47 }
0x13b0   :  { %v1652_v63 = vpop.permute.xlu1 %1651 }
0x13b1   :  { %v1654_v18 = vadd.f32 %v1652_v63, %v1648_v22 }
0x13b3   :  { %2337 = vtanh.f32 %v1654_v18  ;;  %v1758_v6 = vrot.slane %v1654_v18, 6 }
0x13b9   :  { %v2338_v40 = vpop.eup %2337 }
0x13ba   :  { %v1656_v23 = vmul.f32 %v2338_v40, %v1643_v52 }
0x13bc   :  { %1658 = vrot.lane.b32.xlu2 %v1656_v23, %s2429_s0 }
0x1416   :  { %v1659_v36 = vpop.permute.xlu2 %1658 }
0x1417   :  { %2155 = vmatmul.msk.f32.vlgmr.msrb.gmra.mxu2 %vm294_vm10, %v1659_v36  ;;  %2156 = vmatmul.msk.f32.vlgmr.msrb.gmra.mxu3 %vm294_vm10, %v1659_v36 }
0x149a   :  { %v1679_v30 = vpop.f32.mrf.mxu2  ;;  %v1699_v25 = vpop.f32.mrf.mxu3 }
0x149b   :  { %v1712_v45 = vrot.slane %v1679_v30, 6  ;;  %v1713_v46 = vrot.slane %v1699_v25, 6 }
0x149d   :  { %v1716_v55 = vadd.f32 %v1712_v45, %v2648_v60  ;;  %v1717_v31 = vadd.f32 %v1713_v46, %v2672_v7 }
0x149f   :  { %v1718_v62 = vsub.f32 0.0, %v1716_v55  ;;  %v1738_v7 = vsub.f32 0.0, %v1717_v31 }
0x14a1   :  { %v1719_v50 = vmul.f32 1.442695, %v1718_v62  ;;  %v1739_v59 = vmul.f32 1.442695, %v1738_v7 }
0x14a3   :  { %2339 = vpow2.f32 %v1719_v50 }
0x14a9   :  { %v2340_v5 = vpop.eup %2339 }
0x14aa   :  { %v1721_v34 = vadd.f32 1.0, %v2340_v5 }
0x14ac   :  { %2341 = vrcp.f32 %v1721_v34  ;;  %v1733_v49 = vand.u32 2147483648, %v1721_v34  ;;  %v1731_v3 = vand.u32 2147483647, %v1721_v34  ;;  %vm1727_vm1 = vweird.f32 %v1721_v34 }
0x14ad   :  { %2343 = vtanh.f32 %v1717_v31 }
0x14ae   :  { %v1734_v60 = vor.u32 1.1754944e-38, %v1733_v49  ;;  %vm1732_vm11 = vcmp.eq.f32.partialorder %v1731_v3, 8.507059e+37  ;;  %2345 = vpow2.f32 %v1739_v59 }
0x14b2   :  { %v2342_v39 = vpop.eup %2341 }
0x14b3   :  { %v1723_v21 = vmul.f32 %v2342_v39, %v1721_v34  ;;  %vm1728_vm8 = vweird.f32 %v2342_v39  ;;  %v2344_v10 = vpop.eup %2343 }
0x14b4   :  { %vm1729_vm9 = vmor %vm1727_vm1, %vm1728_vm8  ;;  %v2346_v42 = vpop.eup %2345 }
0x14b5   :  { %v1724_v27 = vsub.f32 1.0, %v1723_v21  ;;  %v1741_v37 = vadd.f32 1.0, %v2346_v42 }
0x14b7   :  { %v1725_v56 = vmul.f32 %v2342_v39, %v1724_v27  ;;  %2347 = vrcp.f32 %v1741_v37  ;;  %v1753_v11 = vand.u32 2147483648, %v1741_v37  ;;  %vm1747_vm13 = vweird.f32 %v1741_v37 }
0x14b8   :  { %v1751_v15 = vand.u32 2147483647, %v1741_v37 }
0x14b9   :  { %v1726_v58 = vadd.f32 %v2342_v39, %v1725_v56  ;;  %v1754_v13 = vor.u32 1.1754944e-38, %v1753_v11 }
0x14ba   :  { %vm1752_vm15 = vcmp.eq.f32.partialorder %v1751_v15, 8.507059e+37 }
0x14bb   :  { %v1730_v41 = vsel %vm1729_vm9, %v2342_v39, %v1726_v58 }
0x14bc   :  { %v1735_v48 = vsel %vm1732_vm11, %v1734_v60, %v1730_v41 }
0x14bd   :  { %v1761_v32 = vmul.f32 %v2344_v10, %v1735_v48  ;;  %v1760_v57 = vmul.f32 %v1758_v6, %v1735_v48  ;;  %v2348_v51 = vpop.eup %2347 }
0x14be   :  { %v1743_v43 = vmul.f32 %v2348_v51, %v1741_v37  ;;  %vm1748_vm12 = vweird.f32 %v2348_v51 }
0x14bf   :  { %1763 = vrot.lane.b32.xlu0 %v1761_v32, %s2429_s0  ;;  %vm1749_vm14 = vmor %vm1747_vm13, %vm1748_vm12 }
0x14c0   :  { %v1744_v0 = vsub.f32 1.0, %v1743_v43 }
0x14c2   :  { %v1745_v26 = vmul.f32 %v2348_v51, %v1744_v0 }
0x14c4   :  { %v1746_v9 = vadd.f32 %v2348_v51, %v1745_v26 }
0x14c6   :  { %v1750_v12 = vsel %vm1749_vm14, %v2348_v51, %v1746_v9  ;;  %v3324_v51 = vld [vmem:[#allocation6_spill] sm:$0xff] }
0x14c7   :  { %v1755_v19 = vsel %vm1752_vm15, %v1754_v13, %v1750_v12  ;;  %v3325_v12 = vld [vmem:[#allocation7_spill] sm:$0xff] }
0x1531   :  { %v1764_v2 = vpop.permute.xlu0 %1763 }
0x1532   :  { %v1766_v8 = vadd.f32 %v1764_v2, %v1760_v57  ;;  %v3323_v57 = vld [vmem:[#allocation8_spill] sm:$0xff] }
0x1533   :  { %v1999_v7 = vrot.slane %v3323_v57, 2 }
0x1534   :  { %2349 = vtanh.f32 %v1766_v8  ;;  %v1871_v36 = vrot.slane %v1766_v8, 6 }
0x153a   :  { %v2350_v14 = vpop.eup %2349 }
0x153b   :  { %v1768_v20 = vmul.f32 %v2350_v14, %v1755_v19 }
0x153d   :  { %v1770_v22 = vrot.slane %v1768_v20, 2 }
0x153f   :  { %1771 = vrot.lane.b32.xlu1 %v1770_v22, %s2429_s0 }
0x15b1   :  { %v1772_v16 = vpop.permute.xlu1 %1771 }
0x15b2   :  { %2157 = vmatmul.msk.f32.vlgmr.msra.gmra.mxu0 %vm294_vm10, %v1772_v16  ;;  %2158 = vmatmul.msk.f32.vlgmr.msra.gmra.mxu1 %vm294_vm10, %v1772_v16 }
0x162f   :  { %v1792_v24 = vpop.f32.mrf.mxu0  ;;  %v1812_v63 = vpop.f32.mrf.mxu1 }
0x1630   :  { %v1825_v28 = vrot.slane %v1792_v24, 4  ;;  %v1826_v18 = vrot.slane %v1812_v63, 4 }
0x1632   :  { %v1829_v29 = vadd.f32 %v1825_v28, %v2653_v61  ;;  %v1830_v35 = vadd.f32 %v1826_v18, %v2661_v1 }
0x1634   :  { %v1831_v33 = vsub.f32 0.0, %v1829_v29  ;;  %v1851_v1 = vsub.f32 0.0, %v1830_v35 }
0x1636   :  { %v1832_v38 = vmul.f32 1.442695, %v1831_v33  ;;  %v1852_v5 = vmul.f32 1.442695, %v1851_v1 }
0x1638   :  { %2351 = vpow2.f32 %v1832_v38 }
0x163e   :  { %v2352_v4 = vpop.eup %2351 }
0x163f   :  { %v1834_v54 = vadd.f32 1.0, %v2352_v4 }
0x1641   :  { %2353 = vrcp.f32 %v1834_v54  ;;  %v1846_v17 = vand.u32 2147483648, %v1834_v54  ;;  %v1844_v52 = vand.u32 2147483647, %v1834_v54  ;;  %vm1840_vm3 = vweird.f32 %v1834_v54 }
0x1642   :  { %2355 = vtanh.f32 %v1830_v35 }
0x1643   :  { %v1847_v61 = vor.u32 1.1754944e-38, %v1846_v17  ;;  %vm1845_vm5 = vcmp.eq.f32.partialorder %v1844_v52, 8.507059e+37  ;;  %2357 = vpow2.f32 %v1852_v5  ;;  %v2011_v17 = vld [vmem:[%s3312_s4 + $0x30] sm:$0xff]  ;;  %v2009_v52 = vld [vmem:[%s3312_s4 + $0x20] sm:$0xff] }
0x1647   :  { %v2354_v44 = vpop.eup %2353 }
0x1648   :  { %v1836_v53 = vmul.f32 %v2354_v44, %v1834_v54  ;;  %vm1841_vm2 = vweird.f32 %v2354_v44  ;;  %v2356_v45 = vpop.eup %2355 }
0x1649   :  { %vm1842_vm4 = vmor %vm1840_vm3, %vm1841_vm2  ;;  %v2358_v34 = vpop.eup %2357  ;;  %vm2003_vm3 = vcmask 261120  }
0x164a   :  { %v1837_v47 = vsub.f32 1.0, %v1836_v53  ;;  %v1854_v25 = vadd.f32 1.0, %v2358_v34 }
0x164c   :  { %v1838_v40 = vmul.f32 %v2354_v44, %v1837_v47  ;;  %2359 = vrcp.f32 %v1854_v25  ;;  %v1866_v3 = vand.u32 2147483648, %v1854_v25  ;;  %vm1860_vm6 = vweird.f32 %v1854_v25  ;;  %v2012_v47 = vld [vmem:[%s3312_s4 + $0x38] sm:$0xff] }
0x164d   :  { %v1864_v58 = vand.u32 2147483647, %v1854_v25  ;;  %2029 = vmatpush.msrb.mxu0 %v2012_v47 }
0x164e   :  { %v1839_v23 = vadd.f32 %v2354_v44, %v1838_v40  ;;  %v1867_v6 = vor.u32 1.1754944e-38, %v1866_v3  ;;  %v2010_v40 = vld [vmem:[%s3312_s4 + $0x28] sm:$0xff] }
0x164f   :  { %vm1865_vm8 = vcmp.eq.f32.partialorder %v1864_v58, 8.507059e+37  ;;  %2030 = vmatpush.msrb.mxu0 %v2011_v17 }
0x1650   :  { %v1843_v30 = vsel %vm1842_vm4, %v2354_v44, %v1839_v23  ;;  %v2008_v23 = vld [vmem:[%s3312_s4 + $0x18] sm:$0xff]  ;;  %vm2041_vm4 = vcmask 9216  }
0x1651   :  { %v1848_v55 = vsel %vm1845_vm5, %v1847_v61, %v1843_v30  ;;  %2031 = vmatpush.msrb.mxu0 %v2010_v40 }
0x1652   :  { %v1874_v62 = vmul.f32 %v2356_v45, %v1848_v55  ;;  %v1873_v50 = vmul.f32 %v1871_v36, %v1848_v55  ;;  %v2360_v46 = vpop.eup %2359  ;;  %v2007_v36 = vld [vmem:[%s3312_s4 + $0x10] sm:$0xff] }
0x1653   :  { %v1856_v39 = vmul.f32 %v2360_v46, %v1854_v25  ;;  %vm1861_vm0 = vweird.f32 %v2360_v46  ;;  %2032 = vmatpush.msrb.mxu0 %v2009_v52 }
0x1654   :  { %1876 = vrot.lane.b32.xlu2 %v1874_v62, %s2429_s0  ;;  %vm1862_vm7 = vmor %vm1860_vm6, %vm1861_vm0 }
0x1655   :  { %v1857_v31 = vsub.f32 1.0, %v1856_v39  ;;  %2033 = vmatpush.msrb.mxu0 %v2008_v23 }
0x1657   :  { %v1858_v21 = vmul.f32 %v2360_v46, %v1857_v31  ;;  %2034 = vmatpush.msrb.mxu0 %v2007_v36 }
0x1659   :  { %v1859_v56 = vadd.f32 %v2360_v46, %v1858_v21 }
0x165b   :  { %v1863_v60 = vsel %vm1862_vm7, %v2360_v46, %v1859_v56 }
0x165c   :  { %v1868_v10 = vsel %vm1865_vm8, %v1867_v6, %v1863_v60  ;;  %v2182_v6 = vld [vmem:[%s3313_s5] ss:$0 sm:$0xff] }
0x16ae   :  { %v1877_v27 = vpop.permute.xlu2 %1876 }
0x16af   :  { %v1879_v49 = vadd.f32 %v1877_v27, %v1873_v50  ;;  %v2006_v27 = vld [vmem:[%s3312_s4 + $0x8] sm:$0xff] }
0x16b0   :  { %2035 = vmatpush.msrb.mxu0 %v2006_v27 }
0x16b1   :  { %2361 = vtanh.f32 %v1879_v49  ;;  %v1984_v29 = vrot.slane %v1879_v49, 6  ;;  %v2005_v49 = vld [vmem:[%s3312_s4] sm:$0xff] }
0x16b2   :  { %2036 = vmatpush.msrb.mxu0 %v2005_v49 }
0x16b7   :  { %v2362_v41 = vpop.eup %2361 }
0x16b8   :  { %v1881_v48 = vmul.f32 %v2362_v41, %v1868_v10 }
0x16ba   :  { %v1883_v32 = vrot.slane %v1881_v48, 4 }
0x16bc   :  { %1884 = vrot.lane.b32.xlu0 %v1883_v32, %s2429_s0 }
0x16c4   :  { %2000 = vrot.lane.b32.xlu0 %v1999_v7, %s2429_s0 }
0x172e   :  { %v1885_v59 = vpop.permute.xlu0 %1884 }
0x172f   :  { %2159 = vmatmul.msk.f32.vlgmr.msra.gmra.mxu2 %vm294_vm10, %v1885_v59  ;;  %2160 = vmatmul.msk.f32.vlgmr.msra.gmra.mxu3 %vm294_vm10, %v1885_v59 }
0x1736   :  { %v2001_v56 = vpop.permute.xlu0 %2000 }
0x17b2   :  { %v1905_v42 = vpop.f32.mrf.mxu2  ;;  %v1925_v9 = vpop.f32.mrf.mxu3 }
0x17b3   :  { %v1938_v37 = vrot.slane %v1905_v42, 2  ;;  %v1939_v11 = vrot.slane %v1925_v9, 2 }
0x17b5   :  { %v1942_v43 = vadd.f32 %v1938_v37, %v3324_v51  ;;  %v1943_v13 = vadd.f32 %v1939_v11, %v3325_v12 }
0x17b7   :  { %v1944_v0 = vsub.f32 0.0, %v1942_v43  ;;  %v1964_v18 = vsub.f32 0.0, %v1943_v13 }
0x17b9   :  { %v1945_v26 = vmul.f32 1.442695, %v1944_v0  ;;  %v1965_v44 = vmul.f32 1.442695, %v1964_v18 }
0x17bb   :  { %2363 = vpow2.f32 %v1945_v26 }
0x17c1   :  { %v2364_v2 = vpop.eup %2363 }
0x17c2   :  { %v1947_v8 = vadd.f32 1.0, %v2364_v2 }
0x17c4   :  { %2365 = vrcp.f32 %v1947_v8  ;;  %v1959_v20 = vand.u32 2147483648, %v1947_v8  ;;  %v1957_v16 = vand.u32 2147483647, %v1947_v8  ;;  %vm1953_vm9 = vweird.f32 %v1947_v8 }
0x17c5   :  { %2367 = vtanh.f32 %v1943_v13 }
0x17c6   :  { %v1960_v28 = vor.u32 1.1754944e-38, %v1959_v20  ;;  %vm1958_vm12 = vcmp.eq.f32.partialorder %v1957_v16, 8.507059e+37  ;;  %2369 = vpow2.f32 %v1965_v44 }
0x17ca   :  { %v2366_v15 = vpop.eup %2365 }
0x17cb   :  { %v1949_v14 = vmul.f32 %v2366_v15, %v1947_v8  ;;  %vm1954_vm1 = vweird.f32 %v2366_v15  ;;  %v2368_v38 = vpop.eup %2367 }
0x17cc   :  { %vm1955_vm11 = vmor %vm1953_vm9, %vm1954_vm1  ;;  %v2370_v35 = vpop.eup %2369 }
0x17cd   :  { %v1950_v19 = vsub.f32 1.0, %v1949_v14  ;;  %v1967_v53 = vadd.f32 1.0, %v2370_v35 }
0x17cf   :  { %v1951_v22 = vmul.f32 %v2366_v15, %v1950_v19  ;;  %2371 = vrcp.f32 %v1967_v53  ;;  %v1979_v5 = vand.u32 2147483648, %v1967_v53  ;;  %vm1973_vm14 = vweird.f32 %v1967_v53 }
0x17d0   :  { %v1977_v34 = vand.u32 2147483647, %v1967_v53 }
0x17d1   :  { %v1952_v24 = vadd.f32 %v2366_v15, %v1951_v22  ;;  %v1980_v46 = vor.u32 1.1754944e-38, %v1979_v5 }
0x17d2   :  { %vm1978_vm2 = vcmp.eq.f32.partialorder %v1977_v34, 8.507059e+37 }
0x17d3   :  { %v1956_v33 = vsel %vm1955_vm11, %v2366_v15, %v1952_v24 }
0x17d4   :  { %v1961_v4 = vsel %vm1958_vm12, %v1960_v28, %v1956_v33 }
0x17d5   :  { %v1987_v54 = vmul.f32 %v2368_v38, %v1961_v4  ;;  %v1986_v63 = vmul.f32 %v1984_v29, %v1961_v4  ;;  %v2372_v61 = vpop.eup %2371 }
0x17d6   :  { %v1969_v30 = vmul.f32 %v2372_v61, %v1967_v53  ;;  %vm1974_vm13 = vweird.f32 %v2372_v61 }
0x17d7   :  { %1989 = vrot.lane.b32.xlu1 %v1987_v54, %s2429_s0  ;;  %vm1975_vm15 = vmor %vm1973_vm14, %vm1974_vm13 }
0x17d8   :  { %v1970_v45 = vsub.f32 1.0, %v1969_v30 }
0x17da   :  { %v1971_v55 = vmul.f32 %v2372_v61, %v1970_v45 }
0x17dc   :  { %v1972_v1 = vadd.f32 %v2372_v61, %v1971_v55 }
0x17de   :  { %v1976_v25 = vsel %vm1975_vm15, %v2372_v61, %v1972_v1 }
0x17df   :  { %v1981_v31 = vsel %vm1978_vm2, %v1980_v46, %v1976_v25 }
0x1849   :  { %v1990_v62 = vpop.permute.xlu1 %1989 }
0x184a   :  { %v1992_v50 = vadd.f32 %v1990_v62, %v1986_v63 }
0x184c   :  { %2373 = vtanh.f32 %v1992_v50 }
0x1852   :  { %v2374_v39 = vpop.eup %2373 }
0x1853   :  { %v1994_v21 = vmul.f32 %v2374_v39, %v1981_v31 }
0x1855   :  { %1996 = vrot.lane.b32.xlu2 %v1994_v21, %s2429_s0  ;;  %s2430_s0 = smov [#allocation3]  }
0x1856   :  { %s2048_s20 = sshll.u32 %s2430_s0, 4  ;;  %s2049_s20 = int_to_ptr.vmem [resolvable:$true] %s2048_s20 }
0x18af   :  { %v1997_v3 = vpop.permute.xlu2 %1996 }
0x18b0   :  { %v2004_v58 = vsel %vm2003_vm3, %v1997_v3, %v2001_v56 }
0x18b1   :  { %v2018_v60 = vrot.slane %v2004_v58, 6 }
0x18b3   :  { %2161 = vmatmul.msk.f32.vlgmr.msrb.gmra.mxu0 %vm294_vm10, %v2018_v60 }
0x1930   :  { %v2038_v41 = vpop.f32.mrf.mxu0 }
0x1931   :  { %v2039_v10 = vadd.f32 %v2182_v6, %v2038_v41 }
0x1933   :  { %2042 = vst.msk [vmem:[#allocation3] sm:$0x3] %vm2041_vm4, %v2039_v10 }
0x1934   :  { %2053 = dma.vmem_to_hbm [thread:$0]  %s2049_s20, 32, %s2051_s23, [#allocation4]  }
0x1935   :  { %2427 = dma.done.wait [#allocation4], 32  }
0x1936   :  { %2428 = vsyncadd [#allocation4], 4294967264 }
0x1937   :  { %2058 = vsyncpa [#allocation4], 1 }

</bundles_post_ra>
